<compile_context>
chip_gen: v6e
topology: v6e:2x2x1
jax: 0.10.0
libtpu: 0.0.40
codegen_flags: <defaults>
</compile_context>

<pallas_src>
import functools

import jax
import jax.numpy as jnp
from jax import lax
from jax.experimental import pallas as pl
from jax.experimental.pallas import tpu as pltpu

WINDOW_SIZE = 11
SIGMA = 1.5
_C1 = 0.01 ** 2
_C2 = 0.03 ** 2


# ----------------------------------------------------------------------------
# helpers (plain JAX glue: gaussian window / band matrices for separable blur)
# ----------------------------------------------------------------------------
def gaussian_1d(window_size=WINDOW_SIZE, sigma=SIGMA):
    x = jnp.arange(window_size, dtype=jnp.float32)
    g = jnp.exp(-((x - window_size // 2) ** 2) / (2.0 * sigma ** 2))
    return g / jnp.sum(g)


def band_matrix(n, g1d, window_size=WINDOW_SIZE):
    # B[i, j] = g[j - i + half] for |j - i| <= half else 0, so that
    # (B @ x)[i] == conv1d(x, g, zero padding)[i]  (cross-correlation).
    half = window_size // 2
    idx = jnp.arange(n)
    d = idx[None, :] - idx[:, None] + half
    valid = (d >= 0) & (d <= window_size - 1)
    vals = g1d[jnp.clip(d, 0, window_size - 1)]
    return jnp.where(valid, vals, 0.0).astype(jnp.float32)


# ----------------------------------------------------------------------------
# Pallas kernel: single step, channels folded, emits partial sums (+ gt image)
# ----------------------------------------------------------------------------
def _loss_kernel(bg_ref, mask_ref, pred_ref, gt_ref, bh_ref, bw_ref, *out_refs,
                 mode, do_l1, do_ssim, C, H, W):
    part_ref = out_refs[0]
    gt_out_ref = out_refs[1] if len(out_refs) > 1 else None

    m = mask_ref[...]                                    # (H, W) original mask
    inv = (1.0 - m) if mode in ("human", "scene") else None

    l1_sum = jnp.float32(0.0)
    blocks = []                                          # sublane-axis stack
    for c in range(C):                                   # static unroll, small C
        p_c = pred_ref[c].astype(jnp.float32)            # (H, W)
        g_c = gt_ref[c].astype(jnp.float32)              # (H, W)

        # ---- render_mode dependent compositing (static branch) ----
        if mode == "human":
            g_c = g_c * m + bg_ref[c] * inv              # bg scalar from SMEM
        elif mode == "scene":
            g_c = g_c * inv                              # reference masks both
            p_c = p_c * inv
        # mode == "human_scene": unchanged

        if gt_out_ref is not None:
            gt_out_ref[c] = g_c.astype(gt_out_ref.dtype)

        # ---- L1 partial sum ----
        if do_l1:
            ad = jnp.abs(p_c - g_c)
            if mode in ("human", "scene"):
                ad = ad * m          # l1_loss(..., mask) / l1_loss(..., 1-mask)
            l1_sum = l1_sum + jnp.sum(ad)

        if do_ssim:
            blocks += [p_c, g_c, p_c * p_c, g_c * g_c, p_c * g_c]

    # ---- SSIM partial sum ----
    ssim_sum = jnp.float32(0.0)
    if do_ssim:
        bh = bh_ref[...]                                 # (H, H) band matrix
        bw = bw_ref[...]                                 # (W, W) band matrix

        # Sublane-aligned stack: (5*C*H, W); block offsets are multiples of H.
        X = jnp.concatenate(blocks, axis=0)
        # W-direction blur: one big MXU matmul, free dim = 5*C*H.
        Y = jnp.dot(X, bw, preferred_element_type=jnp.float32)

        # H-direction blur + fused SSIM epilogue, one channel at a time
        # (keeps live (H,W) f32 temporaries small).  All slices are
        # sublane-aligned (offsets are multiples of H).
        for c in range(C):
            b0 = 5 * c * H
            mu1 = jnp.dot(bh, Y[b0:b0 + H], preferred_element_type=jnp.float32)
            mu2 = jnp.dot(bh, Y[b0 + H:b0 + 2 * H],
                          preferred_element_type=jnp.float32)
            bpp = jnp.dot(bh, Y[b0 + 2 * H:b0 + 3 * H],
                          preferred_element_type=jnp.float32)
            bgg = jnp.dot(bh, Y[b0 + 3 * H:b0 + 4 * H],
                          preferred_element_type=jnp.float32)
            bpg = jnp.dot(bh, Y[b0 + 4 * H:b0 + 5 * H],
                          preferred_element_type=jnp.float32)

            mu1_sq = mu1 * mu1
            mu2_sq = mu2 * mu2
            mu12 = mu1 * mu2
            num = (2.0 * mu12 + _C1) * (2.0 * (bpg - mu12) + _C2)
            den = (mu1_sq + mu2_sq + _C1) * ((bpp - mu1_sq) + (bgg - mu2_sq) + _C2)
            ssim_sum = ssim_sum + jnp.sum(num / den)     # exact division

    # mask sum (SSIM scale in 'human'/'scene' modes), computed ONCE
    msum = jnp.sum(m) if mode in ("human", "scene") else jnp.float32(0.0)

    # lane-dense (8,128) output tile: lane0=l1, lane1=ssim, lane2=mask-sum
    lane = lax.broadcasted_iota(jnp.int32, (8, 128), 1)
    tile = jnp.where(lane == 0, l1_sum,
                     jnp.where(lane == 1, ssim_sum,
                               jnp.where(lane == 2, msum, jnp.float32(0.0))))
    part_ref[...] = tile.astype(jnp.float32)


# ----------------------------------------------------------------------------
# wrapper (mirrors HumanSceneLoss.forward for the active default terms)
# ----------------------------------------------------------------------------
def _vmem_limit_bytes(est_bytes):
    # per-generation cap: <= ~85% of physical VMEM (headroom for compiler
    # scratch and DMA buffers), never below 16 MiB.
    try:
        cap = int(pltpu.get_tpu_info().vmem_capacity_bytes)
    except Exception:
        cap = 64 << 20
    cap = int(cap * 0.85)
    want = int(est_bytes) * 3 // 2          # 1.5x headroom over the estimate
    return int(min(max(want, 16 << 20), cap))


def human_scene_loss(pred_img, gt_image, mask, bg_color,
                     render_mode="human", l_l1_w=0.8, l_ssim_w=0.2):
    if render_mode not in ("human", "scene", "human_scene"):
        raise NotImplementedError(render_mode)

    pred_img = pred_img.astype(jnp.float32)
    gt_image = gt_image.astype(jnp.float32)
    mask = mask.astype(jnp.float32)
    bg_color = bg_color.astype(jnp.float32)
    C, H, W = pred_img.shape

    g1d = gaussian_1d()
    bh = band_matrix(H, g1d)
    bw = band_matrix(W, g1d)

    do_l1 = float(l_l1_w) > 0.0
    do_ssim = float(l_ssim_w) > 0.0
    emit_gt = render_mode in ("human", "scene")

    kernel = functools.partial(_loss_kernel, mode=render_mode, do_l1=do_l1,
                               do_ssim=do_ssim, C=C, H=H, W=W)

    # VMEM budget estimate from the actual working set (no double counting).
    fp = 4
    est = fp * (2 * C * H * W                 # pred / gt
                + H * W                       # mask
                + H * H + W * W               # band matrices
                + 3 * 5 * C * H * W           # stacked blocks + X + Y slabs
                + 8 * H * W                   # per-channel blur/epilogue temps
                + (C * H * W if emit_gt else 0)   # composited gt output
                + 8 * 128)
    vmem_limit = _vmem_limit_bytes(est)

    out_shape = [jax.ShapeDtypeStruct((8, 128), jnp.float32)]
    out_specs = [pl.BlockSpec(memory_space=pltpu.MemorySpace.VMEM)]
    if emit_gt:
        out_shape.append(jax.ShapeDtypeStruct((C, H, W), jnp.float32))
        out_specs.append(pl.BlockSpec(memory_space=pltpu.MemorySpace.VMEM))

    res = pl.pallas_call(
        kernel,
        out_shape=tuple(out_shape),
        in_specs=[
            pl.BlockSpec(memory_space=pltpu.MemorySpace.SMEM),   # bg_color (C,)
            pl.BlockSpec(memory_space=pltpu.MemorySpace.VMEM),   # mask (H,W)
            pl.BlockSpec(memory_space=pltpu.MemorySpace.VMEM),   # pred (C,H,W)
            pl.BlockSpec(memory_space=pltpu.MemorySpace.VMEM),   # gt   (C,H,W)
            pl.BlockSpec(memory_space=pltpu.MemorySpace.VMEM),   # bh (H,H)
            pl.BlockSpec(memory_space=pltpu.MemorySpace.VMEM),   # bw (W,W)
        ],
        out_specs=tuple(out_specs),
        compiler_params=pltpu.CompilerParams(vmem_limit_bytes=vmem_limit),
    )(bg_color, mask, pred_img, gt_image, bh, bw)

    if emit_gt:
        partials, gt_comp = res
    else:
        partials = res[0]
        gt_comp = gt_image

    # tiny scalar post-processing of the partial sums (wrapper glue)
    denom = float(C * H * W)
    loss_dict = {}
    loss = jnp.float32(0.0)
    if do_l1:
        l1_term = l_l1_w * (partials[0, 0] / denom)
        loss_dict["l1"] = l1_term
        loss = loss + l1_term
    if do_ssim:
        ssim_val = partials[0, 1] / denom
        loss_ssim = 1.0 - ssim_val
        if render_mode in ("human", "scene"):
            loss_ssim = loss_ssim * (partials[0, 2] / float(H * W))
        ssim_term = l_ssim_w * loss_ssim
        loss_dict["ssim"] = ssim_term
        loss = loss + ssim_term

    # extras_dict: composited gt comes straight from the kernel output;
    # pred_img in extras is always the original prediction (reference stores
    # it before any masking).
    extras_dict = {"gt_img": gt_comp, "pred_img": pred_img}

    return loss, loss_dict, extras_dict


# ----------------------------------------------------------------------------
# pure-JAX reference (uses lax.conv for the SSIM window) for validation
# ----------------------------------------------------------------------------
def _ref_losses(pred, gt, mask, bg, mode, l1_w, ssim_w):
    C, H, W = pred.shape
    m = mask[None]
    if mode == "human":
        gt = gt * m + bg[:, None, None] * (1.0 - m)
        l1m = m
        scale = jnp.sum(m) / (H * W)
    elif mode == "scene":
        inv = 1.0 - m
        gt = gt * inv
        pred = pred * inv
        l1m = 1.0 - inv
        scale = jnp.sum(1.0 - inv) / (H * W)
    else:
        l1m = None
        scale = 1.0

    absd = jnp.abs(pred - gt)
    l1 = jnp.mean(absd * l1m) if l1m is not None else jnp.mean(absd)

    g1d = gaussian_1d()
    w2d = jnp.outer(g1d, g1d)
    wk = jnp.broadcast_to(w2d[None, None], (C, 1, WINDOW_SIZE, WINDOW_SIZE))

    def blur(x):
        return lax.conv_general_dilated(
            x[None], wk, (1, 1), ((5, 5), (5, 5)),
            feature_group_count=C,
            dimension_numbers=("NCHW", "OIHW", "NCHW"),
            precision=lax.Precision.HIGHEST)[0]

    mu1, mu2 = blur(pred), blur(gt)
    mu1_sq, mu2_sq, mu1_mu2 = mu1 * mu1, mu2 * mu2, mu1 * mu2
    s1 = blur(pred * pred) - mu1_sq
    s2 = blur(gt * gt) - mu2_sq
    s12 = blur(pred * gt) - mu1_mu2
    ssim_map = ((2 * mu1_mu2 + _C1) * (2 * s12 + _C2)) / (
        (mu1_sq + mu2_sq + _C1) * (s1 + s2 + _C2))
    ssim_val = jnp.mean(ssim_map)

    l1_term = l1_w * l1
    ssim_term = ssim_w * (1.0 - ssim_val) * scale
    return l1_term + ssim_term, l1_term, ssim_term, gt


if __name__ == "__main__":
    key = jax.random.PRNGKey(0)
    k1, k2, k3 = jax.random.split(key, 3)

    C, H, W = 3, 64, 64
    gt_image = jax.random.uniform(k1, (C, H, W), dtype=jnp.float32)
    pred_img = jax.random.uniform(k2, (C, H, W), dtype=jnp.float32)
    mask = (jax.random.uniform(k3, (H, W)) > 0.5).astype(jnp.float32)
    bg_color = jnp.ones((C,), dtype=jnp.float32)   # 'white' background

    ok = True
    for mode in ("human", "scene", "human_scene"):
        loss, loss_dict, extras = human_scene_loss(
            pred_img, gt_image, mask, bg_color, render_mode=mode)
        loss = jax.block_until_ready(loss)
        ref_total, ref_l1, ref_ssim, ref_gt = _ref_losses(
            pred_img, gt_image, mask, bg_color, mode, 0.8, 0.2)
        good = (jnp.allclose(loss, ref_total, rtol=2e-3, atol=2e-3)
                and jnp.allclose(loss_dict["l1"], ref_l1, rtol=2e-3, atol=2e-3)
                and jnp.allclose(loss_dict["ssim"], ref_ssim, rtol=2e-3, atol=2e-3)
                and jnp.allclose(extras["gt_img"], ref_gt, rtol=1e-5, atol=1e-5))
        if not good:
            ok = False
            print(f"mismatch in mode={mode}: pallas={loss} ref={ref_total}")

    if ok:
        print("KERNEL_OK")
</pallas_src>

<mosaic_0001>
module attributes {stable_mosaic.version = 11 : i64} {
  func.func @_loss_kernel(%arg0: memref<3xf32, #tpu.memory_space<smem>>, %arg1: memref<64x64xf32, #tpu.memory_space<vmem>>, %arg2: memref<3x64x64xf32, #tpu.memory_space<vmem>>, %arg3: memref<3x64x64xf32, #tpu.memory_space<vmem>>, %arg4: memref<64x64xf32, #tpu.memory_space<vmem>>, %arg5: memref<64x64xf32, #tpu.memory_space<vmem>>, %arg6: memref<8x128xf32, #tpu.memory_space<vmem>>, %arg7: memref<3x64x64xf32, #tpu.memory_space<vmem>>) attributes {dimension_semantics = [], scalar_prefetch = 0 : i64, scratch_operands = 0 : i64, tpu.core_type = #tpu.core_type<tc>} {
    %c0 = arith.constant 0 : index
    %c0_0 = arith.constant 0 : index
    %0 = vector.load %arg1[%c0, %c0_0] : memref<64x64xf32, #tpu.memory_space<vmem>>, vector<64x64xf32>
    %cst = arith.constant 1.000000e+00 : f32
    %1 = vector.broadcast %cst : f32 to vector<64x64xf32>
    %2 = arith.subf %1, %0 : vector<64x64xf32>
    %c0_1 = arith.constant 0 : index
    %c0_2 = arith.constant 0 : index
    %c0_3 = arith.constant 0 : index
    %3 = vector.load %arg2[%c0_1, %c0_2, %c0_3] : memref<3x64x64xf32, #tpu.memory_space<vmem>>, vector<1x64x64xf32>
    %4 = vector.shape_cast %3 : vector<1x64x64xf32> to vector<64x64xf32>
    %c0_4 = arith.constant 0 : index
    %c0_5 = arith.constant 0 : index
    %c0_6 = arith.constant 0 : index
    %5 = vector.load %arg3[%c0_4, %c0_5, %c0_6] : memref<3x64x64xf32, #tpu.memory_space<vmem>>, vector<1x64x64xf32>
    %6 = vector.shape_cast %5 : vector<1x64x64xf32> to vector<64x64xf32>
    %7 = arith.mulf %6, %0 : vector<64x64xf32>
    %c0_7 = arith.constant 0 : index
    %8 = memref.load %arg0[%c0_7] : memref<3xf32, #tpu.memory_space<smem>>
    %9 = vector.broadcast %8 : f32 to vector<64x64xf32>
    %10 = arith.mulf %9, %2 : vector<64x64xf32>
    %11 = arith.addf %7, %10 : vector<64x64xf32>
    %c0_8 = arith.constant 0 : index
    %c0_9 = arith.constant 0 : index
    %c0_10 = arith.constant 0 : index
    %12 = vector.load %arg7[%c0_8, %c0_9, %c0_10] : memref<3x64x64xf32, #tpu.memory_space<vmem>>, vector<1x64x64xf32>
    %13 = vector.shape_cast %12 : vector<1x64x64xf32> to vector<64x64xf32>
    %14 = vector.shape_cast %11 : vector<64x64xf32> to vector<1x64x64xf32>
    tpu.vector_store %arg7[%c0_8, %c0_9, %c0_10], %14 {strides = array<i32>} : memref<3x64x64xf32, #tpu.memory_space<vmem>>, vector<1x64x64xf32>,
    %15 = arith.subf %4, %11 : vector<64x64xf32>
    %16 = math.absf %15 : vector<64x64xf32>
    %17 = arith.mulf %16, %0 : vector<64x64xf32>
    %18 = vector.shape_cast %17 : vector<64x64xf32> to vector<1x64x64xf32>
    %cst_11 = arith.constant dense<0.000000e+00> : vector<1xf32>
    %19 = vector.multi_reduction <add>, %18, %cst_11 [1, 2] : vector<1x64x64xf32> to vector<1xf32>
    %20 = vector.shape_cast %19 : vector<1xf32> to vector<1x1x1xf32>
    %21 = vector.extract %20[0, 0, 0] : f32 from vector<1x1x1xf32>
    %cst_12 = arith.constant 0.000000e+00 : f32
    %22 = arith.addf %cst_12, %21 : f32
    %23 = arith.mulf %4, %4 : vector<64x64xf32>
    %24 = arith.mulf %11, %11 : vector<64x64xf32>
    %25 = arith.mulf %4, %11 : vector<64x64xf32>
    %c1 = arith.constant 1 : index
    %c0_13 = arith.constant 0 : index
    %c0_14 = arith.constant 0 : index
    %26 = vector.load %arg2[%c1, %c0_13, %c0_14] : memref<3x64x64xf32, #tpu.memory_space<vmem>>, vector<1x64x64xf32>
    %27 = vector.shape_cast %26 : vector<1x64x64xf32> to vector<64x64xf32>
    %c1_15 = arith.constant 1 : index
    %c0_16 = arith.constant 0 : index
    %c0_17 = arith.constant 0 : index
    %28 = vector.load %arg3[%c1_15, %c0_16, %c0_17] : memref<3x64x64xf32, #tpu.memory_space<vmem>>, vector<1x64x64xf32>
    %29 = vector.shape_cast %28 : vector<1x64x64xf32> to vector<64x64xf32>
    %30 = arith.mulf %29, %0 : vector<64x64xf32>
    %c1_18 = arith.constant 1 : index
    %31 = memref.load %arg0[%c1_18] : memref<3xf32, #tpu.memory_space<smem>>
    %32 = vector.broadcast %31 : f32 to vector<64x64xf32>
    %33 = arith.mulf %32, %2 : vector<64x64xf32>
    %34 = arith.addf %30, %33 : vector<64x64xf32>
    %c1_19 = arith.constant 1 : index
    %c0_20 = arith.constant 0 : index
    %c0_21 = arith.constant 0 : index
    %35 = vector.load %arg7[%c1_19, %c0_20, %c0_21] : memref<3x64x64xf32, #tpu.memory_space<vmem>>, vector<1x64x64xf32>
    %36 = vector.shape_cast %35 : vector<1x64x64xf32> to vector<64x64xf32>
    %37 = vector.shape_cast %34 : vector<64x64xf32> to vector<1x64x64xf32>
    tpu.vector_store %arg7[%c1_19, %c0_20, %c0_21], %37 {strides = array<i32>} : memref<3x64x64xf32, #tpu.memory_space<vmem>>, vector<1x64x64xf32>,
    %38 = arith.subf %27, %34 : vector<64x64xf32>
    %39 = math.absf %38 : vector<64x64xf32>
    %40 = arith.mulf %39, %0 : vector<64x64xf32>
    %41 = vector.shape_cast %40 : vector<64x64xf32> to vector<1x64x64xf32>
    %cst_22 = arith.constant dense<0.000000e+00> : vector<1xf32>
    %42 = vector.multi_reduction <add>, %41, %cst_22 [1, 2] : vector<1x64x64xf32> to vector<1xf32>
    %43 = vector.shape_cast %42 : vector<1xf32> to vector<1x1x1xf32>
    %44 = vector.extract %43[0, 0, 0] : f32 from vector<1x1x1xf32>
    %45 = arith.addf %22, %44 : f32
    %46 = arith.mulf %27, %27 : vector<64x64xf32>
    %47 = arith.mulf %34, %34 : vector<64x64xf32>
    %48 = arith.mulf %27, %34 : vector<64x64xf32>
    %c2 = arith.constant 2 : index
    %c0_23 = arith.constant 0 : index
    %c0_24 = arith.constant 0 : index
    %49 = vector.load %arg2[%c2, %c0_23, %c0_24] : memref<3x64x64xf32, #tpu.memory_space<vmem>>, vector<1x64x64xf32>
    %50 = vector.shape_cast %49 : vector<1x64x64xf32> to vector<64x64xf32>
    %c2_25 = arith.constant 2 : index
    %c0_26 = arith.constant 0 : index
    %c0_27 = arith.constant 0 : index
    %51 = vector.load %arg3[%c2_25, %c0_26, %c0_27] : memref<3x64x64xf32, #tpu.memory_space<vmem>>, vector<1x64x64xf32>
    %52 = vector.shape_cast %51 : vector<1x64x64xf32> to vector<64x64xf32>
    %53 = arith.mulf %52, %0 : vector<64x64xf32>
    %c2_28 = arith.constant 2 : index
    %54 = memref.load %arg0[%c2_28] : memref<3xf32, #tpu.memory_space<smem>>
    %55 = vector.broadcast %54 : f32 to vector<64x64xf32>
    %56 = arith.mulf %55, %2 : vector<64x64xf32>
    %57 = arith.addf %53, %56 : vector<64x64xf32>
    %c2_29 = arith.constant 2 : index
    %c0_30 = arith.constant 0 : index
    %c0_31 = arith.constant 0 : index
    %58 = vector.load %arg7[%c2_29, %c0_30, %c0_31] : memref<3x64x64xf32, #tpu.memory_space<vmem>>, vector<1x64x64xf32>
    %59 = vector.shape_cast %58 : vector<1x64x64xf32> to vector<64x64xf32>
    %60 = vector.shape_cast %57 : vector<64x64xf32> to vector<1x64x64xf32>
    tpu.vector_store %arg7[%c2_29, %c0_30, %c0_31], %60 {strides = array<i32>} : memref<3x64x64xf32, #tpu.memory_space<vmem>>, vector<1x64x64xf32>,
    %61 = arith.subf %50, %57 : vector<64x64xf32>
    %62 = math.absf %61 : vector<64x64xf32>
    %63 = arith.mulf %62, %0 : vector<64x64xf32>
    %64 = vector.shape_cast %63 : vector<64x64xf32> to vector<1x64x64xf32>
    %cst_32 = arith.constant dense<0.000000e+00> : vector<1xf32>
    %65 = vector.multi_reduction <add>, %64, %cst_32 [1, 2] : vector<1x64x64xf32> to vector<1xf32>
    %66 = vector.shape_cast %65 : vector<1xf32> to vector<1x1x1xf32>
    %67 = vector.extract %66[0, 0, 0] : f32 from vector<1x1x1xf32>
    %68 = arith.addf %45, %67 : f32
    %69 = arith.mulf %50, %50 : vector<64x64xf32>
    %70 = arith.mulf %57, %57 : vector<64x64xf32>
    %71 = arith.mulf %50, %57 : vector<64x64xf32>
    %c0_33 = arith.constant 0 : index
    %c0_34 = arith.constant 0 : index
    %72 = vector.load %arg4[%c0_33, %c0_34] : memref<64x64xf32, #tpu.memory_space<vmem>>, vector<64x64xf32>
    %c0_35 = arith.constant 0 : index
    %c0_36 = arith.constant 0 : index
    %73 = vector.load %arg5[%c0_35, %c0_36] : memref<64x64xf32, #tpu.memory_space<vmem>>, vector<64x64xf32>
    %74 = tpu.concatenate %4, %11, %23, %24, %25, %27, %34, %46, %47, %48, %50, %57, %69, %70, %71 in 0 : vector<64x64xf32>, vector<64x64xf32>, vector<64x64xf32>, vector<64x64xf32>, vector<64x64xf32>, vector<64x64xf32>, vector<64x64xf32>, vector<64x64xf32>, vector<64x64xf32>, vector<64x64xf32>, vector<64x64xf32>, vector<64x64xf32>, vector<64x64xf32>, vector<64x64xf32>, vector<64x64xf32> -> vector<960x64xf32>
    %cst_37 = arith.constant dense<0.000000e+00> : vector<960x64xf32>
    %75 = tpu.matmul %74, %73, %cst_37 {dimension_numbers = #tpu.dot_dimension_numbers<[1], [0], [0], [1], [0, 0, 1, 1], [], []>} : vector<960x64xf32>, vector<64x64xf32>, vector<960x64xf32> -> vector<960x64xf32>
    %76 = vector.extract_strided_slice %75 {offsets = [0, 0], sizes = [64, 64], strides = [1, 1]} : vector<960x64xf32> to vector<64x64xf32>
    %cst_38 = arith.constant dense<0.000000e+00> : vector<64x64xf32>
    %77 = tpu.matmul %72, %76, %cst_38 {dimension_numbers = #tpu.dot_dimension_numbers<[1], [0], [0], [1], [0, 0, 1, 1], [], []>} : vector<64x64xf32>, vector<64x64xf32>, vector<64x64xf32> -> vector<64x64xf32>
    %78 = vector.extract_strided_slice %75 {offsets = [64, 0], sizes = [64, 64], strides = [1, 1]} : vector<960x64xf32> to vector<64x64xf32>
    %cst_39 = arith.constant dense<0.000000e+00> : vector<64x64xf32>
    %79 = tpu.matmul %72, %78, %cst_39 {dimension_numbers = #tpu.dot_dimension_numbers<[1], [0], [0], [1], [0, 0, 1, 1], [], []>} : vector<64x64xf32>, vector<64x64xf32>, vector<64x64xf32> -> vector<64x64xf32>
    %80 = vector.extract_strided_slice %75 {offsets = [128, 0], sizes = [64, 64], strides = [1, 1]} : vector<960x64xf32> to vector<64x64xf32>
    %cst_40 = arith.constant dense<0.000000e+00> : vector<64x64xf32>
    %81 = tpu.matmul %72, %80, %cst_40 {dimension_numbers = #tpu.dot_dimension_numbers<[1], [0], [0], [1], [0, 0, 1, 1], [], []>} : vector<64x64xf32>, vector<64x64xf32>, vector<64x64xf32> -> vector<64x64xf32>
    %82 = vector.extract_strided_slice %75 {offsets = [192, 0], sizes = [64, 64], strides = [1, 1]} : vector<960x64xf32> to vector<64x64xf32>
    %cst_41 = arith.constant dense<0.000000e+00> : vector<64x64xf32>
    %83 = tpu.matmul %72, %82, %cst_41 {dimension_numbers = #tpu.dot_dimension_numbers<[1], [0], [0], [1], [0, 0, 1, 1], [], []>} : vector<64x64xf32>, vector<64x64xf32>, vector<64x64xf32> -> vector<64x64xf32>
    %84 = vector.extract_strided_slice %75 {offsets = [256, 0], sizes = [64, 64], strides = [1, 1]} : vector<960x64xf32> to vector<64x64xf32>
    %cst_42 = arith.constant dense<0.000000e+00> : vector<64x64xf32>
    %85 = tpu.matmul %72, %84, %cst_42 {dimension_numbers = #tpu.dot_dimension_numbers<[1], [0], [0], [1], [0, 0, 1, 1], [], []>} : vector<64x64xf32>, vector<64x64xf32>, vector<64x64xf32> -> vector<64x64xf32>
    %86 = arith.mulf %77, %77 : vector<64x64xf32>
    %87 = arith.mulf %79, %79 : vector<64x64xf32>
    %88 = arith.mulf %77, %79 : vector<64x64xf32>
    %cst_43 = arith.constant 2.000000e+00 : f32
    %89 = vector.broadcast %cst_43 : f32 to vector<64x64xf32>
    %90 = arith.mulf %89, %88 : vector<64x64xf32>
    %cst_44 = arith.constant 9.99999974E-5 : f32
    %91 = vector.broadcast %cst_44 : f32 to vector<64x64xf32>
    %92 = arith.addf %90, %91 : vector<64x64xf32>
    %93 = arith.subf %85, %88 : vector<64x64xf32>
    %cst_45 = arith.constant 2.000000e+00 : f32
    %94 = vector.broadcast %cst_45 : f32 to vector<64x64xf32>
    %95 = arith.mulf %94, %93 : vector<64x64xf32>
    %cst_46 = arith.constant 8.99999984E-4 : f32
    %96 = vector.broadcast %cst_46 : f32 to vector<64x64xf32>
    %97 = arith.addf %95, %96 : vector<64x64xf32>
    %98 = arith.mulf %92, %97 : vector<64x64xf32>
    %99 = arith.addf %86, %87 : vector<64x64xf32>
    %cst_47 = arith.constant 9.99999974E-5 : f32
    %100 = vector.broadcast %cst_47 : f32 to vector<64x64xf32>
    %101 = arith.addf %99, %100 : vector<64x64xf32>
    %102 = arith.subf %81, %86 : vector<64x64xf32>
    %103 = arith.subf %83, %87 : vector<64x64xf32>
    %104 = arith.addf %102, %103 : vector<64x64xf32>
    %cst_48 = arith.constant 8.99999984E-4 : f32
    %105 = vector.broadcast %cst_48 : f32 to vector<64x64xf32>
    %106 = arith.addf %104, %105 : vector<64x64xf32>
    %107 = arith.mulf %101, %106 : vector<64x64xf32>
    %108 = arith.divf %98, %107 : vector<64x64xf32>
    %109 = vector.shape_cast %108 : vector<64x64xf32> to vector<1x64x64xf32>
    %cst_49 = arith.constant dense<0.000000e+00> : vector<1xf32>
    %110 = vector.multi_reduction <add>, %109, %cst_49 [1, 2] : vector<1x64x64xf32> to vector<1xf32>
    %111 = vector.shape_cast %110 : vector<1xf32> to vector<1x1x1xf32>
    %112 = vector.extract %111[0, 0, 0] : f32 from vector<1x1x1xf32>
    %cst_50 = arith.constant 0.000000e+00 : f32
    %113 = arith.addf %cst_50, %112 : f32
    %114 = vector.extract_strided_slice %75 {offsets = [320, 0], sizes = [64, 64], strides = [1, 1]} : vector<960x64xf32> to vector<64x64xf32>
    %cst_51 = arith.constant dense<0.000000e+00> : vector<64x64xf32>
    %115 = tpu.matmul %72, %114, %cst_51 {dimension_numbers = #tpu.dot_dimension_numbers<[1], [0], [0], [1], [0, 0, 1, 1], [], []>} : vector<64x64xf32>, vector<64x64xf32>, vector<64x64xf32> -> vector<64x64xf32>
    %116 = vector.extract_strided_slice %75 {offsets = [384, 0], sizes = [64, 64], strides = [1, 1]} : vector<960x64xf32> to vector<64x64xf32>
    %cst_52 = arith.constant dense<0.000000e+00> : vector<64x64xf32>
    %117 = tpu.matmul %72, %116, %cst_52 {dimension_numbers = #tpu.dot_dimension_numbers<[1], [0], [0], [1], [0, 0, 1, 1], [], []>} : vector<64x64xf32>, vector<64x64xf32>, vector<64x64xf32> -> vector<64x64xf32>
    %118 = vector.extract_strided_slice %75 {offsets = [448, 0], sizes = [64, 64], strides = [1, 1]} : vector<960x64xf32> to vector<64x64xf32>
    %cst_53 = arith.constant dense<0.000000e+00> : vector<64x64xf32>
    %119 = tpu.matmul %72, %118, %cst_53 {dimension_numbers = #tpu.dot_dimension_numbers<[1], [0], [0], [1], [0, 0, 1, 1], [], []>} : vector<64x64xf32>, vector<64x64xf32>, vector<64x64xf32> -> vector<64x64xf32>
    %120 = vector.extract_strided_slice %75 {offsets = [512, 0], sizes = [64, 64], strides = [1, 1]} : vector<960x64xf32> to vector<64x64xf32>
    %cst_54 = arith.constant dense<0.000000e+00> : vector<64x64xf32>
    %121 = tpu.matmul %72, %120, %cst_54 {dimension_numbers = #tpu.dot_dimension_numbers<[1], [0], [0], [1], [0, 0, 1, 1], [], []>} : vector<64x64xf32>, vector<64x64xf32>, vector<64x64xf32> -> vector<64x64xf32>
    %122 = vector.extract_strided_slice %75 {offsets = [576, 0], sizes = [64, 64], strides = [1, 1]} : vector<960x64xf32> to vector<64x64xf32>
    %cst_55 = arith.constant dense<0.000000e+00> : vector<64x64xf32>
    %123 = tpu.matmul %72, %122, %cst_55 {dimension_numbers = #tpu.dot_dimension_numbers<[1], [0], [0], [1], [0, 0, 1, 1], [], []>} : vector<64x64xf32>, vector<64x64xf32>, vector<64x64xf32> -> vector<64x64xf32>
    %124 = arith.mulf %115, %115 : vector<64x64xf32>
    %125 = arith.mulf %117, %117 : vector<64x64xf32>
    %126 = arith.mulf %115, %117 : vector<64x64xf32>
    %cst_56 = arith.constant 2.000000e+00 : f32
    %127 = vector.broadcast %cst_56 : f32 to vector<64x64xf32>
    %128 = arith.mulf %127, %126 : vector<64x64xf32>
    %cst_57 = arith.constant 9.99999974E-5 : f32
    %129 = vector.broadcast %cst_57 : f32 to vector<64x64xf32>
    %130 = arith.addf %128, %129 : vector<64x64xf32>
    %131 = arith.subf %123, %126 : vector<64x64xf32>
    %cst_58 = arith.constant 2.000000e+00 : f32
    %132 = vector.broadcast %cst_58 : f32 to vector<64x64xf32>
    %133 = arith.mulf %132, %131 : vector<64x64xf32>
    %cst_59 = arith.constant 8.99999984E-4 : f32
    %134 = vector.broadcast %cst_59 : f32 to vector<64x64xf32>
    %135 = arith.addf %133, %134 : vector<64x64xf32>
    %136 = arith.mulf %130, %135 : vector<64x64xf32>
    %137 = arith.addf %124, %125 : vector<64x64xf32>
    %cst_60 = arith.constant 9.99999974E-5 : f32
    %138 = vector.broadcast %cst_60 : f32 to vector<64x64xf32>
    %139 = arith.addf %137, %138 : vector<64x64xf32>
    %140 = arith.subf %119, %124 : vector<64x64xf32>
    %141 = arith.subf %121, %125 : vector<64x64xf32>
    %142 = arith.addf %140, %141 : vector<64x64xf32>
    %cst_61 = arith.constant 8.99999984E-4 : f32
    %143 = vector.broadcast %cst_61 : f32 to vector<64x64xf32>
    %144 = arith.addf %142, %143 : vector<64x64xf32>
    %145 = arith.mulf %139, %144 : vector<64x64xf32>
    %146 = arith.divf %136, %145 : vector<64x64xf32>
    %147 = vector.shape_cast %146 : vector<64x64xf32> to vector<1x64x64xf32>
    %cst_62 = arith.constant dense<0.000000e+00> : vector<1xf32>
    %148 = vector.multi_reduction <add>, %147, %cst_62 [1, 2] : vector<1x64x64xf32> to vector<1xf32>
    %149 = vector.shape_cast %148 : vector<1xf32> to vector<1x1x1xf32>
    %150 = vector.extract %149[0, 0, 0] : f32 from vector<1x1x1xf32>
    %151 = arith.addf %113, %150 : f32
    %152 = vector.extract_strided_slice %75 {offsets = [640, 0], sizes = [64, 64], strides = [1, 1]} : vector<960x64xf32> to vector<64x64xf32>
    %cst_63 = arith.constant dense<0.000000e+00> : vector<64x64xf32>
    %153 = tpu.matmul %72, %152, %cst_63 {dimension_numbers = #tpu.dot_dimension_numbers<[1], [0], [0], [1], [0, 0, 1, 1], [], []>} : vector<64x64xf32>, vector<64x64xf32>, vector<64x64xf32> -> vector<64x64xf32>
    %154 = vector.extract_strided_slice %75 {offsets = [704, 0], sizes = [64, 64], strides = [1, 1]} : vector<960x64xf32> to vector<64x64xf32>
    %cst_64 = arith.constant dense<0.000000e+00> : vector<64x64xf32>
    %155 = tpu.matmul %72, %154, %cst_64 {dimension_numbers = #tpu.dot_dimension_numbers<[1], [0], [0], [1], [0, 0, 1, 1], [], []>} : vector<64x64xf32>, vector<64x64xf32>, vector<64x64xf32> -> vector<64x64xf32>
    %156 = vector.extract_strided_slice %75 {offsets = [768, 0], sizes = [64, 64], strides = [1, 1]} : vector<960x64xf32> to vector<64x64xf32>
    %cst_65 = arith.constant dense<0.000000e+00> : vector<64x64xf32>
    %157 = tpu.matmul %72, %156, %cst_65 {dimension_numbers = #tpu.dot_dimension_numbers<[1], [0], [0], [1], [0, 0, 1, 1], [], []>} : vector<64x64xf32>, vector<64x64xf32>, vector<64x64xf32> -> vector<64x64xf32>
    %158 = vector.extract_strided_slice %75 {offsets = [832, 0], sizes = [64, 64], strides = [1, 1]} : vector<960x64xf32> to vector<64x64xf32>
    %cst_66 = arith.constant dense<0.000000e+00> : vector<64x64xf32>
    %159 = tpu.matmul %72, %158, %cst_66 {dimension_numbers = #tpu.dot_dimension_numbers<[1], [0], [0], [1], [0, 0, 1, 1], [], []>} : vector<64x64xf32>, vector<64x64xf32>, vector<64x64xf32> -> vector<64x64xf32>
    %160 = vector.extract_strided_slice %75 {offsets = [896, 0], sizes = [64, 64], strides = [1, 1]} : vector<960x64xf32> to vector<64x64xf32>
    %cst_67 = arith.constant dense<0.000000e+00> : vector<64x64xf32>
    %161 = tpu.matmul %72, %160, %cst_67 {dimension_numbers = #tpu.dot_dimension_numbers<[1], [0], [0], [1], [0, 0, 1, 1], [], []>} : vector<64x64xf32>, vector<64x64xf32>, vector<64x64xf32> -> vector<64x64xf32>
    %162 = arith.mulf %153, %153 : vector<64x64xf32>
    %163 = arith.mulf %155, %155 : vector<64x64xf32>
    %164 = arith.mulf %153, %155 : vector<64x64xf32>
    %cst_68 = arith.constant 2.000000e+00 : f32
    %165 = vector.broadcast %cst_68 : f32 to vector<64x64xf32>
    %166 = arith.mulf %165, %164 : vector<64x64xf32>
    %cst_69 = arith.constant 9.99999974E-5 : f32
    %167 = vector.broadcast %cst_69 : f32 to vector<64x64xf32>
    %168 = arith.addf %166, %167 : vector<64x64xf32>
    %169 = arith.subf %161, %164 : vector<64x64xf32>
    %cst_70 = arith.constant 2.000000e+00 : f32
    %170 = vector.broadcast %cst_70 : f32 to vector<64x64xf32>
    %171 = arith.mulf %170, %169 : vector<64x64xf32>
    %cst_71 = arith.constant 8.99999984E-4 : f32
    %172 = vector.broadcast %cst_71 : f32 to vector<64x64xf32>
    %173 = arith.addf %171, %172 : vector<64x64xf32>
    %174 = arith.mulf %168, %173 : vector<64x64xf32>
    %175 = arith.addf %162, %163 : vector<64x64xf32>
    %cst_72 = arith.constant 9.99999974E-5 : f32
    %176 = vector.broadcast %cst_72 : f32 to vector<64x64xf32>
    %177 = arith.addf %175, %176 : vector<64x64xf32>
    %178 = arith.subf %157, %162 : vector<64x64xf32>
    %179 = arith.subf %159, %163 : vector<64x64xf32>
    %180 = arith.addf %178, %179 : vector<64x64xf32>
    %cst_73 = arith.constant 8.99999984E-4 : f32
    %181 = vector.broadcast %cst_73 : f32 to vector<64x64xf32>
    %182 = arith.addf %180, %181 : vector<64x64xf32>
    %183 = arith.mulf %177, %182 : vector<64x64xf32>
    %184 = arith.divf %174, %183 : vector<64x64xf32>
    %185 = vector.shape_cast %184 : vector<64x64xf32> to vector<1x64x64xf32>
    %cst_74 = arith.constant dense<0.000000e+00> : vector<1xf32>
    %186 = vector.multi_reduction <add>, %185, %cst_74 [1, 2] : vector<1x64x64xf32> to vector<1xf32>
    %187 = vector.shape_cast %186 : vector<1xf32> to vector<1x1x1xf32>
    %188 = vector.extract %187[0, 0, 0] : f32 from vector<1x1x1xf32>
    %189 = arith.addf %151, %188 : f32
    %190 = vector.shape_cast %0 : vector<64x64xf32> to vector<1x64x64xf32>
    %cst_75 = arith.constant dense<0.000000e+00> : vector<1xf32>
    %191 = vector.multi_reduction <add>, %190, %cst_75 [1, 2] : vector<1x64x64xf32> to vector<1xf32>
    %192 = vector.shape_cast %191 : vector<1xf32> to vector<1x1x1xf32>
    %193 = vector.extract %192[0, 0, 0] : f32 from vector<1x1x1xf32>
    %194 = tpu.iota {dimensions = array<i32: 1>} : vector<8x128xi32>
    %c0_i32 = arith.constant 0 : i32
    %195 = vector.broadcast %c0_i32 : i32 to vector<8x128xi32>
    %196 = arith.cmpi eq, %194, %195 : vector<8x128xi32>
    %c1_i32 = arith.constant 1 : i32
    %197 = vector.broadcast %c1_i32 : i32 to vector<8x128xi32>
    %198 = arith.cmpi eq, %194, %197 : vector<8x128xi32>
    %c2_i32 = arith.constant 2 : i32
    %199 = vector.broadcast %c2_i32 : i32 to vector<8x128xi32>
    %200 = arith.cmpi eq, %194, %199 : vector<8x128xi32>
    %cst_76 = arith.constant 0.000000e+00 : f32
    %201 = vector.broadcast %193 : f32 to vector<8x128xf32>
    %202 = vector.broadcast %cst_76 : f32 to vector<8x128xf32>
    %203 = arith.select %200, %201, %202 : vector<8x128xi1>, vector<8x128xf32>
    %204 = vector.broadcast %189 : f32 to vector<8x128xf32>
    %205 = arith.select %198, %204, %203 : vector<8x128xi1>, vector<8x128xf32>
    %206 = vector.broadcast %68 : f32 to vector<8x128xf32>
    %207 = arith.select %196, %206, %205 : vector<8x128xi1>, vector<8x128xf32>
    %c0_77 = arith.constant 0 : index
    %c0_78 = arith.constant 0 : index
    %208 = vector.load %arg6[%c0_77, %c0_78] : memref<8x128xf32, #tpu.memory_space<vmem>>, vector<8x128xf32>
    tpu.vector_store %arg6[%c0_77, %c0_78], %207 {strides = array<i32>} : memref<8x128xf32, #tpu.memory_space<vmem>>, vector<8x128xf32>,
    return
  }
}

</mosaic_0001>

<bundles_post_ra>
// kernel: tpu_custom_call.1
= control target key start
LH: loop header
LB: loop body
LE: loop exit
PB: predicated region body
PF: predicated region fallthrough
CT: control target
= control target key end

     0   :  { %13 = vsyncpa [#allocation5], 0  ;;  %s6633_s0 = inlined_call_operand.hbm [shape: f32[3], index: 0, kind: input, shape index: {}]   ;;  %s6634_s1 = inlined_call_operand.hbm [shape: f32[64,64], index: 1, kind: input, shape index: {}]   ;;  %s6635_s2 = inlined_call_operand.hbm [shape: f32[3,64,64], index: 2, kind: input, shape index: {}]   ;;  %s6636_s3 = inlined_call_operand.hbm [shape: f32[3,64,64], index: 3, kind: input, shape index: {}]   ;;  %s6637_s4 = inlined_call_operand.hbm [shape: f32[64,64], index: 4, kind: input, shape index: {}]   ;;  %s6638_s5 = inlined_call_operand.hbm [shape: f32[64,64], index: 5, kind: input, shape index: {}]   ;;  %s6639_s6 = inlined_call_operand.hbm [shape: f32[8,128], index: 6, kind: output, shape index: {0}]   ;;  %s6640_s7 = inlined_call_operand.hbm [shape: f32[3,64,64], index: 7, kind: output, shape index: {1}]  }
   0x1   :  { %14 = vsyncpa [#allocation3], 0 }
   0x2   :  { %15 = vsyncpa [#allocation8], 0 }
   0x3   :  { %16 = vsyncpa [#allocation11], 0 }
   0x4   :  { %17 = vsyncpa [#allocation4], 0 }
   0x5   :  { %18 = vsyncpa [#allocation15], 0  ;;  %s5200_s24 = smov [#allocation7]   ;;  %s5201_s26 = smov [#allocation10]  }
   0x6   :  { %s44_s25 = sshll.u32 %s5200_s24, 4  ;;  %s68_s27 = sshll.u32 %s5201_s26, 4  ;;  %s45_s25 = int_to_ptr.vmem [resolvable:$true] %s44_s25  ;;  %s69_s27 = int_to_ptr.vmem [resolvable:$true] %s68_s27 }
   0x7   :  { %s5048_s28 = scalar_lea.vmem %s45_s25, 3072  ;;  %p5053_p1 = scmp.lt.s32.totalorder %s45_s25, %s45_s25 }
   0x8   :  { %p5049_p0 = scmp.ne.s32.totalorder %s45_s25, %s5048_s28  ;;  %p5054_p2 = scmp.lt.s32.totalorder %s5048_s28, %s5048_s28 }
   0xa   :  { %p5055_p3 = por %p5054_p2, %p5053_p1 }
   0xc   :  { %p5056_p4 = pnand %p5055_p3, %p5049_p0 }
   0xe   :  { %5059 = shalt.err (!%p5056_p4)
}
   0xf   :  { %s5202_s29 = smov 128   ;;  %s5203_s30 = smov 8  }
  0x10   :  { %50 = dma.hbm_to_vmem [thread:$0]  %s6635_s2, 3072, %s45_s25, [#allocation8], %s5202_s29, %s5202_s29, %s5203_s30  }
  0x11   :  { %s5068_s10 = scalar_lea.vmem %s69_s27, 1024  ;;  %p5073_p6 = scmp.lt.s32.totalorder %s69_s27, %s69_s27 }
  0x12   :  { %p5069_p5 = scmp.ne.s32.totalorder %s69_s27, %s5068_s10  ;;  %p5074_p7 = scmp.lt.s32.totalorder %s5068_s10, %s5068_s10 }
  0x14   :  { %p5075_p8 = por %p5074_p7, %p5073_p6 }
  0x16   :  { %p5076_p9 = pnand %p5075_p8, %p5069_p5 }
  0x18   :  { %5079 = shalt.err (!%p5076_p9)
}
  0x19   :  { %74 = dma.hbm_to_vmem [thread:$0]  %s6637_s4, 1024, %s69_s27, [#allocation11], %s5202_s29, %s5202_s29, %s5203_s30  }
  0x1a   :  { %s5204_s13 = smov [#allocation2]   ;;  %s5205_s2 = smov [#allocation6]  }
  0x1b   :  { %26 = dma.hbm_to_smem %s6633_s0, 16, %s5204_s13, [#allocation5]  }
  0x1c   :  { %s32_s16 = sshll.u32 %s5205_s2, 4  ;;  %s5206_s17 = smov [#allocation9]   ;;  %s33_s16 = int_to_ptr.vmem [resolvable:$true] %s32_s16 }
  0x1d   :  { %s56_s18 = sshll.u32 %s5206_s17, 4  ;;  %s5096_s19 = scalar_lea.vmem %s33_s16, 1024  ;;  %s57_s18 = int_to_ptr.vmem [resolvable:$true] %s56_s18 }
  0x1e   :  { %p5097_p10 = scmp.ne.s32.totalorder %s33_s16, %s5096_s19  ;;  %p5101_p11 = scmp.lt.s32.totalorder %s33_s16, %s33_s16 }
  0x1f   :  { %p5102_p12 = scmp.lt.s32.totalorder %s5096_s19, %s5096_s19 }
  0x21   :  { %p5103_p13 = por %p5102_p12, %p5101_p11 }
  0x23   :  { %p5104_p0 = pnand %p5103_p13, %p5097_p10 }
  0x25   :  { %5107 = shalt.err (!%p5104_p0)
}
  0x26   :  { %38 = dma.hbm_to_vmem [thread:$0]  %s6634_s1, 1024, %s33_s16, [#allocation3], %s5202_s29, %s5202_s29, %s5203_s30  }
  0x27   :  { %s5116_s0 = scalar_lea.vmem %s57_s18, 3072  ;;  %p5121_p2 = scmp.lt.s32.totalorder %s57_s18, %s57_s18 }
  0x28   :  { %p5117_p1 = scmp.ne.s32.totalorder %s57_s18, %s5116_s0  ;;  %p5122_p3 = scmp.lt.s32.totalorder %s5116_s0, %s5116_s0 }
  0x2a   :  { %p5123_p4 = por %p5122_p3, %p5121_p2 }
  0x2c   :  { %p5124_p5 = pnand %p5123_p4, %p5117_p1 }
  0x2e   :  { %5127 = shalt.err (!%p5124_p5)
}
  0x2f   :  { %62 = dma.hbm_to_vmem [thread:$0]  %s6636_s3, 3072, %s57_s18, [#allocation8], %s5202_s29, %s5202_s29, %s5203_s30  }
  0x30   :  { %s5207_s23 = smov [#allocation12]  }
  0x31   :  { %s80_s24 = sshll.u32 %s5207_s23, 4  ;;  %s81_s24 = int_to_ptr.vmem [resolvable:$true] %s80_s24 }
  0x32   :  { %s5136_s25 = scalar_lea.vmem %s81_s24, 1024  ;;  %p5141_p7 = scmp.lt.s32.totalorder %s81_s24, %s81_s24 }
  0x33   :  { %p5137_p6 = scmp.ne.s32.totalorder %s81_s24, %s5136_s25  ;;  %p5142_p8 = scmp.lt.s32.totalorder %s5136_s25, %s5136_s25 }
  0x35   :  { %p5143_p9 = por %p5142_p8, %p5141_p7 }
  0x37   :  { %p5144_p10 = pnand %p5143_p9, %p5137_p6 }
  0x39   :  { %5147 = shalt.err (!%p5144_p10)
}
  0x3a   :  { %86 = dma.hbm_to_vmem [thread:$0]  %s6638_s5, 1024, %s81_s24, [#allocation11], %s5202_s29, %s5202_s29, %s5203_s30  }
  0x3b   :  { %5188 = dma.done.wait [#allocation5], 16  }
  0x3c   :  { %5189 = vsyncadd [#allocation5], 4294967280 }
  0x3d   :  { %5190 = dma.done.wait [#allocation3], 1024  }
  0x3e   :  { %5191 = vsyncadd [#allocation3], 4294966272 }
  0x3f   :  { %5192 = dma.done.wait [#allocation8], 6144  }
  0x40   :  { %5193 = vsyncadd [#allocation8], 4294961152 }
  0x41   :  { %5194 = dma.done.wait [#allocation11], 2048  }
  0x42   :  { %5195 = vsyncadd [#allocation11], 4294965248 }
  0x43   :  { %105 = sfence }
  0x44   :  { %v513_v0 = vld [vmem:[#allocation12 + $0x38] sm:$0xff]  ;;  %v512_v1 = vld [vmem:[#allocation12 + $0x30] sm:$0xff]  ;;  %s146_s3 = sld [smem:[#allocation2]]  ;;  %vm164_vm0 = vcmask 523264   ;;  %v511_v2 = vld [vmem:[#allocation12 + $0x28] sm:$0xff]  ;;  %s5208_s28 = smov [#allocation14]  }
  0x45   :  { %4325 = vmatprep.subr.mxu0 %v513_v0  ;;  %v5283_v3 = vld [vmem:[#allocation6] sm:$0xff]  ;;  %v5290_v7 = vld [vmem:[#allocation6 + $0x8] sm:$0xff]  ;;  %v5297_v11 = vld [vmem:[#allocation6 + $0x10] sm:$0xff]  ;;  %s3715_s5 = sld [smem:[#allocation2 + $0x1]]  ;;  %s3696_s8 = sshll.u32 %s5208_s28, 4  ;;  %s3697_s8 = int_to_ptr.vmem [resolvable:$true] %s3696_s8 }
  0x46   :  { %4326 = vmatpush3.msra.mxu0 %v513_v0  ;;  %v5286_v4 = vsub.f32 1.0, %v5283_v3  ;;  %v5288_v5 = vld [vmem:[#allocation7] sm:$0xff]  ;;  %v5295_v9 = vsub.f32 1.0, %v5290_v7  ;;  %v131_v10 = vld [vmem:[#allocation9 + $0x8] sm:$0xff]  ;;  %v5302_v14 = vsub.f32 1.0, %v5297_v11  ;;  %v132_v15 = vld [vmem:[#allocation9 + $0x10] sm:$0xff]  ;;  %p5153_p12 = scmp.lt.s32.totalorder %s3697_s8, %s3697_s8 }
  0x47   :  { %4327 = vmatprep.subr.mxu0 %v512_v1  ;;  %v130_v6 = vld [vmem:[#allocation9] sm:$0xff]  ;;  %4341 = vmatprep.mubr.msk.f32.mxu0 %vm164_vm0, %v5288_v5  ;;  %v139_v13 = vmul.f32 %v131_v10, %v5290_v7  ;;  %v5304_v16 = vld [vmem:[#allocation6 + $0x18] sm:$0xff]  ;;  %v140_v19 = vmul.f32 %v132_v15, %v5297_v11  ;;  %v5321_v28 = vld [vmem:[#allocation6 + $0x28] sm:$0xff]  ;;  %s3716_s27 = sld [smem:[#allocation2 + $0x2]]  ;;  %s5148_s9 = scalar_lea.vmem %s3697_s8, 3072 }
  0x48   :  { %4328 = vmatpush3.msra.mxu0 %v512_v1  ;;  %v510_v8 = vld [vmem:[#allocation12 + $0x20] sm:$0xff]  ;;  %v138_v12 = vmul.f32 %v130_v6, %v5283_v3  ;;  %v509_v17 = vld [vmem:[#allocation12 + $0x18] sm:$0xff]  ;;  %v5310_v20 = vsub.f32 1.0, %v5304_v16  ;;  %v508_v29 = vld [vmem:[#allocation12 + $0x10] sm:$0xff]  ;;  %v5330_v33 = vsub.f32 1.0, %v5321_v28  ;;  %p5149_p11 = scmp.ne.s32.totalorder %s3697_s8, %s5148_s9  ;;  %p5154_p13 = scmp.lt.s32.totalorder %s5148_s9, %s5148_s9 }
  0x49   :  { %4329 = vmatprep.subr.mxu0 %v511_v2  ;;  %v133_v21 = vld [vmem:[#allocation9 + $0x18] sm:$0xff]  ;;  %v5312_v22 = vld [vmem:[#allocation6 + $0x20] sm:$0xff]  ;;  %v135_v34 = vld [vmem:[#allocation9 + $0x28] sm:$0xff] }
  0x4a   :  { %4330 = vmatpush3.msra.mxu0 %v511_v2  ;;  %v5306_v18 = vstv %s146_s3  ;;  %v141_v26 = vmul.f32 %v133_v21, %v5304_v16  ;;  %v134_v27 = vld [vmem:[#allocation9 + $0x20] sm:$0xff]  ;;  %v5326_v31 = vsub.f32 1.0, %v5312_v22  ;;  %v143_v38 = vmul.f32 %v135_v34, %v5321_v28  ;;  %v5339_v39 = vld [vmem:[#allocation6 + $0x30] sm:$0xff]  ;;  %v507_v41 = vld [vmem:[#allocation12 + $0x8] sm:$0xff]  ;;  %p5155_p0 = por %p5154_p13, %p5153_p12 }
  0x4b   :  { %4331 = vmatprep.subr.mxu0 %v510_v8  ;;  %v148_v23 = vmul.f32 %v5306_v18, %v5286_v4  ;;  %v149_v24 = vmul.f32 %v5306_v18, %v5295_v9  ;;  %v150_v25 = vmul.f32 %v5306_v18, %v5302_v14  ;;  %v151_v30 = vmul.f32 %v5306_v18, %v5310_v20  ;;  %v136_v40 = vld [vmem:[#allocation9 + $0x30] sm:$0xff]  ;;  %v5341_v42 = vld [vmem:[#allocation7 + $0x8] sm:$0xff]  ;;  %v5366_v51 = vld [vmem:[#allocation7 + $0x18] sm:$0xff] }
  0x4c   :  { %4332 = vmatpush3.msra.mxu0 %v510_v8  ;;  %v142_v32 = vmul.f32 %v134_v27, %v5312_v22  ;;  %v5343_v43 = vld [vmem:[#allocation7 + $0x10] sm:$0xff]  ;;  %v152_v45 = vmul.f32 %v5306_v18, %v5326_v31  ;;  %v153_v46 = vmul.f32 %v5306_v18, %v5330_v33  ;;  %v5352_v47 = vsub.f32 1.0, %v5339_v39  ;;  %v506_v53 = vld [vmem:[#allocation12] sm:$0xff]  ;;  %v5379_v58 = vld [vmem:[#allocation6 + $0x38] sm:$0xff]  ;;  %p5156_p1 = pnand %p5155_p0, %p5149_p11 }
  0x4d   :  { %4333 = vmatprep.subr.mxu0 %v509_v17  ;;  %v5332_v35 = vadd.f32 %v148_v23, %v138_v12  ;;  %v5334_v36 = vadd.f32 %v149_v24, %v139_v13  ;;  %v5336_v37 = vadd.f32 %v150_v25, %v140_v19  ;;  %v5345_v44 = vadd.f32 %v151_v30, %v141_v26  ;;  %v137_v59 = vld [vmem:[#allocation9 + $0x38] sm:$0xff]  ;;  %v5381_v60 = vld [vmem:[#allocation7 + $0x20] sm:$0xff]  ;;  %v5383_v61 = vld [vmem:[#allocation7 + $0x28] sm:$0xff] }
  0x4e   :  { %4334 = vmatpush3.msra.mxu0 %v509_v17  ;;  %v144_v52 = vmul.f32 %v136_v40, %v5339_v39  ;;  %v5373_v55 = vadd.f32 %v152_v45, %v142_v32  ;;  %v5375_v56 = vadd.f32 %v153_v46, %v143_v38  ;;  %v154_v57 = vmul.f32 %v5306_v18, %v5352_v47  ;;  %v256_v12 = vld [vmem:[#allocation9 + $0x40] sm:$0xff]  ;;  %v257_v13 = vld [vmem:[#allocation9 + $0x48] sm:$0xff]  ;;  %v258_v15 = vld [vmem:[#allocation9 + $0x50] sm:$0xff] }
  0x4f   :  { %4335 = vmatprep.subr.mxu0 %v508_v29  ;;  %165 = vst.msk [vmem:[#allocation14] sm:$0xff] %vm164_vm0, %v5332_v35  ;;  %166 = vst.msk [vmem:[#allocation14 + $0x8] sm:$0xff] %vm164_vm0, %v5334_v36  ;;  %v5396_v1 = vsub.f32 1.0, %v5379_v58  ;;  %v145_v2 = vmul.f32 %v137_v59, %v5379_v58  ;;  %v5411_v10 = vmul.f32 %v5332_v35, %v5288_v5  ;;  %v259_v17 = vld [vmem:[#allocation9 + $0x58] sm:$0xff]  ;;  %v261_v19 = vld [vmem:[#allocation9 + $0x68] sm:$0xff]  ;;  %v273_v24 = vstv %s3715_s5 }
  0x50   :  { %167 = vst.msk [vmem:[#allocation14 + $0x10] sm:$0xff] %vm164_vm0, %v5336_v37  ;;  %4336 = vmatpush3.msra.mxu0 %v508_v29  ;;  %168 = vst.msk [vmem:[#allocation14 + $0x18] sm:$0xff] %vm164_vm0, %v5345_v44  ;;  %v5393_v0 = vadd.f32 %v154_v57, %v144_v52  ;;  %v5419_v21 = vld [vmem:[#allocation7 + $0x30] sm:$0xff]  ;;  %v264_v23 = vmul.f32 %v256_v12, %v5283_v3  ;;  %v265_v25 = vmul.f32 %v257_v13, %v5290_v7  ;;  %v5436_v46 = vld [vmem:[#allocation7 + $0x38] sm:$0xff] }
  0x51   :  { %4337 = vmatprep.subr.mxu0 %v507_v41  ;;  %169 = vst.msk [vmem:[#allocation14 + $0x20] sm:$0xff] %vm164_vm0, %v5373_v55  ;;  %170 = vst.msk [vmem:[#allocation14 + $0x28] sm:$0xff] %vm164_vm0, %v5375_v56  ;;  %v155_v6 = vmul.f32 %v5306_v18, %v5396_v1  ;;  %v260_v18 = vld [vmem:[#allocation9 + $0x60] sm:$0xff]  ;;  %v266_v26 = vmul.f32 %v258_v15, %v5297_v11  ;;  %v274_v27 = vmul.f32 %v273_v24, %v5286_v4  ;;  %v262_v34 = vld [vmem:[#allocation9 + $0x70] sm:$0xff] }
  0x52   :  { %4338 = vmatpush3.msra.mxu0 %v507_v41  ;;  %171 = vst.msk [vmem:[#allocation14 + $0x30] sm:$0xff] %vm164_vm0, %v5393_v0  ;;  %v275_v29 = vmul.f32 %v273_v24, %v5295_v9  ;;  %v276_v30 = vmul.f32 %v273_v24, %v5302_v14  ;;  %v267_v32 = vmul.f32 %v259_v17, %v5304_v16  ;;  %v5859_v49 = vld [vmem:[#allocation10 + $0x28] sm:$0xff] }
  0x53   :  { %4339 = vmatprep.subr.mxu0 %v506_v53  ;;  %v5407_v8 = vadd.f32 %v155_v6, %v145_v2  ;;  %v277_v38 = vmul.f32 %v273_v24, %v5310_v20  ;;  %v268_v40 = vmul.f32 %v260_v18, %v5312_v22  ;;  %v278_v41 = vmul.f32 %v273_v24, %v5326_v31  ;;  %v263_v2 = vld [vmem:[#allocation9 + $0x78] sm:$0xff] }
  0x54   :  { %4340 = vmatpush3.msra.mxu0 %v506_v53  ;;  %v269_v45 = vmul.f32 %v261_v19, %v5321_v28  ;;  %v5438_v52 = vadd.f32 %v274_v27, %v264_v23  ;;  %v5440_v53 = vadd.f32 %v275_v29, %v265_v25  ;;  %v5442_v57 = vadd.f32 %v276_v30, %v266_v26  ;;  %v382_v29 = vld [vmem:[#allocation9 + $0x80] sm:$0xff]  ;;  %v383_v30 = vld [vmem:[#allocation9 + $0x88] sm:$0xff] }
  0x55   :  { %4342 = vmatmul.mubr.msk.f32.vlgmr.msra.gmra.mxu0 %vm164_vm0, %v5341_v42  ;;  %6644 = vst [vmem:[#allocation22_spill] sm:$0xff] %v5407_v8  ;;  %172 = vst.msk [vmem:[#allocation14 + $0x38] sm:$0xff] %vm164_vm0, %v5407_v8  ;;  %v279_v59 = vmul.f32 %v273_v24, %v5330_v33  ;;  %v5445_v6 = vadd.f32 %v277_v38, %v267_v32  ;;  %v5447_v12 = vadd.f32 %v278_v41, %v268_v40 }
  0x56   :  { %4344 = vmatprep.mubr.msk.f32.mxu0 %vm164_vm0, %v5343_v43  ;;  %v270_v13 = vmul.f32 %v262_v34, %v5339_v39  ;;  %v280_v15 = vmul.f32 %v273_v24, %v5352_v47  ;;  %291 = vst.msk [vmem:[#allocation14 + $0x40] sm:$0xff] %vm164_vm0, %v5438_v52  ;;  %292 = vst.msk [vmem:[#allocation14 + $0x48] sm:$0xff] %vm164_vm0, %v5440_v53  ;;  %v271_v19 = vmul.f32 %v263_v2, %v5379_v58  ;;  %v384_v34 = vld [vmem:[#allocation9 + $0x90] sm:$0xff] }
  0x57   :  { %293 = vst.msk [vmem:[#allocation14 + $0x50] sm:$0xff] %vm164_vm0, %v5442_v57  ;;  %v5457_v17 = vadd.f32 %v279_v59, %v269_v45  ;;  %294 = vst.msk [vmem:[#allocation14 + $0x58] sm:$0xff] %vm164_vm0, %v5445_v6  ;;  %v281_v23 = vmul.f32 %v273_v24, %v5396_v1  ;;  %v222_v24 = vmul.f32 %v5288_v5, %v5288_v5  ;;  %v385_v59 = vld [vmem:[#allocation9 + $0x98] sm:$0xff]  ;;  %v399_v2 = vstv %s3716_s27 }
  0x58   :  { %295 = vst.msk [vmem:[#allocation14 + $0x60] sm:$0xff] %vm164_vm0, %v5447_v12  ;;  %v5465_v18 = vadd.f32 %v280_v15, %v270_v13  ;;  %v223_v26 = vmul.f32 %v5341_v42, %v5341_v42  ;;  %v224_v27 = vmul.f32 %v5343_v43, %v5343_v43  ;;  %v225_v32 = vmul.f32 %v5366_v51, %v5366_v51 }
  0x59   :  { %4345 = vmatmul.mubr.msk.f32.gmra.mxu0 %vm164_vm0, %v5366_v51  ;;  %296 = vst.msk [vmem:[#allocation14 + $0x68] sm:$0xff] %vm164_vm0, %v5457_v17  ;;  %v5477_v25 = vadd.f32 %v281_v23, %v271_v19  ;;  %v226_v38 = vmul.f32 %v5381_v60, %v5381_v60  ;;  %v390_v40 = vmul.f32 %v382_v29, %v5283_v3 }
  0x5a   :  { %4347 = vmatprep.mubr.msk.f32.mxu0 %vm164_vm0, %v5381_v60  ;;  %297 = vst.msk [vmem:[#allocation14 + $0x70] sm:$0xff] %vm164_vm0, %v5465_v18  ;;  %v391_v41 = vmul.f32 %v383_v30, %v5290_v7  ;;  %v392_v45 = vmul.f32 %v384_v34, %v5297_v11  ;;  %v393_v13 = vmul.f32 %v385_v59, %v5304_v16  ;;  %v386_v11 = vld [vmem:[#allocation9 + $0xa0] sm:$0xff]  ;;  %v389_v34 = vld [vmem:[#allocation9 + $0xb8] sm:$0xff] }
  0x5b   :  { %6645 = vst [vmem:[#allocation23_spill] sm:$0xff] %v5477_v25  ;;  %298 = vst.msk [vmem:[#allocation14 + $0x78] sm:$0xff] %vm164_vm0, %v5477_v25  ;;  %v400_v15 = vmul.f32 %v399_v2, %v5286_v4  ;;  %v401_v19 = vmul.f32 %v399_v2, %v5295_v9  ;;  %v402_v23 = vmul.f32 %v399_v2, %v5302_v14 }
  0x5c   :  { %v227_v3 = vmul.f32 %v5383_v61, %v5383_v61  ;;  %v228_v7 = vmul.f32 %v5419_v21, %v5419_v21  ;;  %v405_v30 = vmul.f32 %v399_v2, %v5330_v33  ;;  %v230_v33 = vmul.f32 %v5332_v35, %v5332_v35 }
  0x5d   :  { %4348 = vmatmul.mubr.msk.f32.gmra.mxu0 %vm164_vm0, %v5383_v61  ;;  %v5521_v4 = vadd.f32 %v400_v15, %v390_v40  ;;  %v5523_v9 = vadd.f32 %v401_v19, %v391_v41  ;;  %v5525_v14 = vadd.f32 %v402_v23, %v392_v45  ;;  %v231_v40 = vmul.f32 %v5334_v36, %v5334_v36  ;;  %v388_v15 = vld [vmem:[#allocation9 + $0xb0] sm:$0xff] }
  0x5e   :  { %4350 = vmatprep.mubr.msk.f32.mxu0 %vm164_vm0, %v5419_v21  ;;  %v232_v41 = vmul.f32 %v5336_v37, %v5336_v37  ;;  %v234_v45 = vmul.f32 %v5373_v55, %v5373_v55  ;;  %v235_v59 = vmul.f32 %v5375_v56, %v5375_v56  ;;  %v396_v19 = vmul.f32 %v388_v15, %v5339_v39 }
  0x5f   :  { %417 = vst.msk [vmem:[#allocation14 + $0x80] sm:$0xff] %vm164_vm0, %v5521_v4  ;;  %418 = vst.msk [vmem:[#allocation14 + $0x88] sm:$0xff] %vm164_vm0, %v5523_v9  ;;  %v406_v23 = vmul.f32 %v399_v2, %v5352_v47  ;;  %v240_v39 = vmul.f32 %v5336_v37, %v5343_v43  ;;  %v241_v47 = vmul.f32 %v5345_v44, %v5366_v51 }
  0x60   :  { %419 = vst.msk [vmem:[#allocation14 + $0x90] sm:$0xff] %vm164_vm0, %v5525_v14  ;;  %v356_v15 = vmul.f32 %v5438_v52, %v5438_v52 }
  0x61   :  { %4351 = vmatmul.mubr.msk.f32.gmra.mxu0 %vm164_vm0, %v5436_v46 }
  0x62   :  { %4353 = vmatprep.mubr.msk.f32.mxu0 %vm164_vm0, %v5332_v35 }
  0x65   :  { %4354 = vmatmul.mubr.msk.f32.gmra.mxu0 %vm164_vm0, %v5334_v36 }
  0x66   :  { %4356 = vmatprep.mubr.msk.f32.mxu0 %vm164_vm0, %v5336_v37 }
  0x69   :  { %4357 = vmatmul.mubr.msk.f32.gmra.mxu0 %vm164_vm0, %v5345_v44 }
  0x6a   :  { %4359 = vmatprep.mubr.msk.f32.mxu0 %vm164_vm0, %v5373_v55 }
  0x6d   :  { %4360 = vmatmul.mubr.msk.f32.gmra.mxu0 %vm164_vm0, %v5375_v56 }
  0x6e   :  { %4362 = vmatprep.mubr.msk.f32.mxu0 %vm164_vm0, %v5393_v0 }
  0x71   :  { %4363 = vmatmul.mubr.msk.f32.gmra.mxu0 %vm164_vm0, %v5407_v8 }
  0x72   :  { %4365 = vmatprep.mubr.msk.f32.mxu0 %vm164_vm0, %v222_v24  ;;  %v403_v24 = vmul.f32 %v399_v2, %v5310_v20  ;;  %v387_v20 = vld [vmem:[#allocation9 + $0xa8] sm:$0xff] }
  0x73   :  { %v395_v29 = vmul.f32 %v387_v20, %v5321_v28  ;;  %v5611_v20 = vld [vmem:[#allocation7 + $0x40] sm:$0xff] }
  0x74   :  { %v5527_v16 = vadd.f32 %v403_v24, %v393_v13  ;;  %v236_v13 = vmul.f32 %v5393_v0, %v5393_v0  ;;  %v237_v24 = vmul.f32 %v5407_v8, %v5407_v8 }
  0x75   :  { %4366 = vmatmul.mubr.msk.f32.gmra.mxu0 %vm164_vm0, %v223_v26  ;;  %v404_v26 = vmul.f32 %v399_v2, %v5326_v31  ;;  %v5545_v31 = vadd.f32 %v405_v30, %v395_v29  ;;  %v5618_v29 = vld [vmem:[#allocation7 + $0x50] sm:$0xff]  ;;  %v5632_v30 = vld [vmem:[#allocation7 + $0x68] sm:$0xff] }
  0x76   :  { %4368 = vmatprep.mubr.msk.f32.mxu0 %vm164_vm0, %v224_v27  ;;  %v394_v27 = vmul.f32 %v386_v11, %v5312_v22  ;;  %420 = vst.msk [vmem:[#allocation14 + $0x98] sm:$0xff] %vm164_vm0, %v5527_v16  ;;  %v229_v22 = vmul.f32 %v5436_v46, %v5436_v46  ;;  %v243_v11 = vmul.f32 %v5375_v56, %v5383_v61 }
  0x77   :  { %422 = vst.msk [vmem:[#allocation14 + $0xa8] sm:$0xff] %vm164_vm0, %v5545_v31 }
  0x78   :  { %v5543_v28 = vadd.f32 %v404_v26, %v394_v27  ;;  %v245_v26 = vmul.f32 %v5407_v8, %v5436_v46  ;;  %v5616_v27 = vld [vmem:[#allocation7 + $0x48] sm:$0xff]  ;;  %v5626_v46 = vld [vmem:[#allocation7 + $0x60] sm:$0xff] }
  0x79   :  { %4369 = vmatmul.mubr.msk.f32.gmra.mxu0 %vm164_vm0, %v225_v32  ;;  %v407_v32 = vmul.f32 %v399_v2, %v5396_v1  ;;  %v242_v2 = vmul.f32 %v5373_v55, %v5381_v60 }
  0x7a   :  { %4371 = vmatprep.mubr.msk.f32.mxu0 %vm164_vm0, %v226_v38  ;;  %421 = vst.msk [vmem:[#allocation14 + $0xa0] sm:$0xff] %vm164_vm0, %v5543_v28  ;;  %v397_v38 = vmul.f32 %v389_v34, %v5379_v58  ;;  %v233_v58 = vmul.f32 %v5345_v44, %v5345_v44  ;;  %v348_v34 = vmul.f32 %v5611_v20, %v5611_v20 }
  0x7c   :  { %v5562_v1 = vadd.f32 %v407_v32, %v397_v38  ;;  %v5640_v32 = vld [vmem:[#allocation10] sm:$0xff]  ;;  %v349_v38 = vmul.f32 %v5616_v27, %v5616_v27 }
  0x7d   :  { %4372 = vmatmul.mubr.msk.f32.gmra.mxu0 %vm164_vm0, %v227_v3  ;;  %v5584_v3 = vadd.f32 %v406_v23, %v396_v19  ;;  %4537 = vmatprep.mubr.msk.f32.mxu1 %vm164_vm0, %v5640_v32  ;;  %v357_v19 = vmul.f32 %v5440_v53, %v5440_v53  ;;  %v358_v23 = vmul.f32 %v5442_v57, %v5442_v57 }
  0x7e   :  { %4374 = vmatprep.mubr.msk.f32.mxu0 %vm164_vm0, %v228_v7  ;;  %424 = vst.msk [vmem:[#allocation14 + $0xb8] sm:$0xff] %vm164_vm0, %v5562_v1  ;;  %v239_v7 = vmul.f32 %v5334_v36, %v5341_v42 }
  0x7f   :  { %423 = vst.msk [vmem:[#allocation14 + $0xb0] sm:$0xff] %vm164_vm0, %v5584_v3 }
  0x81   :  { %4375 = vmatmul.mubr.msk.f32.gmra.mxu0 %vm164_vm0, %v229_v22  ;;  %v5634_v22 = vld [vmem:[#allocation7 + $0x70] sm:$0xff] }
  0x82   :  { %4377 = vmatprep.mubr.msk.f32.mxu0 %vm164_vm0, %v230_v33  ;;  %v254_v33 = vld [vmem:[#allocation7 + $0x78] sm:$0xff] }
  0x85   :  { %4378 = vmatmul.mubr.msk.f32.gmra.mxu0 %vm164_vm0, %v231_v40  ;;  %v350_v40 = vmul.f32 %v5618_v29, %v5618_v29 }
  0x86   :  { %4380 = vmatprep.mubr.msk.f32.mxu0 %vm164_vm0, %v232_v41 }
  0x89   :  { %4381 = vmatmul.mubr.msk.f32.gmra.mxu0 %vm164_vm0, %v233_v58  ;;  %v352_v58 = vmul.f32 %v5626_v46, %v5626_v46 }
  0x8a   :  { %4383 = vmatprep.mubr.msk.f32.mxu0 %vm164_vm0, %v234_v45  ;;  %v353_v45 = vmul.f32 %v5632_v30, %v5632_v30 }
  0x8d   :  { %4384 = vmatmul.mubr.msk.f32.gmra.mxu0 %vm164_vm0, %v235_v59  ;;  %v354_v59 = vmul.f32 %v5634_v22, %v5634_v22 }
  0x8e   :  { %4386 = vmatprep.mubr.msk.f32.mxu0 %vm164_vm0, %v236_v13  ;;  %v355_v13 = vmul.f32 %v254_v33, %v254_v33 }
  0x91   :  { %4387 = vmatmul.mubr.msk.f32.gmra.mxu0 %vm164_vm0, %v237_v24  ;;  %v359_v24 = vmul.f32 %v5445_v6, %v5445_v6 }
  0x92   :  { %4389 = vmatprep.mubr.msk.f32.mxu0 %vm164_vm0, %v5411_v10  ;;  %v244_v10 = vmul.f32 %v5393_v0, %v5419_v21  ;;  %v5624_v21 = vld [vmem:[#allocation7 + $0x58] sm:$0xff] }
  0x93   :  { %v351_v41 = vmul.f32 %v5624_v21, %v5624_v21 }
  0x95   :  { %4390 = vmatmul.mubr.msk.f32.gmra.mxu0 %vm164_vm0, %v239_v7  ;;  %v360_v7 = vmul.f32 %v5447_v12, %v5447_v12 }
  0x96   :  { %4392 = vmatprep.mubr.msk.f32.mxu0 %vm164_vm0, %v240_v39  ;;  %v361_v39 = vmul.f32 %v5457_v17, %v5457_v17 }
  0x99   :  { %4393 = vmatmul.mubr.msk.f32.gmra.mxu0 %vm164_vm0, %v241_v47  ;;  %v362_v47 = vmul.f32 %v5465_v18, %v5465_v18 }
  0x9a   :  { %4395 = vmatprep.mubr.msk.f32.mxu0 %vm164_vm0, %v242_v2  ;;  %v363_v2 = vmul.f32 %v5477_v25, %v5477_v25 }
  0x9d   :  { %4396 = vmatmul.mubr.msk.f32.gmra.mxu0 %vm164_vm0, %v243_v11  ;;  %v364_v11 = vmul.f32 %v5438_v52, %v5611_v20 }
  0x9e   :  { %4398 = vmatprep.mubr.msk.f32.mxu0 %vm164_vm0, %v244_v10  ;;  %v365_v10 = vmul.f32 %v5440_v53, %v5616_v27 }
  0xa1   :  { %4399 = vmatmul.mubr.msk.f32.gmra.mxu0 %vm164_vm0, %v245_v26  ;;  %v366_v26 = vmul.f32 %v5442_v57, %v5618_v29 }
  0xa2   :  { %4401 = vmatprep.mubr.msk.f32.mxu0 %vm164_vm0, %v5611_v20 }
  0xa5   :  { %4402 = vmatmul.mubr.msk.f32.gmra.mxu0 %vm164_vm0, %v5616_v27 }
  0xa6   :  { %4404 = vmatprep.mubr.msk.f32.mxu0 %vm164_vm0, %v5618_v29 }
  0xa9   :  { %4405 = vmatmul.mubr.msk.f32.gmra.mxu0 %vm164_vm0, %v5624_v21 }
  0xaa   :  { %4407 = vmatprep.mubr.msk.f32.mxu0 %vm164_vm0, %v5626_v46 }
  0xad   :  { %4408 = vmatmul.mubr.msk.f32.gmra.mxu0 %vm164_vm0, %v5632_v30 }
  0xae   :  { %4410 = vmatprep.mubr.msk.f32.mxu0 %vm164_vm0, %v5634_v22 }
  0xb1   :  { %4411 = vmatmul.mubr.msk.f32.gmra.mxu0 %vm164_vm0, %v254_v33 }
  0xb2   :  { %4413 = vmatprep.mubr.msk.f32.mxu0 %vm164_vm0, %v5438_v52 }
  0xb5   :  { %4414 = vmatmul.mubr.msk.f32.gmra.mxu0 %vm164_vm0, %v5440_v53 }
  0xb6   :  { %4416 = vmatprep.mubr.msk.f32.mxu0 %vm164_vm0, %v5442_v57 }
  0xb9   :  { %4417 = vmatmul.mubr.msk.f32.gmra.mxu0 %vm164_vm0, %v5445_v6 }
  0xba   :  { %4419 = vmatprep.mubr.msk.f32.mxu0 %vm164_vm0, %v5447_v12 }
  0xbd   :  { %4420 = vmatmul.mubr.msk.f32.gmra.mxu0 %vm164_vm0, %v5457_v17 }
  0xbe   :  { %4422 = vmatprep.mubr.msk.f32.mxu0 %vm164_vm0, %v5465_v18 }
  0xc1   :  { %4423 = vmatmul.mubr.msk.f32.gmra.mxu0 %vm164_vm0, %v5477_v25 }
  0xc2   :  { %4425 = vmatprep.mubr.msk.f32.mxu0 %vm164_vm0, %v348_v34  ;;  %v367_v34 = vmul.f32 %v5445_v6, %v5624_v21 }
  0xc5   :  { %4426 = vmatmul.mubr.msk.f32.gmra.mxu0 %vm164_vm0, %v349_v38  ;;  %v368_v38 = vmul.f32 %v5447_v12, %v5626_v46 }
  0xc6   :  { %4428 = vmatprep.mubr.msk.f32.mxu0 %vm164_vm0, %v350_v40  ;;  %v369_v40 = vmul.f32 %v5457_v17, %v5632_v30 }
  0xc9   :  { %4429 = vmatmul.mubr.msk.f32.gmra.mxu0 %vm164_vm0, %v351_v41  ;;  %v370_v41 = vmul.f32 %v5465_v18, %v5634_v22 }
  0xca   :  { %4431 = vmatprep.mubr.msk.f32.mxu0 %vm164_vm0, %v352_v58  ;;  %v371_v58 = vmul.f32 %v5477_v25, %v254_v33  ;;  %v5742_v33 = vld [vmem:[#allocation7 + $0x98] sm:$0xff]  ;;  %v5868_v25 = vld [vmem:[#allocation10 + $0x30] sm:$0xff] }
  0xcd   :  { %4432 = vmatmul.mubr.msk.f32.gmra.mxu0 %vm164_vm0, %v353_v45  ;;  %v5729_v45 = vld [vmem:[#allocation7 + $0x80] sm:$0xff] }
  0xce   :  { %4434 = vmatprep.mubr.msk.f32.mxu0 %vm164_vm0, %v354_v59  ;;  %v5734_v59 = vld [vmem:[#allocation7 + $0x88] sm:$0xff] }
  0xd1   :  { %4435 = vmatmul.mubr.msk.f32.gmra.mxu0 %vm164_vm0, %v355_v13  ;;  %v5736_v13 = vld [vmem:[#allocation7 + $0x90] sm:$0xff] }
  0xd2   :  { %4437 = vmatprep.mubr.msk.f32.mxu0 %vm164_vm0, %v356_v15  ;;  %v5744_v15 = vld [vmem:[#allocation7 + $0xa0] sm:$0xff] }
  0xd3   :  { %v494_v48 = vmul.f32 %v5543_v28, %v5744_v15 }
  0xd5   :  { %4438 = vmatmul.mubr.msk.f32.gmra.mxu0 %vm164_vm0, %v357_v19  ;;  %v5750_v19 = vld [vmem:[#allocation7 + $0xa8] sm:$0xff] }
  0xd6   :  { %4440 = vmatprep.mubr.msk.f32.mxu0 %vm164_vm0, %v358_v23  ;;  %v5752_v23 = vld [vmem:[#allocation7 + $0xb0] sm:$0xff] }
  0xd7   :  { %v496_v8 = vmul.f32 %v5584_v3, %v5752_v23 }
  0xd9   :  { %4441 = vmatmul.mubr.msk.f32.gmra.mxu0 %vm164_vm0, %v359_v24  ;;  %v5758_v24 = vld [vmem:[#allocation7 + $0xb8] sm:$0xff] }
  0xda   :  { %4443 = vmatprep.mubr.msk.f32.mxu0 %vm164_vm0, %v360_v7  ;;  %6646 = vst [vmem:[#allocation24_spill] sm:$0xff] %v5758_v24  ;;  %v474_v7 = vmul.f32 %v5729_v45, %v5729_v45 }
  0xdd   :  { %4444 = vmatmul.mubr.msk.f32.gmra.mxu0 %vm164_vm0, %v361_v39  ;;  %v475_v39 = vmul.f32 %v5734_v59, %v5734_v59 }
  0xde   :  { %4446 = vmatprep.mubr.msk.f32.mxu0 %vm164_vm0, %v362_v47  ;;  %v476_v47 = vmul.f32 %v5736_v13, %v5736_v13 }
  0xe1   :  { %4447 = vmatmul.mubr.msk.f32.gmra.mxu0 %vm164_vm0, %v363_v2 }
  0xe2   :  { %4449 = vmatprep.mubr.msk.f32.mxu0 %vm164_vm0, %v364_v11  ;;  %v477_v11 = vmul.f32 %v5742_v33, %v5742_v33 }
  0xe5   :  { %4450 = vmatmul.mubr.msk.f32.gmra.mxu0 %vm164_vm0, %v365_v10  ;;  %v478_v10 = vmul.f32 %v5744_v15, %v5744_v15 }
  0xe6   :  { %4452 = vmatprep.mubr.msk.f32.mxu0 %vm164_vm0, %v366_v26 }
  0xe9   :  { %4453 = vmatmul.mubr.msk.f32.gmra.mxu0 %vm164_vm0, %v367_v34 }
  0xea   :  { %4455 = vmatprep.mubr.msk.f32.mxu0 %vm164_vm0, %v368_v38  ;;  %v479_v38 = vmul.f32 %v5750_v19, %v5750_v19 }
  0xed   :  { %4456 = vmatmul.mubr.msk.f32.gmra.mxu0 %vm164_vm0, %v369_v40  ;;  %v480_v40 = vmul.f32 %v5752_v23, %v5752_v23 }
  0xee   :  { %4458 = vmatprep.mubr.msk.f32.mxu0 %vm164_vm0, %v370_v41 }
  0xf1   :  { %4459 = vmatmul.mubr.msk.f32.gmra.mxu0 %vm164_vm0, %v371_v58 }
  0xf2   :  { %4461 = vmatprep.mubr.msk.f32.mxu0 %vm164_vm0, %v5729_v45 }
  0xf5   :  { %4462 = vmatmul.mubr.msk.f32.gmra.mxu0 %vm164_vm0, %v5734_v59 }
  0xf6   :  { %4464 = vmatprep.mubr.msk.f32.mxu0 %vm164_vm0, %v5736_v13 }
  0xf9   :  { %4465 = vmatmul.mubr.msk.f32.gmra.mxu0 %vm164_vm0, %v5742_v33 }
  0xfa   :  { %4467 = vmatprep.mubr.msk.f32.mxu0 %vm164_vm0, %v5744_v15 }
  0xfd   :  { %4468 = vmatmul.mubr.msk.f32.gmra.mxu0 %vm164_vm0, %v5750_v19 }
  0xfe   :  { %4470 = vmatprep.mubr.msk.f32.mxu0 %vm164_vm0, %v5752_v23 }
 0x101   :  { %4471 = vmatmul.mubr.msk.f32.gmra.mxu0 %vm164_vm0, %v5758_v24 }
 0x102   :  { %4473 = vmatprep.mubr.msk.f32.mxu0 %vm164_vm0, %v5521_v4 }
 0x105   :  { %4474 = vmatmul.mubr.msk.f32.gmra.mxu0 %vm164_vm0, %v5523_v9 }
 0x106   :  { %4476 = vmatprep.mubr.msk.f32.mxu0 %vm164_vm0, %v5525_v14 }
 0x109   :  { %4477 = vmatmul.mubr.msk.f32.gmra.mxu0 %vm164_vm0, %v5527_v16 }
 0x10a   :  { %4479 = vmatprep.mubr.msk.f32.mxu0 %vm164_vm0, %v5543_v28 }
 0x10d   :  { %4480 = vmatmul.mubr.msk.f32.gmra.mxu0 %vm164_vm0, %v5545_v31 }
 0x10e   :  { %4482 = vmatprep.mubr.msk.f32.mxu0 %vm164_vm0, %v5584_v3 }
 0x111   :  { %4483 = vmatmul.mubr.msk.f32.gmra.mxu0 %vm164_vm0, %v5562_v1 }
 0x112   :  { %4485 = vmatprep.mubr.msk.f32.mxu0 %vm164_vm0, %v474_v7  ;;  %v481_v7 = vmul.f32 %v5758_v24, %v5758_v24 }
 0x115   :  { %v4343_v2 = vpop.f32.mrf.mxu0  ;;  %4486 = vmatmul.mubr.msk.f32.gmra.mxu0 %vm164_vm0, %v475_v39  ;;  %v482_v39 = vmul.f32 %v5521_v4, %v5521_v4 }
 0x116   :  { %4488 = vmatprep.mubr.msk.f32.mxu0 %vm164_vm0, %v476_v47 }
 0x117   :  { %v940_v26 = vpop.f32.mrf.mxu0 }
 0x119   :  { %v4346_v34 = vpop.f32.mrf.mxu0  ;;  %4489 = vmatmul.mubr.msk.f32.gmra.mxu0 %vm164_vm0, %v477_v11 }
 0x11a   :  { %4491 = vmatprep.mubr.msk.f32.mxu0 %vm164_vm0, %v478_v10  ;;  %v483_v10 = vmul.f32 %v5523_v9, %v5523_v9 }
 0x11b   :  { %v950_v41 = vpop.f32.mrf.mxu0 }
 0x11d   :  { %v4349_v58 = vpop.f32.mrf.mxu0  ;;  %4492 = vmatmul.mubr.msk.f32.gmra.mxu0 %vm164_vm0, %v479_v38  ;;  %v484_v38 = vmul.f32 %v5525_v14, %v5525_v14 }
 0x11e   :  { %4494 = vmatprep.mubr.msk.f32.mxu0 %vm164_vm0, %v480_v40 }
 0x11f   :  { %v960_v47 = vpop.f32.mrf.mxu0 }
 0x121   :  { %v4352_v11 = vpop.f32.mrf.mxu0  ;;  %4495 = vmatmul.mubr.msk.f32.gmra.mxu0 %vm164_vm0, %v481_v7  ;;  %v485_v7 = vmul.f32 %v5527_v16, %v5527_v16 }
 0x122   :  { %4521 = vmatprep.subr.mxu1 %v4352_v11  ;;  %4497 = vmatprep.mubr.msk.f32.mxu0 %vm164_vm0, %v482_v39  ;;  %v486_v39 = vmul.f32 %v5543_v28, %v5543_v28 }
 0x123   :  { %v970_v63 = vpop.f32.mrf.mxu0  ;;  %4522 = vmatpush3.msra.mxu1 %v4352_v11 }
 0x124   :  { %4523 = vmatprep.subr.mxu1 %v970_v63 }
 0x125   :  { %v5809_v40 = vpop.f32.mrf.mxu0  ;;  %4498 = vmatmul.mubr.msk.f32.gmra.mxu0 %vm164_vm0, %v483_v10  ;;  %4524 = vmatpush3.msra.mxu1 %v970_v63  ;;  %v487_v63 = vmul.f32 %v5545_v31, %v5545_v31  ;;  %v488_v10 = vmul.f32 %v5584_v3, %v5584_v3 }
 0x126   :  { %4525 = vmatprep.subr.mxu1 %v4349_v58  ;;  %4500 = vmatprep.mubr.msk.f32.mxu0 %vm164_vm0, %v484_v38 }
 0x127   :  { %v5817_v62 = vpop.f32.mrf.mxu0  ;;  %4526 = vmatpush3.msra.mxu1 %v4349_v58  ;;  %v489_v58 = vmul.f32 %v5562_v1, %v5562_v1 }
 0x128   :  { %4527 = vmatprep.subr.mxu1 %v960_v47 }
 0x129   :  { %v4358_v11 = vpop.f32.mrf.mxu0  ;;  %4501 = vmatmul.mubr.msk.f32.gmra.mxu0 %vm164_vm0, %v485_v7  ;;  %4528 = vmatpush3.msra.mxu1 %v960_v47  ;;  %v5829_v7 = vld [vmem:[#allocation10 + $0x8] sm:$0xff] }
 0x12a   :  { %4529 = vmatprep.subr.mxu1 %v4346_v34  ;;  %4503 = vmatprep.mubr.msk.f32.mxu0 %vm164_vm0, %v486_v39  ;;  %v490_v39 = vmul.f32 %v5521_v4, %v5729_v45 }
 0x12b   :  { %v990_v38 = vpop.f32.mrf.mxu0  ;;  %4530 = vmatpush3.msra.mxu1 %v4346_v34  ;;  %v491_v34 = vmul.f32 %v5523_v9, %v5734_v59 }
 0x12c   :  { %4531 = vmatprep.subr.mxu1 %v950_v41 }
 0x12d   :  { %v4361_v54 = vpop.f32.mrf.mxu0  ;;  %4504 = vmatmul.mubr.msk.f32.gmra.mxu0 %vm164_vm0, %v487_v63  ;;  %4532 = vmatpush3.msra.mxu1 %v950_v41  ;;  %v5836_v41 = vld [vmem:[#allocation10 + $0x10] sm:$0xff]  ;;  %v5841_v63 = vld [vmem:[#allocation10 + $0x18] sm:$0xff] }
 0x12e   :  { %4533 = vmatprep.subr.mxu1 %v4343_v2  ;;  %4506 = vmatprep.mubr.msk.f32.mxu0 %vm164_vm0, %v488_v10  ;;  %v492_v10 = vmul.f32 %v5525_v14, %v5736_v13 }
 0x12f   :  { %v1000_v47 = vpop.f32.mrf.mxu0  ;;  %4534 = vmatpush3.msra.mxu1 %v4343_v2 }
 0x130   :  { %4535 = vmatprep.subr.mxu1 %v940_v26 }
 0x131   :  { %v4364_v50 = vpop.f32.mrf.mxu0  ;;  %4507 = vmatmul.mubr.msk.f32.gmra.mxu0 %vm164_vm0, %v489_v58  ;;  %4536 = vmatpush3.msra.mxu1 %v940_v26  ;;  %v493_v26 = vmul.f32 %v5527_v16, %v5742_v33 }
 0x132   :  { %4538 = vmatmul.mubr.msk.f32.vlgmr.msra.gmra.mxu1 %vm164_vm0, %v5829_v7  ;;  %4549 = vmatprep.subr.mxu1 %v4364_v50 }
 0x133   :  { %v1010_v2 = vpop.f32.mrf.mxu0  ;;  %4550 = vmatpush3.msra.mxu1 %v4364_v50  ;;  %4509 = vmatprep.mubr.msk.f32.mxu0 %vm164_vm0, %v490_v39  ;;  %v5852_v50 = vld [vmem:[#allocation10 + $0x20] sm:$0xff] }
 0x134   :  { %4551 = vmatprep.subr.mxu1 %v1010_v2  ;;  %4540 = vmatprep.mubr.msk.f32.mxu1 %vm164_vm0, %v5836_v41 }
 0x135   :  { %v5849_v58 = vpop.f32.mrf.mxu0  ;;  %4510 = vmatmul.mubr.msk.f32.gmra.mxu0 %vm164_vm0, %v491_v34  ;;  %4552 = vmatpush3.msra.mxu1 %v1010_v2  ;;  %v495_v34 = vmul.f32 %v5545_v31, %v5750_v19 }
 0x136   :  { %4541 = vmatmul.mubr.msk.f32.gmra.mxu1 %vm164_vm0, %v5841_v63  ;;  %4553 = vmatprep.subr.mxu1 %v4361_v54 }
 0x137   :  { %v5856_v39 = vpop.f32.mrf.mxu0  ;;  %4554 = vmatpush3.msra.mxu1 %v4361_v54  ;;  %4512 = vmatprep.mubr.msk.f32.mxu0 %vm164_vm0, %v492_v10  ;;  %v5873_v10 = vld [vmem:[#allocation10 + $0x38] sm:$0xff] }
 0x138   :  { %4555 = vmatprep.subr.mxu1 %v1000_v47  ;;  %4543 = vmatprep.mubr.msk.f32.mxu1 %vm164_vm0, %v5852_v50 }
 0x139   :  { %v4370_v2 = vpop.f32.mrf.mxu0  ;;  %4513 = vmatmul.mubr.msk.f32.gmra.mxu0 %vm164_vm0, %v493_v26  ;;  %4556 = vmatpush3.msra.mxu1 %v1000_v47  ;;  %v497_v47 = vmul.f32 %v5562_v1, %v5758_v24 }
 0x13a   :  { %4544 = vmatmul.mubr.msk.f32.gmra.mxu1 %vm164_vm0, %v5859_v49  ;;  %4557 = vmatprep.subr.mxu1 %v4358_v11 }
 0x13b   :  { %v1030_v54 = vpop.f32.mrf.mxu0  ;;  %4558 = vmatpush3.msra.mxu1 %v4358_v11  ;;  %4515 = vmatprep.mubr.msk.f32.mxu0 %vm164_vm0, %v494_v48 }
 0x13c   :  { %4559 = vmatprep.subr.mxu1 %v990_v38  ;;  %4546 = vmatprep.mubr.msk.f32.mxu1 %vm164_vm0, %v5868_v25 }
 0x13d   :  { %v4373_v26 = vpop.f32.mrf.mxu0  ;;  %4516 = vmatmul.mubr.msk.f32.gmra.mxu0 %vm164_vm0, %v495_v34  ;;  %4560 = vmatpush3.msra.mxu1 %v990_v38 }
 0x13e   :  { %4547 = vmatmul.mubr.msk.f32.gmra.mxu1 %vm164_vm0, %v5873_v10  ;;  %4561 = vmatprep.subr.mxu1 %v5809_v40 }
 0x13f   :  { %v1040_v48 = vpop.f32.mrf.mxu0  ;;  %4562 = vmatpush3.msra.mxu1 %v5809_v40  ;;  %4518 = vmatprep.mubr.msk.f32.mxu0 %vm164_vm0, %v496_v8 }
 0x140   :  { %4563 = vmatprep.subr.mxu1 %v5817_v62  ;;  %4565 = vmatprep.mubr.msk.f32.mxu1 %vm164_vm0, %v5640_v32 }
 0x141   :  { %v4376_v11 = vpop.f32.mrf.mxu0  ;;  %4519 = vmatmul.mubr.msk.f32.gmra.mxu0 %vm164_vm0, %v497_v47  ;;  %4564 = vmatpush3.msra.mxu1 %v5817_v62 }
 0x142   :  { %4566 = vmatmul.mubr.msk.f32.vlgmr.msra.gmra.mxu1 %vm164_vm0, %v5829_v7  ;;  %4577 = vmatprep.subr.mxu1 %v4376_v11 }
 0x143   :  { %v1050_v38 = vpop.f32.mrf.mxu0  ;;  %4578 = vmatpush3.msra.mxu1 %v4376_v11  ;;  %4568 = vmatprep.mubr.msk.f32.mxu1 %vm164_vm0, %v5836_v41 }
 0x144   :  { %4579 = vmatprep.subr.mxu1 %v1050_v38 }
 0x145   :  { %v4379_v8 = vpop.f32.mrf.mxu0  ;;  %4580 = vmatpush3.msra.mxu1 %v1050_v38 }
 0x146   :  { %4569 = vmatmul.mubr.msk.f32.gmra.mxu1 %vm164_vm0, %v5841_v63  ;;  %4581 = vmatprep.subr.mxu1 %v4373_v26 }
 0x147   :  { %v1060_v40 = vpop.f32.mrf.mxu0  ;;  %4582 = vmatpush3.msra.mxu1 %v4373_v26  ;;  %4571 = vmatprep.mubr.msk.f32.mxu1 %vm164_vm0, %v5852_v50 }
 0x148   :  { %4583 = vmatprep.subr.mxu1 %v1040_v48 }
 0x149   :  { %v4382_v62 = vpop.f32.mrf.mxu0  ;;  %4584 = vmatpush3.msra.mxu1 %v1040_v48 }
 0x14a   :  { %4572 = vmatmul.mubr.msk.f32.gmra.mxu1 %vm164_vm0, %v5859_v49  ;;  %4585 = vmatprep.subr.mxu1 %v4370_v2 }
 0x14b   :  { %v1070_v34 = vpop.f32.mrf.mxu0  ;;  %4586 = vmatpush3.msra.mxu1 %v4370_v2  ;;  %4574 = vmatprep.mubr.msk.f32.mxu1 %vm164_vm0, %v5868_v25 }
 0x14c   :  { %4587 = vmatprep.subr.mxu1 %v1030_v54 }
 0x14d   :  { %v4385_v47 = vpop.f32.mrf.mxu0  ;;  %4588 = vmatpush3.msra.mxu1 %v1030_v54 }
 0x14e   :  { %4575 = vmatmul.mubr.msk.f32.gmra.mxu1 %vm164_vm0, %v5873_v10  ;;  %4589 = vmatprep.subr.mxu1 %v5849_v58 }
 0x14f   :  { %v1080_v26 = vpop.f32.mrf.mxu0  ;;  %4590 = vmatpush3.msra.mxu1 %v5849_v58  ;;  %4593 = vmatprep.mubr.msk.f32.mxu1 %vm164_vm0, %v5640_v32 }
 0x150   :  { %4591 = vmatprep.subr.mxu1 %v5856_v39 }
 0x151   :  { %v4388_v2 = vpop.f32.mrf.mxu0  ;;  %4592 = vmatpush3.msra.mxu1 %v5856_v39 }
 0x152   :  { %4594 = vmatmul.mubr.msk.f32.vlgmr.msra.gmra.mxu1 %vm164_vm0, %v5829_v7  ;;  %4605 = vmatprep.subr.mxu1 %v4388_v2 }
 0x153   :  { %v1090_v54 = vpop.f32.mrf.mxu0  ;;  %4606 = vmatpush3.msra.mxu1 %v4388_v2  ;;  %4596 = vmatprep.mubr.msk.f32.mxu1 %vm164_vm0, %v5836_v41 }
 0x154   :  { %4607 = vmatprep.subr.mxu1 %v1090_v54 }
 0x155   :  { %v4391_v48 = vpop.f32.mrf.mxu0  ;;  %4608 = vmatpush3.msra.mxu1 %v1090_v54 }
 0x156   :  { %4597 = vmatmul.mubr.msk.f32.gmra.mxu1 %vm164_vm0, %v5841_v63  ;;  %4609 = vmatprep.subr.mxu1 %v4385_v47 }
 0x157   :  { %v1100_v58 = vpop.f32.mrf.mxu0  ;;  %4610 = vmatpush3.msra.mxu1 %v4385_v47  ;;  %4599 = vmatprep.mubr.msk.f32.mxu1 %vm164_vm0, %v5852_v50 }
 0x158   :  { %4611 = vmatprep.subr.mxu1 %v1080_v26 }
 0x159   :  { %v4394_v39 = vpop.f32.mrf.mxu0  ;;  %4612 = vmatpush3.msra.mxu1 %v1080_v26 }
 0x15a   :  { %4600 = vmatmul.mubr.msk.f32.gmra.mxu1 %vm164_vm0, %v5859_v49  ;;  %4613 = vmatprep.subr.mxu1 %v4382_v62 }
 0x15b   :  { %v1110_v11 = vpop.f32.mrf.mxu0  ;;  %4614 = vmatpush3.msra.mxu1 %v4382_v62  ;;  %4602 = vmatprep.mubr.msk.f32.mxu1 %vm164_vm0, %v5868_v25 }
 0x15c   :  { %4615 = vmatprep.subr.mxu1 %v1070_v34 }
 0x15d   :  { %v4397_v38 = vpop.f32.mrf.mxu0  ;;  %4616 = vmatpush3.msra.mxu1 %v1070_v34 }
 0x15e   :  { %4603 = vmatmul.mubr.msk.f32.gmra.mxu1 %vm164_vm0, %v5873_v10  ;;  %4617 = vmatprep.subr.mxu1 %v4379_v8 }
 0x15f   :  { %v1120_v47 = vpop.f32.mrf.mxu0  ;;  %4618 = vmatpush3.msra.mxu1 %v4379_v8  ;;  %4621 = vmatprep.mubr.msk.f32.mxu1 %vm164_vm0, %v5640_v32 }
 0x160   :  { %4619 = vmatprep.subr.mxu1 %v1060_v40 }
 0x161   :  { %v4400_v26 = vpop.f32.mrf.mxu0  ;;  %4620 = vmatpush3.msra.mxu1 %v1060_v40 }
 0x162   :  { %4622 = vmatmul.mubr.msk.f32.vlgmr.msra.gmra.mxu1 %vm164_vm0, %v5829_v7  ;;  %4633 = vmatprep.subr.mxu1 %v4400_v26 }
 0x163   :  { %v1130_v62 = vpop.f32.mrf.mxu0  ;;  %4634 = vmatpush3.msra.mxu1 %v4400_v26  ;;  %4624 = vmatprep.mubr.msk.f32.mxu1 %vm164_vm0, %v5836_v41 }
 0x164   :  { %4635 = vmatprep.subr.mxu1 %v1130_v62 }
 0x165   :  { %v4403_v34 = vpop.f32.mrf.mxu0  ;;  %4636 = vmatpush3.msra.mxu1 %v1130_v62 }
 0x166   :  { %4625 = vmatmul.mubr.msk.f32.gmra.mxu1 %vm164_vm0, %v5841_v63  ;;  %4637 = vmatprep.subr.mxu1 %v4397_v38 }
 0x167   :  { %v1140_v8 = vpop.f32.mrf.mxu0  ;;  %4638 = vmatpush3.msra.mxu1 %v4397_v38  ;;  %4627 = vmatprep.mubr.msk.f32.mxu1 %vm164_vm0, %v5852_v50 }
 0x168   :  { %4639 = vmatprep.subr.mxu1 %v1120_v47 }
 0x169   :  { %v4406_v40 = vpop.f32.mrf.mxu0  ;;  %4640 = vmatpush3.msra.mxu1 %v1120_v47 }
 0x16a   :  { %4628 = vmatmul.mubr.msk.f32.gmra.mxu1 %vm164_vm0, %v5859_v49  ;;  %4641 = vmatprep.subr.mxu1 %v4394_v39 }
 0x16b   :  { %v1150_v2 = vpop.f32.mrf.mxu0  ;;  %4642 = vmatpush3.msra.mxu1 %v4394_v39  ;;  %4630 = vmatprep.mubr.msk.f32.mxu1 %vm164_vm0, %v5868_v25 }
 0x16c   :  { %4643 = vmatprep.subr.mxu1 %v1110_v11 }
 0x16d   :  { %v4409_v54 = vpop.f32.mrf.mxu0  ;;  %4644 = vmatpush3.msra.mxu1 %v1110_v11 }
 0x16e   :  { %4631 = vmatmul.mubr.msk.f32.gmra.mxu1 %vm164_vm0, %v5873_v10  ;;  %4645 = vmatprep.subr.mxu1 %v4391_v48 }
 0x16f   :  { %v1160_v38 = vpop.f32.mrf.mxu0  ;;  %4646 = vmatpush3.msra.mxu1 %v4391_v48  ;;  %4649 = vmatprep.mubr.msk.f32.mxu1 %vm164_vm0, %v5640_v32 }
 0x170   :  { %4647 = vmatprep.subr.mxu1 %v1100_v58 }
 0x171   :  { %v4412_v47 = vpop.f32.mrf.mxu0  ;;  %4648 = vmatpush3.msra.mxu1 %v1100_v58 }
 0x172   :  { %4650 = vmatmul.mubr.msk.f32.vlgmr.msra.gmra.mxu1 %vm164_vm0, %v5829_v7  ;;  %4661 = vmatprep.subr.mxu1 %v4412_v47 }
 0x173   :  { %v1170_v39 = vpop.f32.mrf.mxu0  ;;  %4662 = vmatpush3.msra.mxu1 %v4412_v47  ;;  %4652 = vmatprep.mubr.msk.f32.mxu1 %vm164_vm0, %v5836_v41 }
 0x174   :  { %4663 = vmatprep.subr.mxu1 %v1170_v39 }
 0x175   :  { %v4415_v11 = vpop.f32.mrf.mxu0  ;;  %4664 = vmatpush3.msra.mxu1 %v1170_v39 }
 0x176   :  { %4653 = vmatmul.mubr.msk.f32.gmra.mxu1 %vm164_vm0, %v5841_v63  ;;  %4665 = vmatprep.subr.mxu1 %v4409_v54 }
 0x177   :  { %v1180_v48 = vpop.f32.mrf.mxu0  ;;  %4666 = vmatpush3.msra.mxu1 %v4409_v54  ;;  %4655 = vmatprep.mubr.msk.f32.mxu1 %vm164_vm0, %v5852_v50 }
 0x178   :  { %4667 = vmatprep.subr.mxu1 %v1160_v38 }
 0x179   :  { %v4418_v58 = vpop.f32.mrf.mxu0  ;;  %4668 = vmatpush3.msra.mxu1 %v1160_v38 }
 0x17a   :  { %4656 = vmatmul.mubr.msk.f32.gmra.mxu1 %vm164_vm0, %v5859_v49  ;;  %4669 = vmatprep.subr.mxu1 %v4406_v40 }
 0x17b   :  { %v1190_v26 = vpop.f32.mrf.mxu0  ;;  %4670 = vmatpush3.msra.mxu1 %v4406_v40  ;;  %4658 = vmatprep.mubr.msk.f32.mxu1 %vm164_vm0, %v5868_v25 }
 0x17c   :  { %4671 = vmatprep.subr.mxu1 %v1150_v2 }
 0x17d   :  { %v4421_v62 = vpop.f32.mrf.mxu0  ;;  %4672 = vmatpush3.msra.mxu1 %v1150_v2 }
 0x17e   :  { %4659 = vmatmul.mubr.msk.f32.gmra.mxu1 %vm164_vm0, %v5873_v10  ;;  %4673 = vmatprep.subr.mxu1 %v4403_v34 }
 0x17f   :  { %v1200_v54 = vpop.f32.mrf.mxu0  ;;  %4674 = vmatpush3.msra.mxu1 %v4403_v34  ;;  %4677 = vmatprep.mubr.msk.f32.mxu1 %vm164_vm0, %v5640_v32 }
 0x180   :  { %4675 = vmatprep.subr.mxu1 %v1140_v8 }
 0x181   :  { %v4424_v38 = vpop.f32.mrf.mxu0  ;;  %4676 = vmatpush3.msra.mxu1 %v1140_v8 }
 0x182   :  { %4678 = vmatmul.mubr.msk.f32.vlgmr.msra.gmra.mxu1 %vm164_vm0, %v5829_v7  ;;  %4689 = vmatprep.subr.mxu1 %v4424_v38 }
 0x183   :  { %v1210_v40 = vpop.f32.mrf.mxu0  ;;  %4690 = vmatpush3.msra.mxu1 %v4424_v38  ;;  %4680 = vmatprep.mubr.msk.f32.mxu1 %vm164_vm0, %v5836_v41 }
 0x184   :  { %4691 = vmatprep.subr.mxu1 %v1210_v40 }
 0x185   :  { %v4427_v2 = vpop.f32.mrf.mxu0  ;;  %4692 = vmatpush3.msra.mxu1 %v1210_v40 }
 0x186   :  { %4681 = vmatmul.mubr.msk.f32.gmra.mxu1 %vm164_vm0, %v5841_v63  ;;  %4693 = vmatprep.subr.mxu1 %v4421_v62 }
 0x187   :  { %v1220_v34 = vpop.f32.mrf.mxu0  ;;  %4694 = vmatpush3.msra.mxu1 %v4421_v62  ;;  %4683 = vmatprep.mubr.msk.f32.mxu1 %vm164_vm0, %v5852_v50 }
 0x188   :  { %4695 = vmatprep.subr.mxu1 %v1200_v54 }
 0x189   :  { %v4430_v8 = vpop.f32.mrf.mxu0  ;;  %4696 = vmatpush3.msra.mxu1 %v1200_v54 }
 0x18a   :  { %4684 = vmatmul.mubr.msk.f32.gmra.mxu1 %vm164_vm0, %v5859_v49  ;;  %4697 = vmatprep.subr.mxu1 %v4418_v58 }
 0x18b   :  { %v1230_v47 = vpop.f32.mrf.mxu0  ;;  %4698 = vmatpush3.msra.mxu1 %v4418_v58  ;;  %4686 = vmatprep.mubr.msk.f32.mxu1 %vm164_vm0, %v5868_v25 }
 0x18c   :  { %4699 = vmatprep.subr.mxu1 %v1190_v26 }
 0x18d   :  { %v4433_v39 = vpop.f32.mrf.mxu0  ;;  %4700 = vmatpush3.msra.mxu1 %v1190_v26 }
 0x18e   :  { %4687 = vmatmul.mubr.msk.f32.gmra.mxu1 %vm164_vm0, %v5873_v10  ;;  %4701 = vmatprep.subr.mxu1 %v4415_v11 }
 0x18f   :  { %v1240_v62 = vpop.f32.mrf.mxu0  ;;  %4702 = vmatpush3.msra.mxu1 %v4415_v11  ;;  %4705 = vmatprep.mubr.msk.f32.mxu1 %vm164_vm0, %v5640_v32 }
 0x190   :  { %4703 = vmatprep.subr.mxu1 %v1180_v48 }
 0x191   :  { %v4436_v54 = vpop.f32.mrf.mxu0  ;;  %4704 = vmatpush3.msra.mxu1 %v1180_v48 }
 0x192   :  { %4706 = vmatmul.mubr.msk.f32.vlgmr.msra.gmra.mxu1 %vm164_vm0, %v5829_v7  ;;  %4717 = vmatprep.subr.mxu1 %v4436_v54 }
 0x193   :  { %v1250_v58 = vpop.f32.mrf.mxu0  ;;  %4718 = vmatpush3.msra.mxu1 %v4436_v54  ;;  %4708 = vmatprep.mubr.msk.f32.mxu1 %vm164_vm0, %v5836_v41 }
 0x194   :  { %4719 = vmatprep.subr.mxu1 %v1250_v58 }
 0x195   :  { %v4439_v26 = vpop.f32.mrf.mxu0  ;;  %4720 = vmatpush3.msra.mxu1 %v1250_v58 }
 0x196   :  { %4709 = vmatmul.mubr.msk.f32.gmra.mxu1 %vm164_vm0, %v5841_v63  ;;  %4721 = vmatprep.subr.mxu1 %v4433_v39 }
 0x197   :  { %v1260_v11 = vpop.f32.mrf.mxu0  ;;  %4722 = vmatpush3.msra.mxu1 %v4433_v39  ;;  %4711 = vmatprep.mubr.msk.f32.mxu1 %vm164_vm0, %v5852_v50 }
 0x198   :  { %4723 = vmatprep.subr.mxu1 %v1240_v62 }
 0x199   :  { %v4442_v48 = vpop.f32.mrf.mxu0  ;;  %4724 = vmatpush3.msra.mxu1 %v1240_v62 }
 0x19a   :  { %4712 = vmatmul.mubr.msk.f32.gmra.mxu1 %vm164_vm0, %v5859_v49  ;;  %4725 = vmatprep.subr.mxu1 %v4430_v8 }
 0x19b   :  { %v1270_v38 = vpop.f32.mrf.mxu0  ;;  %4726 = vmatpush3.msra.mxu1 %v4430_v8  ;;  %4714 = vmatprep.mubr.msk.f32.mxu1 %vm164_vm0, %v5868_v25 }
 0x19c   :  { %4727 = vmatprep.subr.mxu1 %v1230_v47 }
 0x19d   :  { %v4445_v40 = vpop.f32.mrf.mxu0  ;;  %4728 = vmatpush3.msra.mxu1 %v1230_v47 }
 0x19e   :  { %4715 = vmatmul.mubr.msk.f32.gmra.mxu1 %vm164_vm0, %v5873_v10  ;;  %4729 = vmatprep.subr.mxu1 %v4427_v2 }
 0x19f   :  { %v1280_v39 = vpop.f32.mrf.mxu0  ;;  %4730 = vmatpush3.msra.mxu1 %v4427_v2  ;;  %4733 = vmatprep.mubr.msk.f32.mxu1 %vm164_vm0, %v5640_v32 }
 0x1a0   :  { %4731 = vmatprep.subr.mxu1 %v1220_v34 }
 0x1a1   :  { %v4448_v62 = vpop.f32.mrf.mxu0  ;;  %4732 = vmatpush3.msra.mxu1 %v1220_v34 }
 0x1a2   :  { %4734 = vmatmul.mubr.msk.f32.vlgmr.msra.gmra.mxu1 %vm164_vm0, %v5829_v7  ;;  %4745 = vmatprep.subr.mxu1 %v4448_v62 }
 0x1a3   :  { %v1290_v8 = vpop.f32.mrf.mxu0  ;;  %4746 = vmatpush3.msra.mxu1 %v4448_v62  ;;  %4736 = vmatprep.mubr.msk.f32.mxu1 %vm164_vm0, %v5836_v41  ;;  %v6647_v62 = vsub.f32 %v5288_v5, %v5332_v35 }
 0x1a4   :  { %4747 = vmatprep.subr.mxu1 %v1290_v8 }
 0x1a5   :  { %v5996_v47 = vpop.f32.mrf.mxu0  ;;  %4748 = vmatpush3.msra.mxu1 %v1290_v8 }
 0x1a6   :  { %4737 = vmatmul.mubr.msk.f32.gmra.mxu1 %vm164_vm0, %v5841_v63  ;;  %4749 = vmatprep.subr.mxu1 %v4445_v40 }
 0x1a7   :  { %v6000_v2 = vpop.f32.mrf.mxu0  ;;  %4750 = vmatpush3.msra.mxu1 %v4445_v40  ;;  %4739 = vmatprep.mubr.msk.f32.mxu1 %vm164_vm0, %v5852_v50 }
 0x1a8   :  { %4751 = vmatprep.subr.mxu1 %v1280_v39 }
 0x1a9   :  { %v6004_v34 = vpop.f32.mrf.mxu0  ;;  %4752 = vmatpush3.msra.mxu1 %v1280_v39  ;;  %v425_v39 = vsub.f32 %v5729_v45, %v5521_v4  ;;  %v299_v4 = vsub.f32 %v5611_v20, %v5438_v52 }
 0x1aa   :  { %4740 = vmatmul.mubr.msk.f32.gmra.mxu1 %vm164_vm0, %v5859_v49  ;;  %4753 = vmatprep.subr.mxu1 %v4442_v48 }
 0x1ab   :  { %v6008_v54 = vpop.f32.mrf.mxu0  ;;  %4754 = vmatpush3.msra.mxu1 %v4442_v48  ;;  %4742 = vmatprep.mubr.msk.f32.mxu1 %vm164_vm0, %v5868_v25  ;;  %v426_v48 = vsub.f32 %v5734_v59, %v5523_v9  ;;  %v300_v9 = vsub.f32 %v5616_v27, %v5440_v53  ;;  %v433_v5 = vand.u32 2147483647, %v425_v39  ;;  %v427_v59 = vsub.f32 %v5736_v13, %v5525_v14  ;;  %v5015_v39 = vld [vmem:[#allocation6 + $0x10] sm:$0xff] }
 0x1ac   :  { %4755 = vmatprep.subr.mxu1 %v1270_v38  ;;  %v6650_v53 = vsub.f32 %v5366_v51, %v5345_v44  ;;  %v301_v27 = vsub.f32 %v5618_v29, %v5442_v57  ;;  %v302_v14 = vsub.f32 %v5624_v21, %v5445_v6  ;;  %v428_v13 = vsub.f32 %v5742_v33, %v5527_v16 }
 0x1ad   :  { %v4457_v58 = vpop.f32.mrf.mxu0  ;;  %4756 = vmatpush3.msra.mxu1 %v1270_v38  ;;  %v181_v38 = vand.u32 2147483647, %v6647_v62  ;;  %v434_v35 = vand.u32 2147483647, %v426_v48  ;;  %v307_v44 = vand.u32 2147483647, %v299_v4  ;;  %v303_v57 = vsub.f32 %v5626_v46, %v5447_v12 }
 0x1ae   :  { %4743 = vmatmul.mubr.msk.f32.gmra.mxu1 %vm164_vm0, %v5873_v10  ;;  %4757 = vmatprep.subr.mxu1 %v4439_v26  ;;  %v184_v20 = vand.u32 2147483647, %v6650_v53  ;;  %v308_v51 = vand.u32 2147483647, %v300_v9  ;;  %v435_v16 = vand.u32 2147483647, %v427_v59  ;;  %v304_v46 = vsub.f32 %v5632_v30, %v5457_v17 }
 0x1af   :  { %v1320_v40 = vpop.f32.mrf.mxu0  ;;  %4758 = vmatpush3.msra.mxu1 %v4439_v26  ;;  %4761 = vmatprep.mubr.msk.f32.mxu1 %vm164_vm0, %v5640_v32  ;;  %v6648_v26 = vsub.f32 %v5341_v42, %v5334_v36  ;;  %v6649_v42 = vsub.f32 %v5343_v43, %v5336_v37  ;;  %v5014_v37 = vld [vmem:[#allocation6 + $0x8] sm:$0xff]  ;;  %v310_v12 = vand.u32 2147483647, %v302_v14  ;;  %v429_v4 = vsub.f32 %v5744_v15, %v5543_v28 }
 0x1b0   :  { %4759 = vmatprep.subr.mxu1 %v1260_v11  ;;  %v442_v21 = vmul.f32 %v5014_v37, %v434_v35  ;;  %v311_v35 = vand.u32 2147483647, %v303_v57  ;;  %v443_v30 = vmul.f32 %v5015_v39, %v435_v16  ;;  %v430_v15 = vsub.f32 %v5750_v19, %v5545_v31  ;;  %v5018_v16 = vld [vmem:[#allocation7 + $0x30] sm:$0xff] }
 0x1b1   :  { %v4460_v8 = vpop.f32.mrf.mxu0  ;;  %4760 = vmatpush3.msra.mxu1 %v1260_v11  ;;  %v182_v24 = vand.u32 2147483647, %v6648_v26  ;;  %v5013_v11 = vld [vmem:[#allocation6] sm:$0xff]  ;;  %v183_v52 = vand.u32 2147483647, %v6649_v42  ;;  %v431_v57 = vsub.f32 %v5752_v23, %v5584_v3  ;;  %v6653_v3 = vld [vmem:[#allocation24_spill] sm:$0xff] }
 0x1b2   :  { %4762 = vmatmul.mubr.msk.f32.vlgmr.msra.gmra.mxu1 %vm164_vm0, %v5829_v7  ;;  %4773 = vmatprep.subr.mxu1 %v4460_v8  ;;  %v189_v36 = vmul.f32 %v5013_v11, %v181_v38  ;;  %v441_v6 = vmul.f32 %v5013_v11, %v433_v5  ;;  %v316_v5 = vmul.f32 %v5014_v37, %v308_v51  ;;  %v450_v28 = vsel %vm164_vm0, %v442_v21, 0.0 }
 0x1b3   :  { %v1330_v45 = vpop.f32.mrf.mxu0  ;;  %4774 = vmatpush3.msra.mxu1 %v4460_v8  ;;  %4764 = vmatprep.mubr.msk.f32.mxu1 %vm164_vm0, %v5836_v41  ;;  %v190_v43 = vmul.f32 %v5014_v37, %v182_v24  ;;  %v191_v48 = vmul.f32 %v5015_v39, %v183_v52  ;;  %v5016_v24 = vld [vmem:[#allocation6 + $0x18] sm:$0xff]  ;;  %v309_v8 = vand.u32 2147483647, %v301_v27  ;;  %v305_v52 = vsub.f32 %v5634_v22, %v5465_v18 }
 0x1b4   :  { %4775 = vmatprep.subr.mxu1 %v1330_v45  ;;  %v197_v33 = vsel %vm164_vm0, %v189_v36, 0.0  ;;  %v6059_v38 = vmul.f32 %v5016_v24, %v184_v20  ;;  %v449_v17 = vsel %vm164_vm0, %v441_v6, 0.0  ;;  %v6090_v20 = vmul.f32 %v5016_v24, %v310_v12 }
 0x1b5   :  { %v6044_v62 = vpop.f32.mrf.mxu0  ;;  %4776 = vmatpush3.msra.mxu1 %v1330_v45  ;;  %v198_v9 = vsel %vm164_vm0, %v190_v43, 0.0  ;;  %v315_v45 = vmul.f32 %v5013_v11, %v307_v44  ;;  %v317_v42 = vmul.f32 %v5015_v39, %v309_v8  ;;  %v6092_v31 = vand.u32 2147483647, %v304_v46  ;;  %v5019_v46 = vld [vmem:[#allocation6 + $0x28] sm:$0xff] }
 0x1b6   :  { %4765 = vmatmul.mubr.msk.f32.gmra.mxu1 %vm164_vm0, %v5841_v63  ;;  %4777 = vmatprep.subr.mxu1 %v4457_v58  ;;  %v437_v27 = vand.u32 2147483647, %v429_v4  ;;  %v451_v18 = vadd.f32 %v450_v28, %v449_v17  ;;  %v199_v22 = vadd.f32 %v198_v9, %v197_v33  ;;  %v438_v14 = vand.u32 2147483647, %v430_v15 }
 0x1b7   :  { %v6054_v29 = vpop.f32.mrf.mxu0  ;;  %4778 = vmatpush3.msra.mxu1 %v4457_v58  ;;  %4767 = vmatprep.mubr.msk.f32.mxu1 %vm164_vm0, %v5852_v50  ;;  %v436_v58 = vand.u32 2147483647, %v428_v13  ;;  %v452_v13 = vsel %vm164_vm0, %v443_v30, 0.0  ;;  %v200_v37 = vsel %vm164_vm0, %v191_v48, 0.0  ;;  %v6110_v43 = vsel %vm164_vm0, %v317_v42, 0.0 }
 0x1b8   :  { %4779 = vmatprep.subr.mxu1 %v1320_v40  ;;  %v6112_v44 = vand.u32 2147483647, %v305_v52  ;;  %v201_v51 = vadd.f32 %v200_v37, %v199_v22  ;;  %v179_v33 = vsub.f32 %v5018_v16, %v5393_v0  ;;  %v202_v8 = vsel %vm164_vm0, %v6059_v38, 0.0  ;;  %v6655_v37 = vld [vmem:[#allocation23_spill] sm:$0xff] }
 0x1b9   :  { %v6061_v26 = vpop.f32.mrf.mxu0  ;;  %4780 = vmatpush3.msra.mxu1 %v1320_v40  ;;  %v6651_v40 = vsub.f32 %v5381_v60, %v5373_v55  ;;  %v444_v19 = vmul.f32 %v5016_v24, %v436_v58  ;;  %v323_v55 = vsel %vm164_vm0, %v315_v45, 0.0  ;;  %v432_v23 = vsub.f32 %v6653_v3, %v5562_v1  ;;  %v5020_v45 = vld [vmem:[#allocation7 + $0x38] sm:$0xff]  ;;  %v5021_v1 = vld [vmem:[#allocation6 + $0x30] sm:$0xff] }
 0x1ba   :  { %4768 = vmatmul.mubr.msk.f32.gmra.mxu1 %vm164_vm0, %v5859_v49  ;;  %4781 = vmatprep.subr.mxu1 %v6004_v34  ;;  %v439_v12 = vand.u32 2147483647, %v431_v57  ;;  %v446_v58 = vmul.f32 %v5019_v46, %v438_v14  ;;  %v187_v17 = vand.u32 2147483647, %v179_v33  ;;  %v320_v57 = vmul.f32 %v5019_v46, %v6092_v31 }
 0x1bb   :  { %v6071_v59 = vpop.f32.mrf.mxu0  ;;  %4782 = vmatpush3.msra.mxu1 %v6004_v34  ;;  %4770 = vmatprep.mubr.msk.f32.mxu1 %vm164_vm0, %v5868_v25  ;;  %v185_v11 = vand.u32 2147483647, %v6651_v40  ;;  %v6652_v34 = vsub.f32 %v5383_v61, %v5375_v56  ;;  %v5017_v56 = vld [vmem:[#allocation6 + $0x20] sm:$0xff]  ;;  %v454_v21 = vsel %vm164_vm0, %v444_v19, 0.0  ;;  %v440_v38 = vand.u32 2147483647, %v432_v23 }
 0x1bc   :  { %4783 = vmatprep.subr.mxu1 %v6008_v54  ;;  %v6098_v60 = vmul.f32 %v5017_v56, %v311_v35  ;;  %v445_v6 = vmul.f32 %v5017_v56, %v437_v27  ;;  %v447_v30 = vmul.f32 %v5021_v1, %v439_v12  ;;  %v458_v15 = vsel %vm164_vm0, %v446_v58, 0.0  ;;  %v5022_v19 = vld [vmem:[#allocation6 + $0x38] sm:$0xff] }
 0x1bd   :  { %v186_v36 = vand.u32 2147483647, %v6652_v34  ;;  %v4469_v53 = vpop.f32.mrf.mxu0  ;;  %4784 = vmatpush3.msra.mxu1 %v6008_v54  ;;  %v324_v54 = vsel %vm164_vm0, %v316_v5, 0.0  ;;  %v193_v24 = vmul.f32 %v5017_v56, %v185_v11  ;;  %v6654_v5 = vld [vmem:[#allocation22_spill] sm:$0xff]  ;;  %v203_v40 = vadd.f32 %v202_v8, %v201_v51 }
 0x1be   :  { %4771 = vmatmul.mubr.msk.f32.gmra.mxu1 %vm164_vm0, %v5873_v10  ;;  %4785 = vmatprep.subr.mxu1 %v5996_v47  ;;  %v325_v39 = vadd.f32 %v324_v54, %v323_v55  ;;  %v456_v0 = vsel %vm164_vm0, %v445_v6, 0.0  ;;  %v180_v35 = vsub.f32 %v5020_v45, %v6654_v5  ;;  %v195_v52 = vmul.f32 %v5021_v1, %v187_v17 }
 0x1bf   :  { %v6100_v61 = vpop.f32.mrf.mxu0  ;;  %4786 = vmatpush3.msra.mxu1 %v5996_v47  ;;  %4789 = vmatprep.mubr.msk.f32.mxu1 %vm164_vm0, %v5640_v32  ;;  %v453_v32 = vadd.f32 %v452_v13, %v451_v18  ;;  %v194_v28 = vmul.f32 %v5019_v46, %v186_v36  ;;  %v204_v36 = vsel %vm164_vm0, %v193_v24, 0.0  ;;  %v448_v27 = vmul.f32 %v5022_v19, %v440_v38  ;;  %v5023_v13 = vld [vmem:[#allocation7 + $0x78] sm:$0xff] }
 0x1c0   :  { %4787 = vmatprep.subr.mxu1 %v6000_v2  ;;  %v188_v42 = vand.u32 2147483647, %v180_v35  ;;  %v460_v55 = vsel %vm164_vm0, %v447_v30, 0.0  ;;  %v205_v56 = vadd.f32 %v204_v36, %v203_v40  ;;  %v208_v14 = vsel %vm164_vm0, %v195_v52, 0.0  ;;  %v6239_v36 = vld [vmem:[#allocation10 + $0x20] sm:$0xff] }
 0x1c1   :  { %v4472_v47 = vpop.f32.mrf.mxu0  ;;  %4788 = vmatpush3.msra.mxu1 %v6000_v2  ;;  %v455_v2 = vadd.f32 %v454_v21, %v453_v32  ;;  %v206_v18 = vsel %vm164_vm0, %v194_v28, 0.0  ;;  %v462_v32 = vsel %vm164_vm0, %v448_v27, 0.0  ;;  %v327_v33 = vadd.f32 %v6110_v43, %v325_v39 }
 0x1c2   :  { %4790 = vmatmul.mubr.msk.f32.vlgmr.msra.gmra.mxu1 %vm164_vm0, %v5829_v7  ;;  %4801 = vmatprep.subr.mxu1 %v4472_v47  ;;  %v196_v54 = vmul.f32 %v5022_v19, %v188_v42  ;;  %v207_v51 = vadd.f32 %v206_v18, %v205_v56  ;;  %v328_v31 = vsel %vm164_vm0, %v6090_v20, 0.0  ;;  %v6169_v20 = vld [vmem:[#allocation10] sm:$0xff]  ;;  %v6235_v42 = vld [vmem:[#allocation10 + $0x18] sm:$0xff]  ;;  %v6247_v56 = vld [vmem:[#allocation10 + $0x28] sm:$0xff] }
 0x1c3   :  { %v1370_v48 = vpop.f32.mrf.mxu0  ;;  %4802 = vmatpush3.msra.mxu1 %v4472_v47  ;;  %4792 = vmatprep.mubr.msk.f32.mxu1 %vm164_vm0, %v5836_v41  ;;  %v457_v9 = vadd.f32 %v456_v0, %v455_v2  ;;  %v306_v47 = vsub.f32 %v5023_v13, %v6655_v37  ;;  %v321_v2 = vmul.f32 %v5021_v1, %v6112_v44  ;;  %v332_v44 = vsel %vm164_vm0, %v320_v57, 0.0  ;;  %v5031_v13 = vld [vmem:[#allocation10 + $0x38] sm:$0xff] }
 0x1c4   :  { %4803 = vmatprep.subr.mxu1 %v1370_v48  ;;  %v210_v21 = vsel %vm164_vm0, %v196_v54, 0.0  ;;  %v329_v8 = vadd.f32 %v328_v31, %v327_v33 }
 0x1c5   :  { %v6128_v4 = vpop.f32.mrf.mxu0  ;;  %4804 = vmatpush3.msra.mxu1 %v1370_v48  ;;  %v459_v34 = vadd.f32 %v458_v15, %v457_v9  ;;  %v314_v16 = vand.u32 2147483647, %v306_v47  ;;  %v209_v48 = vadd.f32 %v208_v14, %v207_v51  ;;  %v6221_v15 = vld [vmem:[#allocation10 + $0x8] sm:$0xff] }
 0x1c6   :  { %4793 = vmatmul.mubr.msk.f32.gmra.mxu1 %vm164_vm0, %v5841_v63  ;;  %4805 = vmatprep.subr.mxu1 %v4469_v53 }
 0x1c7   :  { %v6134_v11 = vpop.f32.mrf.mxu0  ;;  %4806 = vmatpush3.msra.mxu1 %v4469_v53  ;;  %4795 = vmatprep.mubr.msk.f32.mxu1 %vm164_vm0, %v5852_v50  ;;  %v461_v53 = vadd.f32 %v460_v55, %v459_v34  ;;  %v211_v43 = vadd.f32 %v210_v21, %v209_v48  ;;  %v322_v39 = vmul.f32 %v5022_v19, %v314_v16 }
 0x1c8   :  { %4807 = vmatprep.subr.mxu1 %v6100_v61 }
 0x1c9   :  { %v6142_v22 = vpop.f32.mrf.mxu0  ;;  %4808 = vmatpush3.msra.mxu1 %v6100_v61  ;;  %v463_v61 = vadd.f32 %v462_v32, %v461_v53  ;;  %212 = vadd.xlane.f32.xlu0 %v211_v43 }
 0x1ca   :  { %4796 = vmatmul.mubr.msk.f32.gmra.mxu1 %vm164_vm0, %v5859_v49  ;;  %4809 = vmatprep.subr.mxu1 %v6061_v26 }
 0x1cb   :  { %v1390_v6 = vpop.f32.mrf.mxu0  ;;  %4810 = vmatpush3.msra.mxu1 %v6061_v26  ;;  %4798 = vmatprep.mubr.msk.f32.mxu1 %vm164_vm0, %v5868_v25  ;;  %v330_v26 = vsel %vm164_vm0, %v6098_v60, 0.0  ;;  %v334_v60 = vsel %vm164_vm0, %v321_v2, 0.0 }
 0x1cc   :  { %4811 = vmatprep.subr.mxu1 %v6071_v59  ;;  %464 = vadd.xlane.f32.xlu1 %v463_v61 }
 0x1cd   :  { %v4481_v24 = vpop.f32.mrf.mxu0  ;;  %4812 = vmatpush3.msra.mxu1 %v6071_v59  ;;  %v331_v59 = vadd.f32 %v330_v26, %v329_v8 }
 0x1ce   :  { %4799 = vmatmul.mubr.msk.f32.gmra.mxu1 %vm164_vm0, %v5873_v10  ;;  %4813 = vmatprep.subr.mxu1 %v6044_v62 }
 0x1cf   :  { %v1400_v3 = vpop.f32.mrf.mxu0  ;;  %4814 = vmatpush3.msra.mxu1 %v6044_v62  ;;  %4817 = vmatprep.mubr.msk.f32.mxu1 %vm164_vm0, %v6169_v20  ;;  %v333_v12 = vadd.f32 %v332_v44, %v331_v59  ;;  %v336_v62 = vsel %vm164_vm0, %v322_v39, 0.0 }
 0x1d0   :  { %4815 = vmatprep.subr.mxu1 %v6054_v29 }
 0x1d1   :  { %v4484_v23 = vpop.f32.mrf.mxu0  ;;  %4816 = vmatpush3.msra.mxu1 %v6054_v29  ;;  %v335_v58 = vadd.f32 %v334_v60, %v333_v12 }
 0x1d2   :  { %4818 = vmatmul.mubr.msk.f32.vlgmr.msra.gmra.mxu1 %vm164_vm0, %v5829_v7  ;;  %4829 = vmatprep.subr.mxu1 %v4484_v23 }
 0x1d3   :  { %v1410_v46 = vpop.f32.mrf.mxu0  ;;  %4830 = vmatpush3.msra.mxu1 %v4484_v23  ;;  %4820 = vmatprep.mubr.msk.f32.mxu1 %vm164_vm0, %v5836_v41  ;;  %v337_v9 = vadd.f32 %v336_v62, %v335_v58 }
 0x1d4   :  { %4831 = vmatprep.subr.mxu1 %v1410_v46 }
 0x1d5   :  { %v4487_v0 = vpop.f32.mrf.mxu0  ;;  %4832 = vmatpush3.msra.mxu1 %v1410_v46  ;;  %338 = vadd.xlane.f32.xlu0 %v337_v9 }
 0x1d6   :  { %4821 = vmatmul.mubr.msk.f32.gmra.mxu1 %vm164_vm0, %v5841_v63  ;;  %4833 = vmatprep.subr.mxu1 %v4481_v24 }
 0x1d7   :  { %v1420_v29 = vpop.f32.mrf.mxu0  ;;  %4834 = vmatpush3.msra.mxu1 %v4481_v24  ;;  %4823 = vmatprep.mubr.msk.f32.mxu1 %vm164_vm0, %v5852_v50 }
 0x1d8   :  { %4835 = vmatprep.subr.mxu1 %v1400_v3 }
 0x1d9   :  { %v4490_v45 = vpop.f32.mrf.mxu0  ;;  %4836 = vmatpush3.msra.mxu1 %v1400_v3 }
 0x1da   :  { %4824 = vmatmul.mubr.msk.f32.gmra.mxu1 %vm164_vm0, %v5859_v49  ;;  %4837 = vmatprep.subr.mxu1 %v6142_v22 }
 0x1db   :  { %v1430_v5 = vpop.f32.mrf.mxu0  ;;  %4838 = vmatpush3.msra.mxu1 %v6142_v22  ;;  %4826 = vmatprep.mubr.msk.f32.mxu1 %vm164_vm0, %v5868_v25  ;;  %v5030_v22 = vld [vmem:[#allocation10 + $0x30] sm:$0xff] }
 0x1dc   :  { %4839 = vmatprep.subr.mxu1 %v1390_v6 }
 0x1dd   :  { %v4493_v35 = vpop.f32.mrf.mxu0  ;;  %4840 = vmatpush3.msra.mxu1 %v1390_v6 }
 0x1de   :  { %4827 = vmatmul.mubr.msk.f32.gmra.mxu1 %vm164_vm0, %v5873_v10  ;;  %4841 = vmatprep.subr.mxu1 %v6128_v4 }
 0x1df   :  { %v1440_v17 = vpop.f32.mrf.mxu0  ;;  %4842 = vmatpush3.msra.mxu1 %v6128_v4  ;;  %4845 = vmatprep.mubr.msk.f32.mxu1 %vm164_vm0, %v6169_v20 }
 0x1e0   :  { %4843 = vmatprep.subr.mxu1 %v6134_v11 }
 0x1e1   :  { %v4496_v28 = vpop.f32.mrf.mxu0  ;;  %4844 = vmatpush3.msra.mxu1 %v6134_v11 }
 0x1e2   :  { %4846 = vmatmul.mubr.msk.f32.vlgmr.msra.gmra.mxu1 %vm164_vm0, %v5829_v7  ;;  %4857 = vmatprep.subr.mxu1 %v4496_v28 }
 0x1e3   :  { %v1450_v38 = vpop.f32.mrf.mxu0  ;;  %4858 = vmatpush3.msra.mxu1 %v4496_v28  ;;  %4848 = vmatprep.mubr.msk.f32.mxu1 %vm164_vm0, %v5836_v41 }
 0x1e4   :  { %4859 = vmatprep.subr.mxu1 %v1450_v38 }
 0x1e5   :  { %v6203_v1 = vpop.f32.mrf.mxu0  ;;  %4860 = vmatpush3.msra.mxu1 %v1450_v38 }
 0x1e6   :  { %4849 = vmatmul.mubr.msk.f32.gmra.mxu1 %vm164_vm0, %v5841_v63  ;;  %4861 = vmatprep.subr.mxu1 %v4493_v35 }
 0x1e7   :  { %v6207_v4 = vpop.f32.mrf.mxu0  ;;  %4862 = vmatpush3.msra.mxu1 %v4493_v35  ;;  %4851 = vmatprep.mubr.msk.f32.mxu1 %vm164_vm0, %v5852_v50 }
 0x1e8   :  { %4863 = vmatprep.subr.mxu1 %v1440_v17 }
 0x1e9   :  { %v4502_v7 = vpop.f32.mrf.mxu0  ;;  %4864 = vmatpush3.msra.mxu1 %v1440_v17 }
 0x1ea   :  { %4852 = vmatmul.mubr.msk.f32.gmra.mxu1 %vm164_vm0, %v5859_v49  ;;  %4865 = vmatprep.subr.mxu1 %v4490_v45 }
 0x1eb   :  { %v1470_v41 = vpop.f32.mrf.mxu0  ;;  %4866 = vmatpush3.msra.mxu1 %v4490_v45  ;;  %4854 = vmatprep.mubr.msk.f32.mxu1 %vm164_vm0, %v5868_v25 }
 0x1ec   :  { %4867 = vmatprep.subr.mxu1 %v1430_v5 }
 0x1ed   :  { %v4505_v63 = vpop.f32.mrf.mxu0  ;;  %4868 = vmatpush3.msra.mxu1 %v1430_v5 }
 0x1ee   :  { %4855 = vmatmul.mubr.msk.f32.gmra.mxu1 %vm164_vm0, %v5873_v10  ;;  %4869 = vmatprep.subr.mxu1 %v4487_v0  ;;  %v6225_v10 = vld [vmem:[#allocation10 + $0x10] sm:$0xff] }
 0x1ef   :  { %v1480_v50 = vpop.f32.mrf.mxu0  ;;  %4870 = vmatpush3.msra.mxu1 %v4487_v0  ;;  %4873 = vmatprep.mubr.msk.f32.mxu1 %vm164_vm0, %v6169_v20 }
 0x1f0   :  { %4871 = vmatprep.subr.mxu1 %v1420_v29 }
 0x1f1   :  { %v4508_v49 = vpop.f32.mrf.mxu0  ;;  %4872 = vmatpush3.msra.mxu1 %v1420_v29 }
 0x1f2   :  { %v6219_v30 = vpop.f32.mrf.mxu1  ;;  %4874 = vmatmul.mubr.msk.f32.vlgmr.msra.gmra.mxu1 %vm164_vm0, %v6221_v15  ;;  %4885 = vmatprep.subr.mxu1 %v4508_v49 }
 0x1f3   :  { %v1490_v25 = vpop.f32.mrf.mxu0  ;;  %4886 = vmatpush3.msra.mxu1 %v4508_v49  ;;  %4876 = vmatprep.mubr.msk.f32.mxu1 %vm164_vm0, %v6225_v10  ;;  %v2089_v59 = vmul.f32 %v6219_v30, %v6219_v30 }
 0x1f4   :  { %v6229_v40 = vpop.f32.mrf.mxu1  ;;  %4887 = vmatprep.subr.mxu1 %v1490_v25 }
 0x1f5   :  { %v6231_v11 = vpop.f32.mrf.mxu0  ;;  %4888 = vmatpush3.msra.mxu1 %v1490_v25  ;;  %v2088_v23 = vmul.f32 %v6229_v40, %v6229_v40 }
 0x1f6   :  { %v6233_v34 = vpop.f32.mrf.mxu1  ;;  %4877 = vmatmul.mubr.msk.f32.gmra.mxu1 %vm164_vm0, %v6235_v42  ;;  %4889 = vmatprep.subr.mxu1 %v4505_v63 }
 0x1f7   :  { %v1500_v52 = vpop.f32.mrf.mxu0  ;;  %4890 = vmatpush3.msra.mxu1 %v4505_v63  ;;  %4879 = vmatprep.mubr.msk.f32.mxu1 %vm164_vm0, %v6239_v36  ;;  %v2091_v60 = vmul.f32 %v6233_v34, %v6233_v34 }
 0x1f8   :  { %v6243_v19 = vpop.f32.mrf.mxu1  ;;  %4891 = vmatprep.subr.mxu1 %v1480_v50 }
 0x1f9   :  { %v4514_v27 = vpop.f32.mrf.mxu0  ;;  %4892 = vmatpush3.msra.mxu1 %v1480_v50  ;;  %v2090_v45 = vmul.f32 %v6243_v19, %v6243_v19 }
 0x1fa   :  { %v6245_v55 = vpop.f32.mrf.mxu1  ;;  %4880 = vmatmul.mubr.msk.f32.gmra.mxu1 %vm164_vm0, %v6247_v56  ;;  %4893 = vmatprep.subr.mxu1 %v4502_v7 }
 0x1fb   :  { %v1510_v18 = vpop.f32.mrf.mxu0  ;;  %4894 = vmatpush3.msra.mxu1 %v4502_v7  ;;  %4882 = vmatprep.mubr.msk.f32.mxu1 %vm164_vm0, %v5030_v22  ;;  %v2093_v9 = vmul.f32 %v6245_v55, %v6245_v55 }
 0x1fc   :  { %v6252_v53 = vpop.f32.mrf.mxu1  ;;  %4895 = vmatprep.subr.mxu1 %v1470_v41 }
 0x1fd   :  { %v4517_v54 = vpop.f32.mrf.mxu0  ;;  %4896 = vmatpush3.msra.mxu1 %v1470_v41  ;;  %v2092_v38 = vmul.f32 %v6252_v53, %v6252_v53 }
 0x1fe   :  { %v6254_v14 = vpop.f32.mrf.mxu1  ;;  %4883 = vmatmul.mubr.msk.f32.gmra.mxu1 %vm164_vm0, %v5031_v13  ;;  %4897 = vmatprep.subr.mxu1 %v6203_v1 }
 0x1ff   :  { %v1520_v37 = vpop.f32.mrf.mxu0  ;;  %4898 = vmatpush3.msra.mxu1 %v6203_v1  ;;  %4901 = vmatprep.mubr.msk.f32.mxu1 %vm164_vm0, %v6169_v20  ;;  %v2095_v35 = vmul.f32 %v6254_v14, %v6254_v14 }
 0x200   :  { %v6261_v47 = vpop.f32.mrf.mxu1  ;;  %4899 = vmatprep.subr.mxu1 %v6207_v4 }
 0x201   :  { %v4520_v32 = vpop.f32.mrf.mxu0  ;;  %4900 = vmatpush3.msra.mxu1 %v6207_v4  ;;  %v6342_v7 = vmul.f32 %v6261_v47, %v6261_v47 }
 0x202   :  { %v4567_v51 = vpop.f32.mrf.mxu1  ;;  %4902 = vmatmul.mubr.msk.f32.vlgmr.msra.gmra.mxu1 %vm164_vm0, %v6221_v15  ;;  %4913 = vmatprep.subr.mxu1 %v4520_v32 }
 0x203   :  { %v1530_v57 = vpop.f32.mrf.mxu0  ;;  %4914 = vmatpush3.msra.mxu1 %v4520_v32  ;;  %4904 = vmatprep.mubr.msk.f32.mxu1 %vm164_vm0, %v6225_v10  ;;  %v2097_v3 = vmul.f32 %v4567_v51, %v4567_v51  ;;  %v6336_v17 = vmul.f32 %v4567_v51, %v6219_v30 }
 0x204   :  { %v6269_v6 = vpop.f32.mrf.mxu1  ;;  %4915 = vmatprep.subr.mxu1 %v1530_v57 }
 0x205   :  { %4916 = vmatpush3.msra.mxu1 %v1530_v57  ;;  %v2096_v12 = vmul.f32 %v6269_v6, %v6269_v6  ;;  %v2161_v28 = vadd.f32 %v2097_v3, %v2089_v59 }
 0x206   :  { %v6271_v61 = vpop.f32.mrf.mxu1  ;;  %4905 = vmatmul.mubr.msk.f32.gmra.mxu1 %vm164_vm0, %v6235_v42  ;;  %4917 = vmatprep.subr.mxu1 %v4517_v54 }
 0x207   :  { %4918 = vmatpush3.msra.mxu1 %v4517_v54  ;;  %4907 = vmatprep.mubr.msk.f32.mxu1 %vm164_vm0, %v6239_v36  ;;  %v2099_v62 = vmul.f32 %v6271_v61, %v6271_v61 }
 0x208   :  { %v6277_v21 = vpop.f32.mrf.mxu1  ;;  %4919 = vmatprep.subr.mxu1 %v1520_v37 }
 0x209   :  { %4920 = vmatpush3.msra.mxu1 %v1520_v37  ;;  %v2098_v46 = vmul.f32 %v6277_v21, %v6277_v21  ;;  %v2163_v50 = vadd.f32 %v2099_v62, %v2091_v60 }
 0x20a   :  { %v6279_v16 = vpop.f32.mrf.mxu1  ;;  %4908 = vmatmul.mubr.msk.f32.gmra.mxu1 %vm164_vm0, %v6247_v56  ;;  %4921 = vmatprep.subr.mxu1 %v4514_v27 }
 0x20b   :  { %4922 = vmatpush3.msra.mxu1 %v4514_v27  ;;  %4910 = vmatprep.mubr.msk.f32.mxu1 %vm164_vm0, %v5030_v22  ;;  %v2101_v58 = vmul.f32 %v6279_v16, %v6279_v16  ;;  %v2162_v25 = vadd.f32 %v2098_v46, %v2090_v45  ;;  %v2169_v27 = vadd.f32 0.0001, %v2161_v28  ;;  %v2171_v51 = vadd.f32 0.0001, %v2163_v50 }
 0x20c   :  { %v6284_v33 = vpop.f32.mrf.mxu1  ;;  %4923 = vmatprep.subr.mxu1 %v1510_v18 }
 0x20d   :  { %4924 = vmatpush3.msra.mxu1 %v1510_v18  ;;  %v2165_v49 = vadd.f32 %v2101_v58, %v2093_v9  ;;  %v6351_v18 = vmul.f32 %v6271_v61, %v6233_v34  ;;  %v2100_v57 = vmul.f32 %v6284_v33, %v6284_v33 }
 0x20e   :  { %v6286_v48 = vpop.f32.mrf.mxu1  ;;  %4911 = vmatmul.mubr.msk.f32.gmra.mxu1 %vm164_vm0, %v5031_v13  ;;  %4925 = vmatprep.subr.mxu1 %v6231_v11 }
 0x20f   :  { %4926 = vmatpush3.msra.mxu1 %v6231_v11  ;;  %4929 = vmatprep.mubr.msk.f32.mxu1 %vm164_vm0, %v6169_v20  ;;  %v2103_v34 = vmul.f32 %v6286_v48, %v6286_v48 }
 0x210   :  { %v6293_v2 = vpop.f32.mrf.mxu1  ;;  %4927 = vmatprep.subr.mxu1 %v1500_v52 }
 0x211   :  { %4928 = vmatpush3.msra.mxu1 %v1500_v52 }
 0x212   :  { %v4595_v31 = vpop.f32.mrf.mxu1  ;;  %4930 = vmatmul.mubr.msk.f32.vlgmr.msra.gmra.mxu1 %vm164_vm0, %v6221_v15  ;;  %v2160_v15 = vadd.f32 %v2096_v12, %v2088_v23 }
 0x213   :  { %4932 = vmatprep.mubr.msk.f32.mxu1 %vm164_vm0, %v6225_v10  ;;  %v2177_v29 = vsub.f32 %v4595_v31, %v2089_v59  ;;  %v2170_v59 = vadd.f32 0.0001, %v2162_v25 }
 0x214   :  { %v1839_v26 = vpop.f32.mrf.mxu1  ;;  %v2168_v31 = vadd.f32 0.0001, %v2160_v15 }
 0x215   :  { %v2176_v4 = vsub.f32 %v1839_v26, %v2088_v23 }
 0x216   :  { %v4598_v24 = vpop.f32.mrf.mxu1  ;;  %4933 = vmatmul.mubr.msk.f32.gmra.mxu1 %vm164_vm0, %v6235_v42 }
 0x217   :  { %4935 = vmatprep.mubr.msk.f32.mxu1 %vm164_vm0, %v6239_v36  ;;  %v2179_v11 = vsub.f32 %v4598_v24, %v2091_v60  ;;  %v2113_v36 = vmul.f32 2.0, %v6336_v17 }
 0x218   :  { %v1849_v8 = vpop.f32.mrf.mxu1 }
 0x219   :  { %v2178_v54 = vsub.f32 %v1849_v8, %v2090_v45  ;;  %v2164_v45 = vadd.f32 %v2100_v57, %v2092_v38 }
 0x21a   :  { %v6303_v43 = vpop.f32.mrf.mxu1  ;;  %4936 = vmatmul.mubr.msk.f32.gmra.mxu1 %vm164_vm0, %v6247_v56  ;;  %v6347_v56 = vmul.f32 %v6269_v6, %v6229_v40 }
 0x21b   :  { %4938 = vmatprep.mubr.msk.f32.mxu1 %vm164_vm0, %v5030_v22  ;;  %v2181_v61 = vsub.f32 %v6303_v43, %v2093_v9  ;;  %v2167_v9 = vadd.f32 %v2103_v34, %v2095_v35  ;;  %v2172_v25 = vadd.f32 0.0001, %v2164_v45 }
 0x21c   :  { %v6308_v39 = vpop.f32.mrf.mxu1 }
 0x21e   :  { %v6310_v44 = vpop.f32.mrf.mxu1  ;;  %4939 = vmatmul.mubr.msk.f32.gmra.mxu1 %vm164_vm0, %v5031_v13 }
 0x220   :  { %v6313_v20 = vpop.f32.mrf.mxu1 }
 0x222   :  { %v4623_v0 = vpop.f32.mrf.mxu1 }
 0x223   :  { %v2185_v5 = vsub.f32 %v4623_v0, %v2097_v3  ;;  %v2173_v3 = vadd.f32 0.0001, %v2165_v49 }
 0x224   :  { %v1944_v1 = vpop.f32.mrf.mxu1 }
 0x225   :  { %v2193_v41 = vadd.f32 %v2185_v5, %v2177_v29  ;;  %v2184_v63 = vsub.f32 %v1944_v1, %v2096_v12  ;;  %v2180_v12 = vsub.f32 %v6308_v39, %v2092_v38  ;;  %v2102_v29 = vmul.f32 %v6293_v2, %v6293_v2 }
 0x226   :  { %v4626_v10 = vpop.f32.mrf.mxu1  ;;  %v2183_v1 = vsub.f32 %v6310_v44, %v2095_v35  ;;  %v2112_v38 = vmul.f32 2.0, %v6347_v56 }
 0x227   :  { %v2201_v30 = vadd.f32 0.0009, %v2193_v41  ;;  %v2192_v42 = vadd.f32 %v2184_v63, %v2176_v4  ;;  %v2187_v52 = vsub.f32 %v4626_v10, %v2099_v62  ;;  %v2166_v10 = vadd.f32 %v2102_v29, %v6342_v7 }
 0x228   :  { %v1954_v22 = vpop.f32.mrf.mxu1 }
 0x229   :  { %v2200_v13 = vadd.f32 0.0009, %v2192_v42  ;;  %v2195_v37 = vadd.f32 %v2187_v52, %v2179_v11  ;;  %v2186_v32 = vsub.f32 %v1954_v22, %v2098_v46  ;;  %v2209_v26 = vmul.f32 %v2201_v30, %v2169_v27 }
 0x22a   :  { %v4629_v24 = vpop.f32.mrf.mxu1  ;;  %v2106_v52 = vmul.f32 %v6277_v21, %v6243_v19 }
 0x22b   :  { %v2203_v40 = vadd.f32 0.0009, %v2195_v37  ;;  %v2194_v6 = vadd.f32 %v2186_v32, %v2178_v54  ;;  %v2208_v8 = vmul.f32 %v2200_v13, %v2168_v31  ;;  %v2189_v60 = vsub.f32 %v4629_v24, %v2101_v58 }
 0x22c   :  { %v1964_v23 = vpop.f32.mrf.mxu1  ;;  %4965 = vrcp.f32 %v2209_v26  ;;  %v2182_v58 = vsub.f32 %v6313_v20, %v6342_v7  ;;  %v2121_v20 = vadd.f32 0.0001, %v2113_v36  ;;  %v2115_v54 = vmul.f32 2.0, %v6351_v18 }
 0x22d   :  { %v2211_v62 = vmul.f32 %v2203_v40, %v2171_v51  ;;  %v2202_v46 = vadd.f32 0.0009, %v2194_v6  ;;  %v2188_v0 = vsub.f32 %v1964_v23, %v2100_v57  ;;  %v2197_v5 = vadd.f32 %v2189_v60, %v2181_v61 }
 0x22e   :  { %v4632_v28 = vpop.f32.mrf.mxu1  ;;  %4967 = vrcp.f32 %v2208_v8  ;;  %v2175_v13 = vadd.f32 0.0001, %v2167_v9  ;;  %v2120_v51 = vadd.f32 0.0001, %v2112_v38  ;;  %v2109_v7 = vmul.f32 %v6279_v16, %v6245_v55 }
 0x22f   :  { %v2210_v4 = vmul.f32 %v2202_v46, %v2170_v59  ;;  %v2196_v41 = vadd.f32 %v2188_v0, %v2180_v12  ;;  %v2191_v43 = vsub.f32 %v4632_v28, %v2103_v34  ;;  %v2205_v39 = vadd.f32 0.0009, %v2197_v5 }
 0x230   :  { %v1974_v63 = vpop.f32.mrf.mxu1  ;;  %4969 = vrcp.f32 %v2211_v62  ;;  %v2174_v57 = vadd.f32 0.0001, %v2166_v10  ;;  %v2114_v21 = vmul.f32 2.0, %v2106_v52  ;;  %v2123_v40 = vadd.f32 0.0001, %v2115_v54 }
 0x231   :  { %v2204_v50 = vadd.f32 0.0009, %v2196_v41  ;;  %v2199_v49 = vadd.f32 %v2191_v43, %v2183_v1  ;;  %v2190_v15 = vsub.f32 %v1974_v63, %v2102_v29  ;;  %4971 = vrcp.f32 %v2210_v4 }
 0x232   :  { %v4651_v44 = vpop.f32.mrf.mxu1  ;;  %v2213_v11 = vmul.f32 %v2205_v39, %v2173_v3  ;;  %v2117_v8 = vmul.f32 2.0, %v2109_v7  ;;  %v2108_v55 = vmul.f32 %v6284_v33, %v6252_v53  ;;  %v2111_v16 = vmul.f32 %v6286_v48, %v6254_v14 }
 0x233   :  { %v2207_v30 = vadd.f32 0.0009, %v2199_v49  ;;  %v2198_v35 = vadd.f32 %v2190_v15, %v2182_v58  ;;  %v2129_v42 = vsub.f32 %v4651_v44, %v6336_v17  ;;  %v2212_v27 = vmul.f32 %v2204_v50, %v2172_v25 }
 0x234   :  { %v2049_v22 = vpop.f32.mrf.mxu1  ;;  %4973 = vrcp.f32 %v2213_v11  ;;  %v2110_v46 = vmul.f32 %v6293_v2, %v6261_v47  ;;  %v2122_v28 = vadd.f32 0.0001, %v2114_v21  ;;  %v2125_v48 = vadd.f32 0.0001, %v2117_v8 }
 0x235   :  { %v2206_v37 = vadd.f32 0.0009, %v2198_v35  ;;  %v2137_v32 = vmul.f32 2.0, %v2129_v42  ;;  %v2128_v31 = vsub.f32 %v2049_v22, %v6347_v56  ;;  %v2215_v17 = vmul.f32 %v2207_v30, %v2175_v13 }
 0x236   :  { %v4654_v26 = vpop.f32.mrf.mxu1  ;;  %4975 = vrcp.f32 %v2212_v27  ;;  %v2116_v4 = vmul.f32 2.0, %v2108_v55  ;;  %v2119_v39 = vmul.f32 2.0, %v2111_v16  ;;  %v2118_v2 = vmul.f32 2.0, %v2110_v46 }
 0x237   :  { %v2145_v36 = vadd.f32 0.0009, %v2137_v32  ;;  %v2131_v19 = vsub.f32 %v4654_v26, %v6351_v18  ;;  %v2214_v24 = vmul.f32 %v2206_v37, %v2174_v57  ;;  %v2136_v3 = vmul.f32 2.0, %v2128_v31 }
 0x238   :  { %v2059_v59 = vpop.f32.mrf.mxu1  ;;  %4977 = vrcp.f32 %v2215_v17  ;;  %v2124_v35 = vadd.f32 0.0001, %v2116_v4  ;;  %v2127_v22 = vadd.f32 0.0001, %v2119_v39  ;;  %v2126_v26 = vadd.f32 0.0001, %v2118_v2 }
 0x239   :  { %v2153_v6 = vmul.f32 %v2145_v36, %v2121_v20  ;;  %v2139_v34 = vmul.f32 2.0, %v2131_v19  ;;  %v2130_v61 = vsub.f32 %v2059_v59, %v2106_v52  ;;  %v2144_v56 = vadd.f32 0.0009, %v2136_v3  ;;  %v4966_v23 = vpop.eup %4965 }
 0x23a   :  { %v4657_v60 = vpop.f32.mrf.mxu1  ;;  %4979 = vrcp.f32 %v2214_v24 }
 0x23b   :  { %v2147_v18 = vadd.f32 0.0009, %v2139_v34  ;;  %v2138_v12 = vmul.f32 2.0, %v2130_v61  ;;  %v2133_v62 = vsub.f32 %v4657_v60, %v2109_v7  ;;  %v2219_v0 = vmul.f32 %v4966_v23, %v2153_v6  ;;  %v4968_v5 = vpop.eup %4967 }
 0x23c   :  { %v2152_v29 = vmul.f32 %v2144_v56, %v2120_v51  ;;  %v2069_v45 = vpop.f32.mrf.mxu1 }
 0x23d   :  { %v2155_v53 = vmul.f32 %v2147_v18, %v2123_v40  ;;  %v2146_v33 = vadd.f32 0.0009, %v2138_v12  ;;  %v2141_v1 = vmul.f32 2.0, %v2133_v62  ;;  %v4970_v14 = vpop.eup %4969  ;;  %v2132_v43 = vsub.f32 %v2069_v45, %v2108_v55 }
 0x23e   :  { %v2217_v41 = vmul.f32 %v4968_v5, %v2152_v29  ;;  %v4660_v9 = vpop.f32.mrf.mxu1  ;;  %v4972_v58 = vpop.eup %4971  ;;  %v2233_v49 = vsel %vm164_vm0, %v2219_v0, 0.0 }
 0x23f   :  { %v2154_v63 = vmul.f32 %v2146_v33, %v2122_v28  ;;  %v2149_v50 = vadd.f32 0.0009, %v2141_v1  ;;  %v2135_v47 = vsub.f32 %v4660_v9, %v2111_v16  ;;  %v2140_v38 = vmul.f32 2.0, %v2132_v43 }
 0x240   :  { %v2232_v15 = vsel %vm164_vm0, %v2217_v41, 0.0  ;;  %v2079_v25 = vpop.f32.mrf.mxu1  ;;  %v2223_v44 = vmul.f32 %v4970_v14, %v2155_v53 }
 0x241   :  { %v2234_v10 = vadd.f32 %v2233_v49, %v2232_v15  ;;  %v2221_v11 = vmul.f32 %v4972_v58, %v2154_v63  ;;  %v2157_v30 = vmul.f32 %v2149_v50, %v2125_v48  ;;  %v2148_v42 = vadd.f32 0.0009, %v2140_v38  ;;  %v4974_v13 = vpop.eup %4973 }
 0x242   :  { %v2143_v20 = vmul.f32 2.0, %v2135_v47  ;;  %v2134_v52 = vsub.f32 %v2079_v25, %v2110_v46  ;;  %v6382_v27 = vpop.f32.mrf.mxu1  ;;  %v2237_v17 = vsel %vm164_vm0, %v2223_v44, 0.0 }
 0x243   :  { %v2235_v54 = vsel %vm164_vm0, %v2221_v11, 0.0  ;;  %v2156_v32 = vmul.f32 %v2148_v42, %v2124_v35  ;;  %v4976_v31 = vpop.eup %4975  ;;  %v2227_v36 = vmul.f32 %v4974_v13, %v2157_v30 }
 0x244   :  { %v2236_v37 = vadd.f32 %v2235_v54, %v2234_v10  ;;  %v2151_v51 = vadd.f32 0.0009, %v2143_v20  ;;  %v2142_v7 = vmul.f32 2.0, %v2134_v52  ;;  %v6385_v57 = vpop.f32.mrf.mxu1 }
 0x245   :  { %v2225_v19 = vmul.f32 %v4976_v31, %v2156_v32  ;;  %v4978_v40 = vpop.eup %4977  ;;  %v2241_v23 = vsel %vm164_vm0, %v2227_v36, 0.0  ;;  %v2783_v36 = vmul.f32 %v6382_v27, %v6382_v27 }
 0x246   :  { %v2159_v21 = vmul.f32 %v2151_v51, %v2127_v22  ;;  %v2150_v24 = vadd.f32 0.0009, %v2142_v7  ;;  %v6388_v3 = vpop.f32.mrf.mxu1  ;;  %v2238_v59 = vadd.f32 %v2237_v17, %v2236_v37 }
 0x247   :  { %v2239_v6 = vsel %vm164_vm0, %v2225_v19, 0.0  ;;  %v4980_v8 = vpop.eup %4979  ;;  %v2782_v19 = vmul.f32 %v6385_v57, %v6385_v57 }
 0x248   :  { %v2158_v34 = vmul.f32 %v2150_v24, %v2126_v26  ;;  %v6391_v61 = vpop.f32.mrf.mxu1  ;;  %v2240_v55 = vadd.f32 %v2239_v6, %v2238_v59  ;;  %v2231_v60 = vmul.f32 %v4978_v40, %v2159_v21  ;;  %v2785_v21 = vmul.f32 %v6388_v3, %v6388_v3 }
 0x249   :  { %v2784_v6 = vmul.f32 %v6391_v61, %v6391_v61 }
 0x24a   :  { %v2229_v16 = vmul.f32 %v4980_v8, %v2158_v34  ;;  %v6393_v56 = vpop.f32.mrf.mxu1  ;;  %v2242_v18 = vadd.f32 %v2241_v23, %v2240_v55  ;;  %v2245_v29 = vsel %vm164_vm0, %v2231_v60, 0.0 }
 0x24b   :  { %v2787_v34 = vmul.f32 %v6393_v56, %v6393_v56 }
 0x24c   :  { %v6396_v12 = vpop.f32.mrf.mxu1  ;;  %v2243_v62 = vsel %vm164_vm0, %v2229_v16, 0.0 }
 0x24d   :  { %v2244_v46 = vadd.f32 %v2243_v62, %v2242_v18 }
 0x24e   :  { %v6399_v0 = vpop.f32.mrf.mxu1 }
 0x24f   :  { %v2246_v45 = vadd.f32 %v2245_v29, %v2244_v46  ;;  %v6447_v18 = vmul.f32 %v6399_v0, %v6399_v0 }
 0x250   :  { %v6402_v5 = vpop.f32.mrf.mxu1 }
 0x251   :  { %2247 = vadd.xlane.f32.xlu1 %v2246_v45  ;;  %v6451_v62 = vmul.f32 %v6402_v5, %v6402_v5 }
 0x252   :  { %v4707_v28 = vpop.f32.mrf.mxu1  ;;  %v213_v4 = vpop.xlane.xlu0 %212 }
 0x253   :  { %v214_v9 = vrot.slane %v213_v4, 4  ;;  %v6419_v31 = vmul.f32 %v4707_v28, %v6382_v27  ;;  %v2791_v26 = vmul.f32 %v4707_v28, %v4707_v28  ;;  %v6440_v27 = vmul.f32 %v6396_v12, %v6396_v12 }
 0x254   :  { %v2428_v53 = vpop.f32.mrf.mxu1 }
 0x255   :  { %v465_v48 = vpop.xlane.xlu1 %464  ;;  %v215_v63 = vadd.f32 %v214_v9, %v213_v4  ;;  %v2790_v24 = vmul.f32 %v2428_v53, %v2428_v53  ;;  %v6430_v59 = vmul.f32 %v2428_v53, %v6385_v57  ;;  %v2807_v8 = vmul.f32 2.0, %v6419_v31 }
 0x256   :  { %v4710_v33 = vpop.f32.mrf.mxu1  ;;  %v466_v43 = vrot.slane %v465_v48, 4  ;;  %v2855_v55 = vadd.f32 %v2791_v26, %v2783_v36 }
 0x257   :  { %v216_v2 = vrot.slane %v215_v63, 2  ;;  %v2793_v16 = vmul.f32 %v4710_v33, %v4710_v33  ;;  %v2806_v45 = vmul.f32 2.0, %v6430_v59  ;;  %v2854_v28 = vadd.f32 %v2790_v24, %v2782_v19 }
 0x258   :  { %v2438_v1 = vpop.f32.mrf.mxu1  ;;  %v467_v39 = vadd.f32 %v466_v43, %v465_v48  ;;  %v6455_v53 = vmul.f32 %v4710_v33, %v6388_v3  ;;  %v6460_v43 = vadd.f32 0.0001, %v2807_v8 }
 0x259   :  { %v217_v25 = vadd.f32 %v216_v2, %v215_v63  ;;  %v2792_v60 = vmul.f32 %v2438_v1, %v2438_v1  ;;  %v6458_v48 = vmul.f32 %v2438_v1, %v6391_v61  ;;  %v2857_v2 = vadd.f32 %v2793_v16, %v2785_v21 }
 0x25a   :  { %v6404_v14 = vpop.f32.mrf.mxu1  ;;  %v468_v47 = vrot.slane %v467_v39, 2  ;;  %v6462_v3 = vadd.f32 0.0001, %v2806_v45  ;;  %v2862_v33 = vadd.f32 0.0001, %v2854_v28  ;;  %v2809_v61 = vmul.f32 2.0, %v6455_v53 }
 0x25b   :  { %v218_v11 = vrot.slane %v217_v25, 1  ;;  %v2795_v57 = vmul.f32 %v6404_v14, %v6404_v14  ;;  %v2808_v1 = vmul.f32 2.0, %v6458_v48 }
 0x25c   :  { %v6406_v41 = vpop.f32.mrf.mxu1  ;;  %v469_v30 = vadd.f32 %v468_v47, %v467_v39  ;;  %v2863_v47 = vadd.f32 0.0001, %v2855_v55 }
 0x25d   :  { %v219_v20 = vadd.f32 %v218_v11, %v217_v25 }
 0x25e   :  { %v6408_v58 = vpop.f32.mrf.mxu1  ;;  %v339_v49 = vpop.xlane.xlu0 %338  ;;  %v470_v52 = vrot.slane %v469_v30, 1 }
 0x25f   :  { %v340_v38 = vrot.slane %v339_v49, 4  ;;  %4941 = vpush %v219_v20 }
 0x260   :  { %v6410_v50 = vpop.f32.mrf.mxu1  ;;  %v471_v32 = vadd.f32 %v470_v52, %v469_v30 }
 0x261   :  { %v341_v44 = vadd.f32 %v340_v38, %v339_v49  ;;  %v2856_v49 = vadd.f32 %v2792_v60, %v2784_v6 }
 0x262   :  { %v4735_v15 = vpop.f32.mrf.mxu1 }
 0x263   :  { %v342_v42 = vrot.slane %v341_v44, 2  ;;  %v2871_v46 = vsub.f32 %v4735_v15, %v2783_v36  ;;  %v2859_v15 = vadd.f32 %v2795_v57, %v2787_v34  ;;  %v2864_v36 = vadd.f32 0.0001, %v2856_v49 }
 0x264   :  { %v2533_v10 = vpop.f32.mrf.mxu1 }
 0x265   :  { %v343_v54 = vadd.f32 %v342_v42, %v341_v44  ;;  %v2870_v9 = vsub.f32 %v2533_v10, %v2782_v19  ;;  %v2867_v19 = vadd.f32 0.0001, %v2859_v15 }
 0x266   :  { %v4738_v35 = vpop.f32.mrf.mxu1 }
 0x267   :  { %v344_v37 = vrot.slane %v343_v54, 1  ;;  %v2873_v25 = vsub.f32 %v4738_v35, %v2785_v21  ;;  %v6469_v35 = vmul.f32 %v6404_v14, %v6393_v56 }
 0x268   :  { %v6412_v22 = vpop.f32.mrf.mxu1 }
 0x269   :  { %v345_v7 = vadd.f32 %v344_v37, %v343_v54  ;;  %v2872_v10 = vsub.f32 %v6412_v22, %v2784_v6  ;;  %v2865_v37 = vadd.f32 0.0001, %v2857_v2  ;;  %v2797_v22 = vmul.f32 %v6408_v58, %v6408_v58 }
 0x26a   :  { %v6414_v13 = vpop.f32.mrf.mxu1  ;;  %v2811_v49 = vmul.f32 2.0, %v6469_v35 }
 0x26b   :  { %4943 = vpush %v345_v7  ;;  %v2875_v6 = vsub.f32 %v6414_v13, %v2787_v34 }
 0x26c   :  { %v6416_v51 = vpop.f32.mrf.mxu1  ;;  %4945 = vpush %v471_v32  ;;  %v2794_v32 = vmul.f32 %v6406_v41, %v6406_v41 }
 0x26d   :  { %v2874_v56 = vsub.f32 %v6416_v51, %v6440_v27 }
 0x26e   :  { %v6421_v17 = vpop.f32.mrf.mxu1 }
 0x26f   :  { %v2877_v13 = vsub.f32 %v6421_v17, %v6447_v18 }
 0x270   :  { %v6432_v40 = vpop.f32.mrf.mxu1 }
 0x271   :  { %v2876_v51 = vsub.f32 %v6432_v40, %v6451_v62  ;;  %v2817_v40 = vadd.f32 0.0001, %v2809_v61 }
 0x272   :  { %v4763_v23 = vpop.f32.mrf.mxu1 }
 0x273   :  { %v2879_v29 = vsub.f32 %v4763_v23, %v2791_v26 }
 0x274   :  { %v2638_v4 = vpop.f32.mrf.mxu1 }
 0x275   :  { %v2887_v39 = vadd.f32 %v2879_v29, %v2871_v46  ;;  %v2878_v63 = vsub.f32 %v2638_v4, %v2790_v24  ;;  %v2858_v46 = vadd.f32 %v2794_v32, %v6440_v27  ;;  %v2796_v29 = vmul.f32 %v6410_v50, %v6410_v50 }
 0x276   :  { %v4766_v38 = vpop.f32.mrf.mxu1 }
 0x277   :  { %v2895_v44 = vadd.f32 0.0009, %v2887_v39  ;;  %v2886_v11 = vadd.f32 %v2878_v63, %v2870_v9  ;;  %v2881_v30 = vsub.f32 %v4766_v38, %v2793_v16  ;;  %v2861_v9 = vadd.f32 %v2797_v22, %v6447_v18 }
 0x278   :  { %v2648_v42 = vpop.f32.mrf.mxu1  ;;  %v2866_v15 = vadd.f32 0.0001, %v2858_v46  ;;  %v2860_v17 = vadd.f32 %v2796_v29, %v6451_v62 }
 0x279   :  { %v2894_v20 = vadd.f32 0.0009, %v2886_v11  ;;  %v2889_v52 = vadd.f32 %v2881_v30, %v2873_v25  ;;  %v2880_v54 = vsub.f32 %v2648_v42, %v2792_v60  ;;  %v2903_v7 = vmul.f32 %v2895_v44, %v2863_v47 }
 0x27a   :  { %v4769_v26 = vpop.f32.mrf.mxu1  ;;  %v2816_v30 = vadd.f32 0.0001, %v2808_v1 }
 0x27b   :  { %v2897_v21 = vadd.f32 0.0009, %v2889_v52  ;;  %v2888_v24 = vadd.f32 %v2880_v54, %v2872_v10  ;;  %v2902_v8 = vmul.f32 %v2894_v20, %v2862_v33  ;;  %v2883_v55 = vsub.f32 %v4769_v26, %v2795_v57  ;;  %v5032_v54 = vld [vmem:[#allocation6] sm:$0xff] }
 0x27c   :  { %v2658_v16 = vpop.f32.mrf.mxu1  ;;  %4981 = vrcp.f32 %v2903_v7  ;;  %v2869_v33 = vadd.f32 0.0001, %v2861_v9  ;;  %v2819_v7 = vadd.f32 0.0001, %v2811_v49  ;;  %v2802_v26 = vmul.f32 %v6406_v41, %v6396_v12  ;;  %v5034_v12 = vld [vmem:[#allocation6 + $0x10] sm:$0xff]  ;;  %v5035_v9 = vld [vmem:[#allocation6 + $0x18] sm:$0xff] }
 0x27d   :  { %v2905_v14 = vmul.f32 %v2897_v21, %v2865_v37  ;;  %v2896_v60 = vadd.f32 0.0009, %v2888_v24  ;;  %v2882_v23 = vsub.f32 %v2658_v16, %v2794_v32  ;;  %v2891_v45 = vadd.f32 %v2883_v55, %v2875_v6  ;;  %v5033_v32 = vld [vmem:[#allocation6 + $0x8] sm:$0xff] }
 0x27e   :  { %v4772_v28 = vpop.f32.mrf.mxu1  ;;  %4983 = vrcp.f32 %v2902_v8  ;;  %v3645_v37 = vsel %vm164_vm0, %v5032_v54, 0.0  ;;  %v3646_v62 = vsel %vm164_vm0, %v5033_v32, 0.0  ;;  %v3648_v41 = vsel %vm164_vm0, %v5034_v12, 0.0 }
 0x27f   :  { %v2904_v34 = vmul.f32 %v2896_v60, %v2864_v36  ;;  %v2890_v57 = vadd.f32 %v2882_v23, %v2874_v56  ;;  %v2885_v4 = vsub.f32 %v4772_v28, %v2797_v22  ;;  %v2899_v39 = vadd.f32 0.0009, %v2891_v45 }
 0x280   :  { %v2668_v27 = vpop.f32.mrf.mxu1  ;;  %4985 = vrcp.f32 %v2905_v14  ;;  %v2868_v36 = vadd.f32 0.0001, %v2860_v17  ;;  %v3647_v8 = vadd.f32 %v3646_v62, %v3645_v37  ;;  %v2805_v14 = vmul.f32 %v6408_v58, %v6399_v0  ;;  %v5036_v37 = vld [vmem:[#allocation6 + $0x20] sm:$0xff] }
 0x281   :  { %v2898_v63 = vadd.f32 0.0009, %v2890_v57  ;;  %v2893_v47 = vadd.f32 %v2885_v4, %v2877_v13  ;;  %v2884_v2 = vsub.f32 %v2668_v27, %v2796_v29  ;;  %4987 = vrcp.f32 %v2904_v34 }
 0x282   :  { %v4791_v38 = vpop.f32.mrf.mxu1  ;;  %v2907_v25 = vmul.f32 %v2899_v39, %v2867_v19  ;;  %v3649_v34 = vadd.f32 %v3648_v41, %v3647_v8  ;;  %v2813_v39 = vmul.f32 2.0, %v2805_v14  ;;  %v5037_v8 = vld [vmem:[#allocation6 + $0x28] sm:$0xff] }
 0x283   :  { %v2901_v44 = vadd.f32 0.0009, %v2893_v47  ;;  %v2892_v18 = vadd.f32 %v2884_v2, %v2876_v51  ;;  %v2823_v11 = vsub.f32 %v4791_v38, %v6419_v31  ;;  %v2906_v42 = vmul.f32 %v2898_v63, %v2866_v15 }
 0x284   :  { %v2743_v10 = vpop.f32.mrf.mxu1  ;;  %4989 = vrcp.f32 %v2907_v25  ;;  %v2821_v32 = vadd.f32 0.0001, %v2813_v39  ;;  %v5039_v39 = vld [vmem:[#allocation6 + $0x38] sm:$0xff] }
 0x285   :  { %v2900_v20 = vadd.f32 0.0009, %v2892_v18  ;;  %v2831_v52 = vmul.f32 2.0, %v2823_v11  ;;  %v2822_v31 = vsub.f32 %v2743_v10, %v6430_v59  ;;  %v2909_v1 = vmul.f32 %v2901_v44, %v2869_v33 }
 0x286   :  { %v4794_v61 = vpop.f32.mrf.mxu1  ;;  %4991 = vrcp.f32 %v2906_v42  ;;  %v2810_v59 = vmul.f32 2.0, %v2802_v26 }
 0x287   :  { %v2839_v19 = vadd.f32 0.0009, %v2831_v52  ;;  %v2825_v21 = vsub.f32 %v4794_v61, %v6455_v53  ;;  %v2908_v24 = vmul.f32 %v2900_v20, %v2868_v36  ;;  %v2830_v22 = vmul.f32 2.0, %v2822_v31 }
 0x288   :  { %v2753_v6 = vpop.f32.mrf.mxu1  ;;  %v2804_v53 = vmul.f32 %v6410_v50, %v6402_v5  ;;  %4993 = vrcp.f32 %v2909_v1  ;;  %v3650_v5 = vsel %vm164_vm0, %v5035_v9, 0.0  ;;  %v2818_v51 = vadd.f32 0.0001, %v2810_v59 }
 0x289   :  { %v2847_v55 = vmul.f32 %v2839_v19, %v6460_v43  ;;  %v2833_v16 = vmul.f32 2.0, %v2825_v21  ;;  %v2824_v56 = vsub.f32 %v2753_v6, %v6458_v48  ;;  %v2838_v60 = vadd.f32 0.0009, %v2830_v22  ;;  %v4982_v46 = vpop.eup %4981 }
 0x28a   :  { %v4797_v23 = vpop.f32.mrf.mxu1  ;;  %4995 = vrcp.f32 %v2908_v24  ;;  %v2812_v2 = vmul.f32 2.0, %v2804_v53  ;;  %v3651_v18 = vadd.f32 %v3650_v5, %v3649_v34  ;;  %v5038_v34 = vld [vmem:[#allocation6 + $0x30] sm:$0xff] }
 0x28b   :  { %v2841_v29 = vadd.f32 0.0009, %v2833_v16  ;;  %v2832_v45 = vmul.f32 2.0, %v2824_v56  ;;  %v2827_v43 = vsub.f32 %v4797_v23, %v6469_v35  ;;  %v2913_v48 = vmul.f32 %v4982_v46, %v2847_v55  ;;  %v4984_v57 = vpop.eup %4983 }
 0x28c   :  { %v2846_v28 = vmul.f32 %v2838_v60, %v6462_v3  ;;  %v2763_v13 = vpop.f32.mrf.mxu1  ;;  %v2820_v62 = vadd.f32 0.0001, %v2812_v2  ;;  %v3654_v55 = vsel %vm164_vm0, %v5037_v8, 0.0 }
 0x28d   :  { %v2849_v4 = vmul.f32 %v2841_v29, %v2817_v40  ;;  %v2840_v0 = vadd.f32 0.0009, %v2832_v45  ;;  %v2835_v58 = vmul.f32 2.0, %v2827_v43  ;;  %v4986_v50 = vpop.eup %4985  ;;  %v2826_v63 = vsub.f32 %v2763_v13, %v2802_v26 }
 0x28e   :  { %v2911_v27 = vmul.f32 %v4984_v57, %v2846_v28  ;;  %v4800_v47 = vpop.f32.mrf.mxu1  ;;  %v4988_v35 = vpop.eup %4987  ;;  %v2927_v17 = vsel %vm164_vm0, %v2913_v48, 0.0  ;;  %v3656_v57 = vsel %vm164_vm0, %v5038_v34, 0.0 }
 0x28f   :  { %v2848_v49 = vmul.f32 %v2840_v0, %v2816_v30  ;;  %v2843_v15 = vadd.f32 0.0009, %v2835_v58  ;;  %v2829_v3 = vsub.f32 %v4800_v47, %v2805_v14  ;;  %v2834_v25 = vmul.f32 2.0, %v2826_v63 }
 0x290   :  { %v2926_v38 = vsel %vm164_vm0, %v2911_v27, 0.0  ;;  %v2773_v44 = vpop.f32.mrf.mxu1  ;;  %v2917_v40 = vmul.f32 %v4986_v50, %v2849_v4  ;;  %v3652_v30 = vsel %vm164_vm0, %v5036_v37, 0.0  ;;  %v3658_v27 = vsel %vm164_vm0, %v5039_v39, 0.0 }
 0x291   :  { %v2928_v11 = vadd.f32 %v2927_v17, %v2926_v38  ;;  %v2915_v33 = vmul.f32 %v4988_v35, %v2848_v49  ;;  %v2851_v42 = vmul.f32 %v2843_v15, %v2819_v7  ;;  %v2842_v10 = vadd.f32 0.0009, %v2834_v25  ;;  %v4990_v36 = vpop.eup %4989 }
 0x292   :  { %v2837_v20 = vmul.f32 2.0, %v2829_v3  ;;  %v2828_v52 = vsub.f32 %v2773_v44, %v2804_v53  ;;  %v6507_v54 = vpop.f32.mrf.mxu1  ;;  %v2931_v24 = vsel %vm164_vm0, %v2917_v40, 0.0  ;;  %v3653_v6 = vadd.f32 %v3652_v30, %v3651_v18 }
 0x293   :  { %v2929_v26 = vsel %vm164_vm0, %v2915_v33, 0.0  ;;  %v2850_v61 = vmul.f32 %v2842_v10, %v2818_v51  ;;  %v4992_v7 = vpop.eup %4991  ;;  %v2921_v22 = vmul.f32 %v4990_v36, %v2851_v42  ;;  %v3477_v37 = vmul.f32 %v6507_v54, %v6507_v54 }
 0x294   :  { %v2930_v31 = vadd.f32 %v2929_v26, %v2928_v11  ;;  %v2845_v1 = vadd.f32 0.0009, %v2837_v20  ;;  %v2836_v19 = vmul.f32 2.0, %v2828_v52  ;;  %v6511_v21 = vpop.f32.mrf.mxu1  ;;  %v3655_v45 = vadd.f32 %v3654_v55, %v3653_v6 }
 0x295   :  { %v2919_v16 = vmul.f32 %v4992_v7, %v2850_v61  ;;  %v4994_v14 = vpop.eup %4993  ;;  %v2935_v13 = vsel %vm164_vm0, %v2921_v22, 0.0  ;;  %v3476_v26 = vmul.f32 %v6511_v21, %v6511_v21 }
 0x296   :  { %v2853_v56 = vmul.f32 %v2845_v1, %v2821_v32  ;;  %v2844_v12 = vadd.f32 0.0009, %v2836_v19  ;;  %v6515_v41 = vpop.f32.mrf.mxu1  ;;  %v2932_v59 = vadd.f32 %v2931_v24, %v2930_v31  ;;  %v3657_v5 = vadd.f32 %v3656_v57, %v3655_v45 }
 0x297   :  { %v2933_v53 = vsel %vm164_vm0, %v2919_v16, 0.0  ;;  %v4996_v46 = vpop.eup %4995  ;;  %v3479_v36 = vmul.f32 %v6515_v41, %v6515_v41 }
 0x298   :  { %v2852_v60 = vmul.f32 %v2844_v12, %v2820_v62  ;;  %v6518_v23 = vpop.f32.mrf.mxu1  ;;  %v2934_v29 = vadd.f32 %v2933_v53, %v2932_v59  ;;  %v2925_v28 = vmul.f32 %v4994_v14, %v2853_v56  ;;  %v3659_v35 = vadd.f32 %v3658_v27, %v3657_v5 }
 0x299   :  { %v3478_v31 = vmul.f32 %v6518_v23, %v6518_v23 }
 0x29a   :  { %v2923_v43 = vmul.f32 %v4996_v46, %v2852_v60  ;;  %v6520_v48 = vpop.f32.mrf.mxu1  ;;  %v2936_v4 = vadd.f32 %v2935_v13, %v2934_v29  ;;  %v2939_v51 = vsel %vm164_vm0, %v2925_v28, 0.0 }
 0x29b   :  { %v3481_v1 = vmul.f32 %v6520_v48, %v6520_v48 }
 0x29c   :  { %v6524_v0 = vpop.f32.mrf.mxu1  ;;  %v2937_v58 = vsel %vm164_vm0, %v2923_v43, 0.0 }
 0x29d   :  { %v2938_v9 = vadd.f32 %v2937_v58, %v2936_v4  ;;  %v3480_v22 = vmul.f32 %v6524_v0, %v6524_v0 }
 0x29e   :  { %v6527_v50 = vpop.f32.mrf.mxu1 }
 0x29f   :  { %v2940_v63 = vadd.f32 %v2939_v51, %v2938_v9  ;;  %v6569_v6 = vmul.f32 %v6527_v50, %v6527_v50 }
 0x2a0   :  { %v6531_v47 = vpop.f32.mrf.mxu1 }
 0x2a1   :  { %2941 = vadd.xlane.f32.xlu0 %v2940_v63  ;;  %v6573_v16 = vmul.f32 %v6531_v47, %v6531_v47 }
 0x2a2   :  { %v4847_v2 = vpop.f32.mrf.mxu1 }
 0x2a3   :  { %v6546_v20 = vmul.f32 %v4847_v2, %v6507_v54  ;;  %v3485_v30 = vmul.f32 %v4847_v2, %v4847_v2 }
 0x2a4   :  { %v3122_v49 = vpop.f32.mrf.mxu1 }
 0x2a5   :  { %3660 = vadd.xlane.f32.xlu0 %v3659_v35  ;;  %v3484_v32 = vmul.f32 %v3122_v49, %v3122_v49  ;;  %v3501_v61 = vmul.f32 2.0, %v6546_v20  ;;  %v3549_v56 = vadd.f32 %v3485_v30, %v3477_v37  ;;  %v6576_v12 = vmul.f32 %v3122_v49, %v6511_v21 }
 0x2a6   :  { %v4850_v15 = vpop.f32.mrf.mxu1 }
 0x2a7   :  { %v3487_v19 = vmul.f32 %v4850_v15, %v4850_v15  ;;  %v3548_v59 = vadd.f32 %v3484_v32, %v3476_v26  ;;  %v6578_v53 = vadd.f32 0.0001, %v3501_v61  ;;  %v6581_v45 = vmul.f32 %v4850_v15, %v6515_v41 }
 0x2a8   :  { %v3132_v3 = vpop.f32.mrf.mxu1  ;;  %v3557_v21 = vadd.f32 0.0001, %v3549_v56  ;;  %v3500_v5 = vmul.f32 2.0, %v6576_v12 }
 0x2a9   :  { %v3486_v54 = vmul.f32 %v3132_v3, %v3132_v3  ;;  %v3551_v43 = vadd.f32 %v3487_v19, %v3479_v36  ;;  %v3556_v51 = vadd.f32 0.0001, %v3548_v59  ;;  %v6585_v39 = vmul.f32 %v3132_v3, %v6518_v23 }
 0x2aa   :  { %v6533_v17 = vpop.f32.mrf.mxu1  ;;  %v3503_v49 = vmul.f32 2.0, %v6581_v45 }
 0x2ab   :  { %v3489_v7 = vmul.f32 %v6533_v17, %v6533_v17  ;;  %v3550_v28 = vadd.f32 %v3486_v54, %v3478_v31  ;;  %v3559_v15 = vadd.f32 0.0001, %v3551_v43 }
 0x2ac   :  { %v6535_v38 = vpop.f32.mrf.mxu1 }
 0x2ad   :  { %v3553_v13 = vadd.f32 %v3489_v7, %v3481_v1 }
 0x2ae   :  { %v6537_v25 = vpop.f32.mrf.mxu1 }
 0x2af   :  { %v3491_v23 = vmul.f32 %v6537_v25, %v6537_v25 }
 0x2b0   :  { %v6539_v44 = vpop.f32.mrf.mxu1 }
 0x2b2   :  { %v4875_v18 = vpop.f32.mrf.mxu1 }
 0x2b3   :  { %v3565_v8 = vsub.f32 %v4875_v18, %v3477_v37  ;;  %v3488_v18 = vmul.f32 %v6535_v38, %v6535_v38  ;;  %v3558_v37 = vadd.f32 0.0001, %v3550_v28 }
 0x2b4   :  { %v3227_v11 = vpop.f32.mrf.mxu1 }
 0x2b5   :  { %v3564_v60 = vsub.f32 %v3227_v11, %v3476_v26 }
 0x2b6   :  { %v4878_v40 = vpop.f32.mrf.mxu1 }
 0x2b7   :  { %v3567_v57 = vsub.f32 %v4878_v40, %v3479_v36 }
 0x2b8   :  { %v3237_v33 = vpop.f32.mrf.mxu1 }
 0x2b9   :  { %v3566_v63 = vsub.f32 %v3237_v33, %v3478_v31 }
 0x2ba   :  { %v6541_v42 = vpop.f32.mrf.mxu1 }
 0x2bb   :  { %v3569_v3 = vsub.f32 %v6541_v42, %v3481_v1 }
 0x2bc   :  { %v6543_v10 = vpop.f32.mrf.mxu1 }
 0x2bd   :  { %v3568_v61 = vsub.f32 %v6543_v10, %v3480_v22 }
 0x2be   :  { %v6548_v52 = vpop.f32.mrf.mxu1 }
 0x2c0   :  { %v6552_v62 = vpop.f32.mrf.mxu1 }
 0x2c1   :  { %v3570_v10 = vsub.f32 %v6552_v62, %v6573_v16 }
 0x2c2   :  { %v4903_v24 = vpop.f32.mrf.mxu1 }
 0x2c3   :  { %v3573_v55 = vsub.f32 %v4903_v24, %v3485_v30  ;;  %v3561_v30 = vadd.f32 0.0001, %v3553_v13  ;;  %v3497_v13 = vmul.f32 %v6533_v17, %v6520_v48  ;;  %v3496_v17 = vmul.f32 %v6535_v38, %v6524_v0 }
 0x2c4   :  { %v3332_v14 = vpop.f32.mrf.mxu1 }
 0x2c5   :  { %v3581_v46 = vadd.f32 %v3573_v55, %v3565_v8  ;;  %v3572_v29 = vsub.f32 %v3332_v14, %v3484_v32  ;;  %v3552_v8 = vadd.f32 %v3488_v18, %v3480_v22  ;;  %v3490_v55 = vmul.f32 %v6539_v44, %v6539_v44 }
 0x2c6   :  { %v4906_v34 = vpop.f32.mrf.mxu1  ;;  %v3571_v14 = vsub.f32 %v6548_v52, %v6569_v6  ;;  %v3505_v48 = vmul.f32 2.0, %v3497_v13 }
 0x2c7   :  { %v3589_v4 = vadd.f32 0.0009, %v3581_v46  ;;  %v3580_v58 = vadd.f32 %v3572_v29, %v3564_v60  ;;  %v3575_v9 = vsub.f32 %v4906_v34, %v3487_v19  ;;  %v3560_v34 = vadd.f32 0.0001, %v3552_v8 }
 0x2c8   :  { %v3342_v27 = vpop.f32.mrf.mxu1  ;;  %v3554_v52 = vadd.f32 %v3490_v55, %v6573_v16 }
 0x2c9   :  { %v3588_v35 = vadd.f32 0.0009, %v3580_v58  ;;  %v3583_v41 = vadd.f32 %v3575_v9, %v3567_v57  ;;  %v3574_v2 = vsub.f32 %v3342_v27, %v3486_v54  ;;  %v3597_v11 = vmul.f32 %v3589_v4, %v3557_v21 }
 0x2ca   :  { %v4909_v40 = vpop.f32.mrf.mxu1  ;;  %v3508_v9 = vadd.f32 0.0001, %v3500_v5  ;;  %v3511_v21 = vadd.f32 0.0001, %v3503_v49  ;;  %v3562_v16 = vadd.f32 0.0001, %v3554_v52 }
 0x2cb   :  { %v3591_v32 = vadd.f32 0.0009, %v3583_v41  ;;  %v3582_v26 = vadd.f32 %v3574_v2, %v3566_v63  ;;  %v3596_v33 = vmul.f32 %v3588_v35, %v3556_v51  ;;  %v3577_v36 = vsub.f32 %v4909_v40, %v3489_v7 }
 0x2cc   :  { %v3352_v31 = vpop.f32.mrf.mxu1  ;;  %4997 = vrcp.f32 %v3597_v11  ;;  %v3555_v7 = vadd.f32 %v3491_v23, %v6569_v6  ;;  %v3502_v51 = vmul.f32 2.0, %v6585_v39 }
 0x2cd   :  { %v3599_v19 = vmul.f32 %v3591_v32, %v3559_v15  ;;  %v3590_v54 = vadd.f32 0.0009, %v3582_v26  ;;  %v3576_v24 = vsub.f32 %v3352_v31, %v3488_v18  ;;  %v3585_v56 = vadd.f32 %v3577_v36, %v3569_v3 }
 0x2ce   :  { %v4912_v59 = vpop.f32.mrf.mxu1  ;;  %4999 = vrcp.f32 %v3596_v33  ;;  %v3563_v35 = vadd.f32 0.0001, %v3555_v7  ;;  %v3510_v49 = vadd.f32 0.0001, %v3502_v51  ;;  %v3499_v32 = vmul.f32 %v6537_v25, %v6527_v50 }
 0x2cf   :  { %v3598_v60 = vmul.f32 %v3590_v54, %v3558_v37  ;;  %v3584_v42 = vadd.f32 %v3576_v24, %v3568_v61  ;;  %v3579_v1 = vsub.f32 %v4912_v59, %v3491_v23  ;;  %v3593_v46 = vadd.f32 0.0009, %v3585_v56 }
 0x2d0   :  { %v3362_v22 = vpop.f32.mrf.mxu1  ;;  %5001 = vrcp.f32 %v3599_v19  ;;  %v3504_v23 = vmul.f32 2.0, %v3496_v17  ;;  %v3498_v3 = vmul.f32 %v6539_v44, %v6531_v47 }
 0x2d1   :  { %v3592_v29 = vadd.f32 0.0009, %v3584_v42  ;;  %v3587_v43 = vadd.f32 %v3579_v1, %v3571_v14  ;;  %v3578_v28 = vsub.f32 %v3362_v22, %v3490_v55  ;;  %5003 = vrcp.f32 %v3598_v60 }
 0x2d2   :  { %v4931_v57 = vpop.f32.mrf.mxu1  ;;  %v3601_v4 = vmul.f32 %v3593_v46, %v3561_v30  ;;  %v3512_v47 = vadd.f32 0.0001, %v3504_v23 }
 0x2d3   :  { %v3595_v6 = vadd.f32 0.0009, %v3587_v43  ;;  %v3586_v58 = vadd.f32 %v3578_v28, %v3570_v10  ;;  %v3517_v62 = vsub.f32 %v4931_v57, %v6546_v20  ;;  %v3600_v27 = vmul.f32 %v3592_v29, %v3560_v34 }
 0x2d4   :  { %v3437_v63 = vpop.f32.mrf.mxu1  ;;  %5005 = vrcp.f32 %v3601_v4  ;;  %v3506_v10 = vmul.f32 2.0, %v3498_v3 }
 0x2d5   :  { %v3594_v41 = vadd.f32 0.0009, %v3586_v58  ;;  %v3525_v2 = vmul.f32 2.0, %v3517_v62  ;;  %v3516_v15 = vsub.f32 %v3437_v63, %v6576_v12  ;;  %v3603_v11 = vmul.f32 %v3595_v6, %v3563_v35 }
 0x2d6   :  { %v4934_v18 = vpop.f32.mrf.mxu1  ;;  %5007 = vrcp.f32 %v3600_v27  ;;  %v3513_v12 = vadd.f32 0.0001, %v3505_v48 }
 0x2d7   :  { %v3533_v20 = vadd.f32 0.0009, %v3525_v2  ;;  %v3519_v5 = vsub.f32 %v4934_v18, %v6581_v45  ;;  %v3602_v40 = vmul.f32 %v3594_v41, %v3562_v16  ;;  %v3524_v37 = vmul.f32 2.0, %v3516_v15 }
 0x2d8   :  { %v3447_v30 = vpop.f32.mrf.mxu1  ;;  %5009 = vrcp.f32 %v3603_v11  ;;  %v3514_v15 = vadd.f32 0.0001, %v3506_v10 }
 0x2d9   :  { %v3541_v26 = vmul.f32 %v3533_v20, %v6578_v53  ;;  %v3527_v0 = vmul.f32 2.0, %v3519_v5  ;;  %v3518_v38 = vsub.f32 %v3447_v30, %v6585_v39  ;;  %v3532_v33 = vadd.f32 0.0009, %v3524_v37  ;;  %v4998_v31 = vpop.eup %4997 }
 0x2da   :  { %v2248_v45 = vpop.xlane.xlu1 %2247  ;;  %v4937_v36 = vpop.f32.mrf.mxu1  ;;  %5011 = vrcp.f32 %v3602_v40  ;;  %v3507_v39 = vmul.f32 2.0, %v3499_v32 }
 0x2db   :  { %v3535_v61 = vadd.f32 0.0009, %v3527_v0  ;;  %v3526_v19 = vmul.f32 2.0, %v3518_v38  ;;  %v2249_v54 = vrot.slane %v2248_v45, 4  ;;  %v3607_v50 = vmul.f32 %v4998_v31, %v3541_v26  ;;  %v5000_v8 = vpop.eup %4999 }
 0x2dc   :  { %v3540_v25 = vmul.f32 %v3532_v33, %v3508_v9  ;;  %v3521_v53 = vsub.f32 %v4937_v36, %v3497_v13  ;;  %v3457_v24 = vpop.f32.mrf.mxu1  ;;  %v3515_v41 = vadd.f32 0.0001, %v3507_v39 }
 0x2dd   :  { %v3543_v55 = vmul.f32 %v3535_v61, %v3511_v21  ;;  %v3534_v56 = vadd.f32 0.0009, %v3526_v19  ;;  %v2250_v59 = vadd.f32 %v2249_v54, %v2248_v45  ;;  %v5002_v14 = vpop.eup %5001  ;;  %v3520_v42 = vsub.f32 %v3457_v24, %v3496_v17 }
 0x2de   :  { %v3605_v44 = vmul.f32 %v5000_v8, %v3540_v25  ;;  %v3529_v60 = vmul.f32 2.0, %v3521_v53  ;;  %v4940_v1 = vpop.f32.mrf.mxu1  ;;  %v5004_v7 = vpop.eup %5003  ;;  %v3621_v43 = vsel %vm164_vm0, %v3607_v50, 0.0 }
 0x2df   :  { %v3542_v46 = vmul.f32 %v3534_v56, %v3510_v49  ;;  %v2251_v22 = vrot.slane %v2250_v59, 2  ;;  %v3523_v29 = vsub.f32 %v4940_v1, %v3499_v32  ;;  %v3528_v34 = vmul.f32 2.0, %v3520_v42 }
 0x2e0   :  { %v3620_v28 = vsel %vm164_vm0, %v3605_v44, 0.0  ;;  %v3537_v13 = vadd.f32 0.0009, %v3529_v60  ;;  %v3467_v52 = vpop.f32.mrf.mxu1  ;;  %v3611_v4 = vmul.f32 %v5002_v14, %v3543_v55 }
 0x2e1   :  { %v3622_v57 = vadd.f32 %v3621_v43, %v3620_v28  ;;  %v3609_v6 = vmul.f32 %v5004_v7, %v3542_v46  ;;  %v3531_v58 = vmul.f32 2.0, %v3523_v29  ;;  %v3536_v9 = vadd.f32 0.0009, %v3528_v34  ;;  %v5006_v35 = vpop.eup %5005 }
 0x2e2   :  { %v3545_v62 = vmul.f32 %v3537_v13, %v3513_v12  ;;  %v3522_v21 = vsub.f32 %v3467_v52, %v3498_v3  ;;  %v2252_v51 = vadd.f32 %v2251_v22, %v2250_v59  ;;  %v3625_v18 = vsel %vm164_vm0, %v3611_v4, 0.0 }
 0x2e3   :  { %v3623_v27 = vsel %vm164_vm0, %v3609_v6, 0.0  ;;  %v3539_v63 = vadd.f32 0.0009, %v3531_v58  ;;  %v3544_v48 = vmul.f32 %v3536_v9, %v3512_v47  ;;  %v5008_v16 = vpop.eup %5007 }
 0x2e4   :  { %v3624_v2 = vadd.f32 %v3623_v27, %v3622_v57  ;;  %v3530_v17 = vmul.f32 2.0, %v3522_v21  ;;  %v3615_v11 = vmul.f32 %v5006_v35, %v3545_v62  ;;  %v2253_v20 = vrot.slane %v2252_v51, 1 }
 0x2e5   :  { %v3613_v5 = vmul.f32 %v5008_v16, %v3544_v48  ;;  %v3547_v49 = vmul.f32 %v3539_v63, %v3515_v41  ;;  %v5010_v32 = vpop.eup %5009 }
 0x2e6   :  { %v3538_v40 = vadd.f32 0.0009, %v3530_v17  ;;  %v3626_v37 = vadd.f32 %v3625_v18, %v3624_v2  ;;  %v2254_v30 = vadd.f32 %v2253_v20, %v2252_v51  ;;  %v3629_v33 = vsel %vm164_vm0, %v3615_v11, 0.0 }
 0x2e7   :  { %v3627_v26 = vsel %vm164_vm0, %v3613_v5, 0.0  ;;  %v5012_v38 = vpop.eup %5011  ;;  %v3619_v3 = vmul.f32 %v5010_v32, %v3547_v49 }
 0x2e8   :  { %v3546_v0 = vmul.f32 %v3538_v40, %v3514_v15  ;;  %4947 = vpush %v2254_v30  ;;  %v3628_v12 = vadd.f32 %v3627_v26, %v3626_v37 }
 0x2e9   :  { %v3633_v61 = vsel %vm164_vm0, %v3619_v3, 0.0 }
 0x2ea   :  { %v3617_v23 = vmul.f32 %v5012_v38, %v3546_v0  ;;  %v3630_v45 = vadd.f32 %v3629_v33, %v3628_v12 }
 0x2ec   :  { %v3631_v36 = vsel %vm164_vm0, %v3617_v23, 0.0 }
 0x2ed   :  { %v3632_v31 = vadd.f32 %v3631_v36, %v3630_v45 }
 0x2ef   :  { %v3634_v19 = vadd.f32 %v3633_v61, %v3632_v31 }
 0x2f1   :  { %3635 = vadd.xlane.f32.xlu1 %v3634_v19 }
 0x32a   :  { %v2942_v54 = vpop.xlane.xlu0 %2941 }
 0x32b   :  { %v2943_v50 = vrot.slane %v2942_v54, 4 }
 0x32d   :  { %v2944_v25 = vadd.f32 %v2943_v50, %v2942_v54 }
 0x32f   :  { %v2945_v53 = vrot.slane %v2944_v25, 2 }
 0x331   :  { %v2946_v24 = vadd.f32 %v2945_v53, %v2944_v25 }
 0x333   :  { %v2947_v8 = vrot.slane %v2946_v24, 1 }
 0x335   :  { %v2948_v39 = vadd.f32 %v2947_v8, %v2946_v24 }
 0x337   :  { %4949 = vpush %v2948_v39 }
 0x338   :  { %5159 = shalt.err (!%p5156_p1)
}
 0x339   :  { %3702 = dma.vmem_to_hbm [thread:$0]  %s3697_s8, 3072, %s6640_s7, [#allocation15], %s5202_s29, %s5202_s29, %s5203_s30   ;;  %v3661_v55 = vpop.xlane.xlu0 %3660  ;;  %v3669_v43 = vlaneseq }
 0x33a   :  { %v3662_v56 = vrot.slane %v3661_v55, 4  ;;  %s4942_s12 = spop %4941  ;;  %s5209_s17 = smov [#allocation13]  }
 0x33b   :  { %s4944_s13 = spop %4943  ;;  %v3670_v28 = vand.u32 127, %v3669_v43  ;;  %s3687_s18 = sshll.u32 %s5209_s17, 4  ;;  %s3688_s18 = int_to_ptr.vmem [resolvable:$true] %s3687_s18 }
 0x33c   :  { %v3663_v59 = vadd.f32 %v3662_v56, %v3661_v55  ;;  %s4946_s7 = spop %4945  ;;  %s347_s29 = sadd.f32 %s4944_s13, %s4942_s12 }
 0x33d   :  { %s4948_s30 = spop %4947  ;;  %vm3673_vm1 = vcmp.eq.s32.totalorder %v3670_v28, 2  ;;  %vm3672_vm2 = vcmp.eq.s32.totalorder %v3670_v28, 1  ;;  %vm3671_vm3 = vcmp.eq.s32.totalorder %v3670_v28, 0  ;;  %s5168_s20 = scalar_lea.vmem %s3688_s18, 128 }
 0x33e   :  { %v3664_v14 = vrot.slane %v3663_v59, 2  ;;  %s473_s15 = sadd.f32 %s4946_s7, %s347_s29  ;;  %p5169_p2 = scmp.ne.s32.totalorder %s3688_s18, %s5168_s20 }
 0x33f   :  { %p5173_p3 = scmp.lt.s32.totalorder %s3688_s18, %s3688_s18  ;;  %p5174_p4 = scmp.lt.s32.totalorder %s5168_s20, %s5168_s20 }
 0x340   :  { %v3665_v42 = vadd.f32 %v3664_v14, %v3663_v59  ;;  %v3678_v57 = vstv %s473_s15 }
 0x341   :  { %p5175_p5 = por %p5174_p4, %p5173_p3 }
 0x342   :  { %v3666_v10 = vrot.slane %v3665_v42, 1 }
 0x343   :  { %p5176_p6 = pnand %p5175_p5, %p5169_p2 }
 0x344   :  { %v3667_v29 = vadd.f32 %v3666_v10, %v3665_v42 }
 0x368   :  { %s4950_s14 = spop %4949 }
 0x369   :  { %s2950_s2 = sadd.f32 %s4950_s14, %s4948_s30 }
 0x37a   :  { %v3636_v47 = vpop.xlane.xlu1 %3635 }
 0x37b   :  { %v3637_v44 = vrot.slane %v3636_v47, 4 }
 0x37d   :  { %v3638_v60 = vadd.f32 %v3637_v44, %v3636_v47 }
 0x37f   :  { %v3639_v1 = vrot.slane %v3638_v60, 2 }
 0x381   :  { %v3640_v7 = vadd.f32 %v3639_v1, %v3638_v60 }
 0x383   :  { %v3641_v46 = vrot.slane %v3640_v7, 1 }
 0x385   :  { %v3642_v22 = vadd.f32 %v3641_v46, %v3640_v7 }
 0x387   :  { %4951 = vpush %v3642_v22 }
 0x388   :  { %4953 = vpush %v3667_v29 }
 0x3b8   :  { %s4952_s16 = spop %4951 }
 0x3b9   :  { %s3644_s19 = sadd.f32 %s4952_s16, %s2950_s2  ;;  %s4954_s4 = spop %4953 }
 0x3ba   :  { %v3674_v13 = vstv %s4954_s4 }
 0x3bb   :  { %v3676_v34 = vstv %s3644_s19  ;;  %v3675_v52 = vsel %vm3673_vm1, %v3674_v13, 0.0 }
 0x3bc   :  { %v3677_v4 = vsel %vm3672_vm2, %v3676_v34, %v3675_v52 }
 0x3bd   :  { %v3679_v6 = vsel %vm3671_vm3, %v3678_v57, %v3677_v4 }
 0x3be   :  { %3680 = vst [vmem:[#allocation13] sm:$0xff] %v3679_v6 }
 0x3bf   :  { %5179 = shalt.err (!%p5176_p6)
}
 0x3c0   :  { %3690 = dma.vmem_to_hbm [thread:$0]  %s3688_s18, 128, %s6639_s6, [#allocation4]  }
 0x3c1   :  { %5196 = dma.done.wait [#allocation4], 128  }
 0x3c2   :  { %5197 = vsyncadd [#allocation4], 4294967168 }
 0x3c3   :  { %5198 = dma.done.wait [#allocation15], 3072  }
 0x3c4   :  { %5199 = vsyncadd [#allocation15], 4294964224 }
 0x3c5   :  { %3709 = vsyncpa [#allocation3], 1 }
 0x3c6   :  { %3710 = vsyncpa [#allocation8], 1 }
 0x3c7   :  { %3711 = vsyncpa [#allocation11], 1 }
 0x3c8   :  { %3712 = vsyncpa [#allocation4], 1 }
 0x3c9   :  { %3713 = vsyncpa [#allocation15], 1 }
 0x3ca   :  { %3714 = vsyncpa [#allocation5], 1 }

</bundles_post_ra>
